<compile_context>
chip_gen: v7x
topology: tpu7x:2x2x1
jax: 0.10.0
libtpu: 0.0.40
codegen_flags: <defaults>
</compile_context>

<pallas_src>
import functools

import jax
import jax.numpy as jnp
from jax import lax
from jax.experimental import pallas as pl
from jax.experimental.pallas import tpu as pltpu

# ----------------------------- configuration ------------------------------
B = 2            # batch
C_IN = 16        # in_features  (d_model of the GRU units)
C_OUT = 16       # out_features (d_model of the transformer layer)
L = 8            # input sequence length
NHEAD = 4
HEAD_DIM = C_OUT // NHEAD
RATIO_FF = 4
NLAYERS = 3      # number of ResidualGRUUnit blocks
S_OUT = 2 * L    # ConvTranspose1d(kernel=2, stride=2): L_out = 2*L
DFF_GRU = C_IN * RATIO_FF
DFF_TR = C_OUT * RATIO_FF
LN_EPS = 1e-5

# Fixed ordering of the weight operands handed to the fused kernel.
WEIGHT_NAMES = (
    # 3 x ResidualGRUUnit (fused gate weights, gate order [r | z | n] on lanes)
    "wih", "whh",                          # (NL, C_IN, 3*C_IN)
    "bih", "bhh",                          # (NL, 1, 3*C_IN)
    "pf_w1", "pf_b1", "pf_w2", "pf_b2",    # PFFN
    # ConvTranspose1d (kernel=2, stride=2, bias=False), taps [k=0 | k=1] on lanes
    "ct_w",                                # (C_IN, 2*C_OUT)
    # TransformerEncoderLayer
    "w_qkv", "b_qkv",                      # (C_OUT, 3*C_OUT), (1, 3*C_OUT)  [q|k|v]
    "wo", "ob",                            # (NHEAD, HEAD_DIM, C_OUT), (1, C_OUT)
    "l1w", "l1b", "l2w", "l2b",            # feed-forward
    "g1", "be1", "g2", "be2",              # LayerNorm affine params
)


# ------------------------------ fused kernel -------------------------------
def decoder_kernel(x_ref, deint_ref,
                   wih, whh, bih, bhh,
                   pf_w1, pf_b1, pf_w2, pf_b2,
                   ct_w,
                   w_qkv, b_qkv, wo, ob,
                   l1w, l1b, l2w, l2b, g1, be1, g2, be2,
                   o_ref,
                   g_scratch, *, nhead, nlayers, batch, ln_eps):
    f32 = jnp.float32
    xs = x_ref[...]                            # (L*B, C_IN), time-major: row = t*B + b
    LB, D = xs.shape
    Bn = batch
    Ln = LB // Bn

    def layer_norm(u, gamma, beta):
        mu = jnp.mean(u, axis=-1, keepdims=True)
        var = jnp.mean(jnp.square(u - mu), axis=-1, keepdims=True)
        return (u - mu) * lax.rsqrt(var + ln_eps) * gamma + beta

    # ---------------- 3 x ResidualGRUUnit (GRU + PFFN + residual) ----------
    for layer in range(nlayers):
        # Hoisted input projections for all gates, whole sequence, both batch
        # items: one (LB, 3C) matmul, off the serial recurrence chain.
        gi = jnp.dot(xs, wih[layer], preferred_element_type=f32) + bih[layer]
        w_h = whh[layer]                       # (C, 3C)
        b_h = bhh[layer]                       # (1, 3C)

        h = jnp.zeros((Bn, D), f32)            # h0 = 0 (nn.GRU default), both items
        for t in range(Ln):                    # fully unrolled recurrence
            gh = jnp.dot(h, w_h, preferred_element_type=f32) + b_h      # (B, 3C)
            gt = gi[t * Bn:(t + 1) * Bn]                                # (B, 3C) contiguous
            r = jax.nn.sigmoid(gt[:, 0:D] + gh[:, 0:D])
            z = jax.nn.sigmoid(gt[:, D:2 * D] + gh[:, D:2 * D])
            n = jnp.tanh(gt[:, 2 * D:3 * D] + r * gh[:, 2 * D:3 * D])
            h = (1.0 - z) * n + z * h
            g_scratch[t * Bn:(t + 1) * Bn, :] = h                       # row store, off chain

        g = g_scratch[...]                     # (LB, C_IN) GRU outputs, time-major

        # PFFN + residual add (dropout = identity in eval)
        hid = jnp.maximum(
            jnp.dot(g, pf_w1[layer], preferred_element_type=f32) + pf_b1[layer], 0.0)
        xs = xs + jnp.dot(hid, pf_w2[layer], preferred_element_type=f32) + pf_b2[layer]

    # ------- de-interleave time-major -> batch-major via constant matmul ----
    # deint[b*L + t, t*B + b] = 1  (permutation matrix, passed as an operand)
    xs_bm = jnp.dot(deint_ref[...], xs, preferred_element_type=f32)     # (LB, C_IN)

    Dm = ob.shape[-1]                          # C_OUT
    hd = Dm // nhead
    scale = 1.0 / float(hd) ** 0.5

    # ----- per batch item: ConvTranspose1d + TransformerEncoderLayer + ReLU -
    for b in range(Bn):
        xb = xs_bm[b * Ln:(b + 1) * Ln]                                 # (L, C_IN)

        # ConvTranspose1d(k=2, s=2, bias=False): out position 2t+k = xb[t] @ W[:,:,k]
        y = jnp.dot(xb, ct_w[...], preferred_element_type=f32)          # (L, 2*C_OUT)
        # Transformer (no mask / pos-enc, eval) is permutation-equivariant ->
        # run it on the [evens ; odds] ordered sequence and un-permute later.
        seq = jnp.concatenate([y[:, 0:Dm], y[:, Dm:2 * Dm]], axis=0)    # (2L, C_OUT)

        # -------- multi-head self-attention, combined QKV projection --------
        qkv = jnp.dot(seq, w_qkv[...], preferred_element_type=f32) + b_qkv[...]
        q = qkv[:, 0:Dm] * scale               # q-scaling after bias (PyTorch order)
        k = qkv[:, Dm:2 * Dm]
        v = qkv[:, 2 * Dm:3 * Dm]

        attn = ob[...]                         # out_proj bias, added once (broadcasts)
        for hh in range(nhead):
            lo = hh * hd
            qh = q[:, lo:lo + hd]
            kh = k[:, lo:lo + hd]
            vh = v[:, lo:lo + hd]
            # contract head dim of q and k directly (no kh.T transpose)
            sc = lax.dot_general(qh, kh, (((1,), (1,)), ((), ())),
                                 preferred_element_type=f32)            # (2L, 2L)
            sc = sc - jnp.max(sc, axis=-1, keepdims=True)
            p = jnp.exp(sc)
            p = p * pl.reciprocal(jnp.sum(p, axis=-1, keepdims=True), approx=True)
            hv = jnp.dot(p, vh, preferred_element_type=f32)             # (2L, hd)
            # fold the output projection into the head loop (no lane concat)
            attn = attn + jnp.dot(hv, wo[hh], preferred_element_type=f32)

        # post-norm TransformerEncoderLayer (norm_first=False); dropout = identity
        y1 = layer_norm(seq + attn, g1[...], be1[...])
        ff = jnp.maximum(jnp.dot(y1, l1w[...], preferred_element_type=f32) + l1b[...], 0.0)
        ff = jnp.dot(ff, l2w[...], preferred_element_type=f32) + l2b[...]
        z2 = layer_norm(y1 + ff, g2[...], be2[...])

        # Decoder's final F.relu; one contiguous (2L, C_OUT) store per item.
        o_ref[b] = jnp.maximum(z2, 0.0)


# ------------------------------- wrapper ------------------------------------
def _zero_map(ndim):
    zeros = (0,) * ndim
    return lambda i: zeros


def _make_deinterleave(batch, length):
    """(L*B, L*B) permutation: row b*L+t selects time-major row t*B+b."""
    rows = batch * length
    idx = jnp.arange(rows)
    b = idx // length
    t = idx % length
    src = t * batch + b
    return jax.nn.one_hot(src, rows, dtype=jnp.float32)


def decoder_forward(x_ncl, params):
    """x_ncl: (B, C_IN, L) float32 (PyTorch NCL) -> (B, C_OUT, 2L)."""
    Bq, Cin, Lq = x_ncl.shape
    Cout = params["ob"].shape[-1]

    # time-major interleaved stacking: row = t*B + b
    x_tm = jnp.transpose(x_ncl, (2, 0, 1)).reshape(Lq * Bq, Cin).astype(jnp.float32)
    deint = _make_deinterleave(Bq, Lq)
    weights = [params[name] for name in WEIGHT_NAMES]
    operands = [x_tm, deint] + weights

    kern = functools.partial(decoder_kernel, nhead=NHEAD, nlayers=NLAYERS,
                             batch=Bq, ln_eps=LN_EPS)

    in_specs = [pl.BlockSpec(op.shape, _zero_map(op.ndim)) for op in operands]

    out = pl.pallas_call(
        kern,
        out_shape=jax.ShapeDtypeStruct((Bq, 2 * Lq, Cout), jnp.float32),
        grid_spec=pltpu.PrefetchScalarGridSpec(
            num_scalar_prefetch=0,
            grid=(1,),                                   # single step: whole batch fused
            in_specs=in_specs,
            out_specs=pl.BlockSpec((Bq, 2 * Lq, Cout), lambda i: (0, 0, 0)),
            scratch_shapes=[pltpu.VMEM((Bq * Lq, Cin), jnp.float32)],
        ),
        compiler_params=pltpu.CompilerParams(dimension_semantics=("arbitrary",)),
    )(*operands)

    # (B, 2L, C_OUT), rows [0:L]=even positions, [L:2L]=odd
    #   -> (B, 2, L, C_OUT) -> (B, C_OUT, L, 2) -> (B, C_OUT, 2L): position p = 2t + k
    out4 = out.reshape(Bq, 2, Lq, Cout)
    return jnp.transpose(out4, (0, 3, 2, 1)).reshape(Bq, Cout, 2 * Lq)


# ------------------------- deterministic parameters -------------------------
def make_params(key):
    ks = iter(jax.random.split(key, 32))

    def rnd(shape, scale=0.1):
        return (scale * jax.random.normal(next(ks), shape)).astype(jnp.float32)

    p = {}
    # Fused GRU gate weights, gate order [r | z | n] along the last (lane) axis;
    # gate math matches nn.GRU: n = tanh(W_in x + b_in + r * (W_hn h + b_hn)).
    p["wih"] = rnd((NLAYERS, C_IN, 3 * C_IN))
    p["whh"] = rnd((NLAYERS, C_IN, 3 * C_IN))
    p["bih"] = rnd((NLAYERS, 1, 3 * C_IN))
    p["bhh"] = rnd((NLAYERS, 1, 3 * C_IN))
    # PFFN (Linear -> ReLU -> Linear)
    p["pf_w1"] = rnd((NLAYERS, C_IN, DFF_GRU))
    p["pf_b1"] = rnd((NLAYERS, 1, DFF_GRU))
    p["pf_w2"] = rnd((NLAYERS, DFF_GRU, C_IN))
    p["pf_b2"] = rnd((NLAYERS, 1, C_IN))
    # ConvTranspose1d weight, both taps concatenated on lanes: [W[:,:,0] | W[:,:,1]]
    p["ct_w"] = rnd((C_IN, 2 * C_OUT))
    # Transformer encoder layer: combined in_proj ([q|k|v] on lanes), per-head out_proj
    p["w_qkv"] = rnd((C_OUT, 3 * C_OUT))
    p["b_qkv"] = rnd((1, 3 * C_OUT))
    p["wo"] = rnd((NHEAD, HEAD_DIM, C_OUT))
    p["ob"] = rnd((1, C_OUT))
    p["l1w"] = rnd((C_OUT, DFF_TR))
    p["l1b"] = rnd((1, DFF_TR))
    p["l2w"] = rnd((DFF_TR, C_OUT))
    p["l2b"] = rnd((1, C_OUT))
    p["g1"] = jnp.ones((1, C_OUT), jnp.float32)
    p["be1"] = jnp.zeros((1, C_OUT), jnp.float32)
    p["g2"] = jnp.ones((1, C_OUT), jnp.float32)
    p["be2"] = jnp.zeros((1, C_OUT), jnp.float32)
    return p


if __name__ == "__main__":
    key = jax.random.PRNGKey(0)
    k_x, k_p = jax.random.split(key)
    x = jax.random.normal(k_x, (B, C_IN, L), dtype=jnp.float32)   # PyTorch NCL input
    params = make_params(k_p)

    out = jax.jit(decoder_forward)(x, params)
    out = jax.block_until_ready(out)
    assert out.shape == (B, C_OUT, S_OUT), out.shape
    assert bool(jnp.all(jnp.isfinite(out)))
    assert bool(jnp.all(out >= 0.0))   # final ReLU
    print("KERNEL_OK")
</pallas_src>

<mosaic_0001>
module attributes {stable_mosaic.version = 11 : i64} {
  func.func @decoder_kernel(%arg0: i32, %arg1: memref<16x16xf32, #tpu.memory_space<vmem>>, %arg2: memref<16x16xf32, #tpu.memory_space<vmem>>, %arg3: memref<3x16x48xf32, #tpu.memory_space<vmem>>, %arg4: memref<3x16x48xf32, #tpu.memory_space<vmem>>, %arg5: memref<3x1x48xf32, #tpu.memory_space<vmem>>, %arg6: memref<3x1x48xf32, #tpu.memory_space<vmem>>, %arg7: memref<3x16x64xf32, #tpu.memory_space<vmem>>, %arg8: memref<3x1x64xf32, #tpu.memory_space<vmem>>, %arg9: memref<3x64x16xf32, #tpu.memory_space<vmem>>, %arg10: memref<3x1x16xf32, #tpu.memory_space<vmem>>, %arg11: memref<16x32xf32, #tpu.memory_space<vmem>>, %arg12: memref<16x48xf32, #tpu.memory_space<vmem>>, %arg13: memref<1x48xf32, #tpu.memory_space<vmem>>, %arg14: memref<4x4x16xf32, #tpu.memory_space<vmem>>, %arg15: memref<1x16xf32, #tpu.memory_space<vmem>>, %arg16: memref<16x64xf32, #tpu.memory_space<vmem>>, %arg17: memref<1x64xf32, #tpu.memory_space<vmem>>, %arg18: memref<64x16xf32, #tpu.memory_space<vmem>>, %arg19: memref<1x16xf32, #tpu.memory_space<vmem>>, %arg20: memref<1x16xf32, #tpu.memory_space<vmem>>, %arg21: memref<1x16xf32, #tpu.memory_space<vmem>>, %arg22: memref<1x16xf32, #tpu.memory_space<vmem>>, %arg23: memref<1x16xf32, #tpu.memory_space<vmem>>, %arg24: memref<2x16x16xf32, #tpu.memory_space<vmem>>, %arg25: memref<16x16xf32, #tpu.memory_space<vmem>>) attributes {dimension_semantics = [#tpu.dimension_semantics<arbitrary>], iteration_bounds = array<i64: 1>, scalar_prefetch = 0 : i64, scratch_operands = 1 : i64, tpu.core_type = #tpu.core_type<tc>, window_params = [{pipeline_mode = #tpu.pipeline_mode<synchronous>, transform_indices = @transform_0, window_bounds = array<i64: 16, 16>}, {pipeline_mode = #tpu.pipeline_mode<synchronous>, transform_indices = @transform_1, window_bounds = array<i64: 16, 16>}, {pipeline_mode = #tpu.pipeline_mode<synchronous>, transform_indices = @transform_2, window_bounds = array<i64: 3, 16, 48>}, {pipeline_mode = #tpu.pipeline_mode<synchronous>, transform_indices = @transform_3, window_bounds = array<i64: 3, 16, 48>}, {pipeline_mode = #tpu.pipeline_mode<synchronous>, transform_indices = @transform_4, window_bounds = array<i64: 3, 1, 48>}, {pipeline_mode = #tpu.pipeline_mode<synchronous>, transform_indices = @transform_5, window_bounds = array<i64: 3, 1, 48>}, {pipeline_mode = #tpu.pipeline_mode<synchronous>, transform_indices = @transform_6, window_bounds = array<i64: 3, 16, 64>}, {pipeline_mode = #tpu.pipeline_mode<synchronous>, transform_indices = @transform_7, window_bounds = array<i64: 3, 1, 64>}, {pipeline_mode = #tpu.pipeline_mode<synchronous>, transform_indices = @transform_8, window_bounds = array<i64: 3, 64, 16>}, {pipeline_mode = #tpu.pipeline_mode<synchronous>, transform_indices = @transform_9, window_bounds = array<i64: 3, 1, 16>}, {pipeline_mode = #tpu.pipeline_mode<synchronous>, transform_indices = @transform_10, window_bounds = array<i64: 16, 32>}, {pipeline_mode = #tpu.pipeline_mode<synchronous>, transform_indices = @transform_11, window_bounds = array<i64: 16, 48>}, {pipeline_mode = #tpu.pipeline_mode<synchronous>, transform_indices = @transform_12, window_bounds = array<i64: 1, 48>}, {pipeline_mode = #tpu.pipeline_mode<synchronous>, transform_indices = @transform_13, window_bounds = array<i64: 4, 4, 16>}, {pipeline_mode = #tpu.pipeline_mode<synchronous>, transform_indices = @transform_14, window_bounds = array<i64: 1, 16>}, {pipeline_mode = #tpu.pipeline_mode<synchronous>, transform_indices = @transform_15, window_bounds = array<i64: 16, 64>}, {pipeline_mode = #tpu.pipeline_mode<synchronous>, transform_indices = @transform_16, window_bounds = array<i64: 1, 64>}, {pipeline_mode = #tpu.pipeline_mode<synchronous>, transform_indices = @transform_17, window_bounds = array<i64: 64, 16>}, {pipeline_mode = #tpu.pipeline_mode<synchronous>, transform_indices = @transform_18, window_bounds = array<i64: 1, 16>}, {pipeline_mode = #tpu.pipeline_mode<synchronous>, transform_indices = @transform_19, window_bounds = array<i64: 1, 16>}, {pipeline_mode = #tpu.pipeline_mode<synchronous>, transform_indices = @transform_20, window_bounds = array<i64: 1, 16>}, {pipeline_mode = #tpu.pipeline_mode<synchronous>, transform_indices = @transform_21, window_bounds = array<i64: 1, 16>}, {pipeline_mode = #tpu.pipeline_mode<synchronous>, transform_indices = @transform_22, window_bounds = array<i64: 1, 16>}, {pipeline_mode = #tpu.pipeline_mode<synchronous>, transform_indices = @transform_23, window_bounds = array<i64: 2, 16, 16>}]} {
    %c0 = arith.constant 0 : index
    %c0_0 = arith.constant 0 : index
    %0 = vector.load %arg1[%c0, %c0_0] : memref<16x16xf32, #tpu.memory_space<vmem>>, vector<16x16xf32>
    %c0_1 = arith.constant 0 : index
    %c0_2 = arith.constant 0 : index
    %c0_3 = arith.constant 0 : index
    %1 = vector.load %arg3[%c0_1, %c0_2, %c0_3] : memref<3x16x48xf32, #tpu.memory_space<vmem>>, vector<1x16x48xf32>
    %2 = vector.shape_cast %1 : vector<1x16x48xf32> to vector<16x48xf32>
    %cst = arith.constant dense<0.000000e+00> : vector<16x48xf32>
    %3 = tpu.matmul %0, %2, %cst {dimension_numbers = #tpu.dot_dimension_numbers<[1], [0], [0], [1], [0, 0, 1, 1], [], []>} : vector<16x16xf32>, vector<16x48xf32>, vector<16x48xf32> -> vector<16x48xf32>
    %c0_4 = arith.constant 0 : index
    %c0_5 = arith.constant 0 : index
    %c0_6 = arith.constant 0 : index
    %4 = vector.load %arg5[%c0_4, %c0_5, %c0_6] : memref<3x1x48xf32, #tpu.memory_space<vmem>>, vector<1x1x48xf32>
    %5 = vector.shape_cast %4 : vector<1x1x48xf32> to vector<1x48xf32>
    %6 = vector.broadcast %5 : vector<1x48xf32> to vector<16x48xf32>
    %7 = arith.addf %3, %6 : vector<16x48xf32>
    %c0_7 = arith.constant 0 : index
    %c0_8 = arith.constant 0 : index
    %c0_9 = arith.constant 0 : index
    %8 = vector.load %arg4[%c0_7, %c0_8, %c0_9] : memref<3x16x48xf32, #tpu.memory_space<vmem>>, vector<1x16x48xf32>
    %9 = vector.shape_cast %8 : vector<1x16x48xf32> to vector<16x48xf32>
    %c0_10 = arith.constant 0 : index
    %c0_11 = arith.constant 0 : index
    %c0_12 = arith.constant 0 : index
    %10 = vector.load %arg6[%c0_10, %c0_11, %c0_12] : memref<3x1x48xf32, #tpu.memory_space<vmem>>, vector<1x1x48xf32>
    %11 = vector.shape_cast %10 : vector<1x1x48xf32> to vector<1x48xf32>
    %cst_13 = arith.constant 0.000000e+00 : f32
    %12 = vector.broadcast %cst_13 : f32 to vector<2x16xf32>
    %cst_14 = arith.constant dense<0.000000e+00> : vector<2x48xf32>
    %13 = tpu.matmul %12, %9, %cst_14 {dimension_numbers = #tpu.dot_dimension_numbers<[1], [0], [0], [1], [0, 0, 1, 1], [], []>} : vector<2x16xf32>, vector<16x48xf32>, vector<2x48xf32> -> vector<2x48xf32>
    %14 = vector.broadcast %11 : vector<1x48xf32> to vector<2x48xf32>
    %15 = arith.addf %13, %14 : vector<2x48xf32>
    %16 = vector.extract_strided_slice %7 {offsets = [0, 0], sizes = [2, 48], strides = [1, 1]} : vector<16x48xf32> to vector<2x48xf32>
    %17 = vector.extract_strided_slice %16 {offsets = [0, 0], sizes = [2, 16], strides = [1, 1]} : vector<2x48xf32> to vector<2x16xf32>
    %18 = vector.extract_strided_slice %15 {offsets = [0, 0], sizes = [2, 16], strides = [1, 1]} : vector<2x48xf32> to vector<2x16xf32>
    %19 = arith.addf %17, %18 : vector<2x16xf32>
    %20 = arith.negf %19 : vector<2x16xf32>
    %21 = math.exp %20 : vector<2x16xf32>
    %cst_15 = arith.constant 1.000000e+00 : f32
    %22 = vector.broadcast %cst_15 : f32 to vector<2x16xf32>
    %23 = arith.addf %22, %21 : vector<2x16xf32>
    %24 = arith.divf %22, %23 : vector<2x16xf32>
    %25 = vector.extract_strided_slice %16 {offsets = [0, 16], sizes = [2, 16], strides = [1, 1]} : vector<2x48xf32> to vector<2x16xf32>
    %26 = vector.extract_strided_slice %15 {offsets = [0, 16], sizes = [2, 16], strides = [1, 1]} : vector<2x48xf32> to vector<2x16xf32>
    %27 = arith.addf %25, %26 : vector<2x16xf32>
    %28 = arith.negf %27 : vector<2x16xf32>
    %29 = math.exp %28 : vector<2x16xf32>
    %cst_16 = arith.constant 1.000000e+00 : f32
    %30 = vector.broadcast %cst_16 : f32 to vector<2x16xf32>
    %31 = arith.addf %30, %29 : vector<2x16xf32>
    %32 = arith.divf %30, %31 : vector<2x16xf32>
    %33 = vector.extract_strided_slice %16 {offsets = [0, 32], sizes = [2, 16], strides = [1, 1]} : vector<2x48xf32> to vector<2x16xf32>
    %34 = vector.extract_strided_slice %15 {offsets = [0, 32], sizes = [2, 16], strides = [1, 1]} : vector<2x48xf32> to vector<2x16xf32>
    %35 = arith.mulf %24, %34 : vector<2x16xf32>
    %36 = arith.addf %33, %35 : vector<2x16xf32>
    %37 = math.tanh %36 : vector<2x16xf32>
    %cst_17 = arith.constant 1.000000e+00 : f32
    %38 = vector.broadcast %cst_17 : f32 to vector<2x16xf32>
    %39 = arith.subf %38, %32 : vector<2x16xf32>
    %40 = arith.mulf %39, %37 : vector<2x16xf32>
    %41 = arith.mulf %32, %12 : vector<2x16xf32>
    %42 = arith.addf %40, %41 : vector<2x16xf32>
    %c0_18 = arith.constant 0 : index
    %c0_19 = arith.constant 0 : index
    %43 = vector.load %arg25[%c0_18, %c0_19] : memref<16x16xf32, #tpu.memory_space<vmem>>, vector<2x16xf32>
    tpu.vector_store %arg25[%c0_18, %c0_19], %42 {strides = array<i32>} : memref<16x16xf32, #tpu.memory_space<vmem>>, vector<2x16xf32>,
    %cst_20 = arith.constant dense<0.000000e+00> : vector<2x48xf32>
    %44 = tpu.matmul %42, %9, %cst_20 {dimension_numbers = #tpu.dot_dimension_numbers<[1], [0], [0], [1], [0, 0, 1, 1], [], []>} : vector<2x16xf32>, vector<16x48xf32>, vector<2x48xf32> -> vector<2x48xf32>
    %45 = vector.broadcast %11 : vector<1x48xf32> to vector<2x48xf32>
    %46 = arith.addf %44, %45 : vector<2x48xf32>
    %47 = vector.extract_strided_slice %7 {offsets = [2, 0], sizes = [2, 48], strides = [1, 1]} : vector<16x48xf32> to vector<2x48xf32>
    %48 = vector.extract_strided_slice %47 {offsets = [0, 0], sizes = [2, 16], strides = [1, 1]} : vector<2x48xf32> to vector<2x16xf32>
    %49 = vector.extract_strided_slice %46 {offsets = [0, 0], sizes = [2, 16], strides = [1, 1]} : vector<2x48xf32> to vector<2x16xf32>
    %50 = arith.addf %48, %49 : vector<2x16xf32>
    %51 = arith.negf %50 : vector<2x16xf32>
    %52 = math.exp %51 : vector<2x16xf32>
    %cst_21 = arith.constant 1.000000e+00 : f32
    %53 = vector.broadcast %cst_21 : f32 to vector<2x16xf32>
    %54 = arith.addf %53, %52 : vector<2x16xf32>
    %55 = arith.divf %53, %54 : vector<2x16xf32>
    %56 = vector.extract_strided_slice %47 {offsets = [0, 16], sizes = [2, 16], strides = [1, 1]} : vector<2x48xf32> to vector<2x16xf32>
    %57 = vector.extract_strided_slice %46 {offsets = [0, 16], sizes = [2, 16], strides = [1, 1]} : vector<2x48xf32> to vector<2x16xf32>
    %58 = arith.addf %56, %57 : vector<2x16xf32>
    %59 = arith.negf %58 : vector<2x16xf32>
    %60 = math.exp %59 : vector<2x16xf32>
    %cst_22 = arith.constant 1.000000e+00 : f32
    %61 = vector.broadcast %cst_22 : f32 to vector<2x16xf32>
    %62 = arith.addf %61, %60 : vector<2x16xf32>
    %63 = arith.divf %61, %62 : vector<2x16xf32>
    %64 = vector.extract_strided_slice %47 {offsets = [0, 32], sizes = [2, 16], strides = [1, 1]} : vector<2x48xf32> to vector<2x16xf32>
    %65 = vector.extract_strided_slice %46 {offsets = [0, 32], sizes = [2, 16], strides = [1, 1]} : vector<2x48xf32> to vector<2x16xf32>
    %66 = arith.mulf %55, %65 : vector<2x16xf32>
    %67 = arith.addf %64, %66 : vector<2x16xf32>
    %68 = math.tanh %67 : vector<2x16xf32>
    %cst_23 = arith.constant 1.000000e+00 : f32
    %69 = vector.broadcast %cst_23 : f32 to vector<2x16xf32>
    %70 = arith.subf %69, %63 : vector<2x16xf32>
    %71 = arith.mulf %70, %68 : vector<2x16xf32>
    %72 = arith.mulf %63, %42 : vector<2x16xf32>
    %73 = arith.addf %71, %72 : vector<2x16xf32>
    %c2 = arith.constant 2 : index
    %c0_24 = arith.constant 0 : index
    %74 = vector.load %arg25[%c2, %c0_24] : memref<16x16xf32, #tpu.memory_space<vmem>>, vector<2x16xf32>
    tpu.vector_store %arg25[%c2, %c0_24], %73 {strides = array<i32>} : memref<16x16xf32, #tpu.memory_space<vmem>>, vector<2x16xf32>,
    %cst_25 = arith.constant dense<0.000000e+00> : vector<2x48xf32>
    %75 = tpu.matmul %73, %9, %cst_25 {dimension_numbers = #tpu.dot_dimension_numbers<[1], [0], [0], [1], [0, 0, 1, 1], [], []>} : vector<2x16xf32>, vector<16x48xf32>, vector<2x48xf32> -> vector<2x48xf32>
    %76 = vector.broadcast %11 : vector<1x48xf32> to vector<2x48xf32>
    %77 = arith.addf %75, %76 : vector<2x48xf32>
    %78 = vector.extract_strided_slice %7 {offsets = [4, 0], sizes = [2, 48], strides = [1, 1]} : vector<16x48xf32> to vector<2x48xf32>
    %79 = vector.extract_strided_slice %78 {offsets = [0, 0], sizes = [2, 16], strides = [1, 1]} : vector<2x48xf32> to vector<2x16xf32>
    %80 = vector.extract_strided_slice %77 {offsets = [0, 0], sizes = [2, 16], strides = [1, 1]} : vector<2x48xf32> to vector<2x16xf32>
    %81 = arith.addf %79, %80 : vector<2x16xf32>
    %82 = arith.negf %81 : vector<2x16xf32>
    %83 = math.exp %82 : vector<2x16xf32>
    %cst_26 = arith.constant 1.000000e+00 : f32
    %84 = vector.broadcast %cst_26 : f32 to vector<2x16xf32>
    %85 = arith.addf %84, %83 : vector<2x16xf32>
    %86 = arith.divf %84, %85 : vector<2x16xf32>
    %87 = vector.extract_strided_slice %78 {offsets = [0, 16], sizes = [2, 16], strides = [1, 1]} : vector<2x48xf32> to vector<2x16xf32>
    %88 = vector.extract_strided_slice %77 {offsets = [0, 16], sizes = [2, 16], strides = [1, 1]} : vector<2x48xf32> to vector<2x16xf32>
    %89 = arith.addf %87, %88 : vector<2x16xf32>
    %90 = arith.negf %89 : vector<2x16xf32>
    %91 = math.exp %90 : vector<2x16xf32>
    %cst_27 = arith.constant 1.000000e+00 : f32
    %92 = vector.broadcast %cst_27 : f32 to vector<2x16xf32>
    %93 = arith.addf %92, %91 : vector<2x16xf32>
    %94 = arith.divf %92, %93 : vector<2x16xf32>
    %95 = vector.extract_strided_slice %78 {offsets = [0, 32], sizes = [2, 16], strides = [1, 1]} : vector<2x48xf32> to vector<2x16xf32>
    %96 = vector.extract_strided_slice %77 {offsets = [0, 32], sizes = [2, 16], strides = [1, 1]} : vector<2x48xf32> to vector<2x16xf32>
    %97 = arith.mulf %86, %96 : vector<2x16xf32>
    %98 = arith.addf %95, %97 : vector<2x16xf32>
    %99 = math.tanh %98 : vector<2x16xf32>
    %cst_28 = arith.constant 1.000000e+00 : f32
    %100 = vector.broadcast %cst_28 : f32 to vector<2x16xf32>
    %101 = arith.subf %100, %94 : vector<2x16xf32>
    %102 = arith.mulf %101, %99 : vector<2x16xf32>
    %103 = arith.mulf %94, %73 : vector<2x16xf32>
    %104 = arith.addf %102, %103 : vector<2x16xf32>
    %c4 = arith.constant 4 : index
    %c0_29 = arith.constant 0 : index
    %105 = vector.load %arg25[%c4, %c0_29] : memref<16x16xf32, #tpu.memory_space<vmem>>, vector<2x16xf32>
    tpu.vector_store %arg25[%c4, %c0_29], %104 {strides = array<i32>} : memref<16x16xf32, #tpu.memory_space<vmem>>, vector<2x16xf32>,
    %cst_30 = arith.constant dense<0.000000e+00> : vector<2x48xf32>
    %106 = tpu.matmul %104, %9, %cst_30 {dimension_numbers = #tpu.dot_dimension_numbers<[1], [0], [0], [1], [0, 0, 1, 1], [], []>} : vector<2x16xf32>, vector<16x48xf32>, vector<2x48xf32> -> vector<2x48xf32>
    %107 = vector.broadcast %11 : vector<1x48xf32> to vector<2x48xf32>
    %108 = arith.addf %106, %107 : vector<2x48xf32>
    %109 = vector.extract_strided_slice %7 {offsets = [6, 0], sizes = [2, 48], strides = [1, 1]} : vector<16x48xf32> to vector<2x48xf32>
    %110 = vector.extract_strided_slice %109 {offsets = [0, 0], sizes = [2, 16], strides = [1, 1]} : vector<2x48xf32> to vector<2x16xf32>
    %111 = vector.extract_strided_slice %108 {offsets = [0, 0], sizes = [2, 16], strides = [1, 1]} : vector<2x48xf32> to vector<2x16xf32>
    %112 = arith.addf %110, %111 : vector<2x16xf32>
    %113 = arith.negf %112 : vector<2x16xf32>
    %114 = math.exp %113 : vector<2x16xf32>
    %cst_31 = arith.constant 1.000000e+00 : f32
    %115 = vector.broadcast %cst_31 : f32 to vector<2x16xf32>
    %116 = arith.addf %115, %114 : vector<2x16xf32>
    %117 = arith.divf %115, %116 : vector<2x16xf32>
    %118 = vector.extract_strided_slice %109 {offsets = [0, 16], sizes = [2, 16], strides = [1, 1]} : vector<2x48xf32> to vector<2x16xf32>
    %119 = vector.extract_strided_slice %108 {offsets = [0, 16], sizes = [2, 16], strides = [1, 1]} : vector<2x48xf32> to vector<2x16xf32>
    %120 = arith.addf %118, %119 : vector<2x16xf32>
    %121 = arith.negf %120 : vector<2x16xf32>
    %122 = math.exp %121 : vector<2x16xf32>
    %cst_32 = arith.constant 1.000000e+00 : f32
    %123 = vector.broadcast %cst_32 : f32 to vector<2x16xf32>
    %124 = arith.addf %123, %122 : vector<2x16xf32>
    %125 = arith.divf %123, %124 : vector<2x16xf32>
    %126 = vector.extract_strided_slice %109 {offsets = [0, 32], sizes = [2, 16], strides = [1, 1]} : vector<2x48xf32> to vector<2x16xf32>
    %127 = vector.extract_strided_slice %108 {offsets = [0, 32], sizes = [2, 16], strides = [1, 1]} : vector<2x48xf32> to vector<2x16xf32>
    %128 = arith.mulf %117, %127 : vector<2x16xf32>
    %129 = arith.addf %126, %128 : vector<2x16xf32>
    %130 = math.tanh %129 : vector<2x16xf32>
    %cst_33 = arith.constant 1.000000e+00 : f32
    %131 = vector.broadcast %cst_33 : f32 to vector<2x16xf32>
    %132 = arith.subf %131, %125 : vector<2x16xf32>
    %133 = arith.mulf %132, %130 : vector<2x16xf32>
    %134 = arith.mulf %125, %104 : vector<2x16xf32>
    %135 = arith.addf %133, %134 : vector<2x16xf32>
    %c6 = arith.constant 6 : index
    %c0_34 = arith.constant 0 : index
    %136 = vector.load %arg25[%c6, %c0_34] : memref<16x16xf32, #tpu.memory_space<vmem>>, vector<2x16xf32>
    tpu.vector_store %arg25[%c6, %c0_34], %135 {strides = array<i32>} : memref<16x16xf32, #tpu.memory_space<vmem>>, vector<2x16xf32>,
    %cst_35 = arith.constant dense<0.000000e+00> : vector<2x48xf32>
    %137 = tpu.matmul %135, %9, %cst_35 {dimension_numbers = #tpu.dot_dimension_numbers<[1], [0], [0], [1], [0, 0, 1, 1], [], []>} : vector<2x16xf32>, vector<16x48xf32>, vector<2x48xf32> -> vector<2x48xf32>
    %138 = vector.broadcast %11 : vector<1x48xf32> to vector<2x48xf32>
    %139 = arith.addf %137, %138 : vector<2x48xf32>
    %140 = vector.extract_strided_slice %7 {offsets = [8, 0], sizes = [2, 48], strides = [1, 1]} : vector<16x48xf32> to vector<2x48xf32>
    %141 = vector.extract_strided_slice %140 {offsets = [0, 0], sizes = [2, 16], strides = [1, 1]} : vector<2x48xf32> to vector<2x16xf32>
    %142 = vector.extract_strided_slice %139 {offsets = [0, 0], sizes = [2, 16], strides = [1, 1]} : vector<2x48xf32> to vector<2x16xf32>
    %143 = arith.addf %141, %142 : vector<2x16xf32>
    %144 = arith.negf %143 : vector<2x16xf32>
    %145 = math.exp %144 : vector<2x16xf32>
    %cst_36 = arith.constant 1.000000e+00 : f32
    %146 = vector.broadcast %cst_36 : f32 to vector<2x16xf32>
    %147 = arith.addf %146, %145 : vector<2x16xf32>
    %148 = arith.divf %146, %147 : vector<2x16xf32>
    %149 = vector.extract_strided_slice %140 {offsets = [0, 16], sizes = [2, 16], strides = [1, 1]} : vector<2x48xf32> to vector<2x16xf32>
    %150 = vector.extract_strided_slice %139 {offsets = [0, 16], sizes = [2, 16], strides = [1, 1]} : vector<2x48xf32> to vector<2x16xf32>
    %151 = arith.addf %149, %150 : vector<2x16xf32>
    %152 = arith.negf %151 : vector<2x16xf32>
    %153 = math.exp %152 : vector<2x16xf32>
    %cst_37 = arith.constant 1.000000e+00 : f32
    %154 = vector.broadcast %cst_37 : f32 to vector<2x16xf32>
    %155 = arith.addf %154, %153 : vector<2x16xf32>
    %156 = arith.divf %154, %155 : vector<2x16xf32>
    %157 = vector.extract_strided_slice %140 {offsets = [0, 32], sizes = [2, 16], strides = [1, 1]} : vector<2x48xf32> to vector<2x16xf32>
    %158 = vector.extract_strided_slice %139 {offsets = [0, 32], sizes = [2, 16], strides = [1, 1]} : vector<2x48xf32> to vector<2x16xf32>
    %159 = arith.mulf %148, %158 : vector<2x16xf32>
    %160 = arith.addf %157, %159 : vector<2x16xf32>
    %161 = math.tanh %160 : vector<2x16xf32>
    %cst_38 = arith.constant 1.000000e+00 : f32
    %162 = vector.broadcast %cst_38 : f32 to vector<2x16xf32>
    %163 = arith.subf %162, %156 : vector<2x16xf32>
    %164 = arith.mulf %163, %161 : vector<2x16xf32>
    %165 = arith.mulf %156, %135 : vector<2x16xf32>
    %166 = arith.addf %164, %165 : vector<2x16xf32>
    %c8 = arith.constant 8 : index
    %c0_39 = arith.constant 0 : index
    %167 = vector.load %arg25[%c8, %c0_39] : memref<16x16xf32, #tpu.memory_space<vmem>>, vector<2x16xf32>
    tpu.vector_store %arg25[%c8, %c0_39], %166 {strides = array<i32>} : memref<16x16xf32, #tpu.memory_space<vmem>>, vector<2x16xf32>,
    %cst_40 = arith.constant dense<0.000000e+00> : vector<2x48xf32>
    %168 = tpu.matmul %166, %9, %cst_40 {dimension_numbers = #tpu.dot_dimension_numbers<[1], [0], [0], [1], [0, 0, 1, 1], [], []>} : vector<2x16xf32>, vector<16x48xf32>, vector<2x48xf32> -> vector<2x48xf32>
    %169 = vector.broadcast %11 : vector<1x48xf32> to vector<2x48xf32>
    %170 = arith.addf %168, %169 : vector<2x48xf32>
    %171 = vector.extract_strided_slice %7 {offsets = [10, 0], sizes = [2, 48], strides = [1, 1]} : vector<16x48xf32> to vector<2x48xf32>
    %172 = vector.extract_strided_slice %171 {offsets = [0, 0], sizes = [2, 16], strides = [1, 1]} : vector<2x48xf32> to vector<2x16xf32>
    %173 = vector.extract_strided_slice %170 {offsets = [0, 0], sizes = [2, 16], strides = [1, 1]} : vector<2x48xf32> to vector<2x16xf32>
    %174 = arith.addf %172, %173 : vector<2x16xf32>
    %175 = arith.negf %174 : vector<2x16xf32>
    %176 = math.exp %175 : vector<2x16xf32>
    %cst_41 = arith.constant 1.000000e+00 : f32
    %177 = vector.broadcast %cst_41 : f32 to vector<2x16xf32>
    %178 = arith.addf %177, %176 : vector<2x16xf32>
    %179 = arith.divf %177, %178 : vector<2x16xf32>
    %180 = vector.extract_strided_slice %171 {offsets = [0, 16], sizes = [2, 16], strides = [1, 1]} : vector<2x48xf32> to vector<2x16xf32>
    %181 = vector.extract_strided_slice %170 {offsets = [0, 16], sizes = [2, 16], strides = [1, 1]} : vector<2x48xf32> to vector<2x16xf32>
    %182 = arith.addf %180, %181 : vector<2x16xf32>
    %183 = arith.negf %182 : vector<2x16xf32>
    %184 = math.exp %183 : vector<2x16xf32>
    %cst_42 = arith.constant 1.000000e+00 : f32
    %185 = vector.broadcast %cst_42 : f32 to vector<2x16xf32>
    %186 = arith.addf %185, %184 : vector<2x16xf32>
    %187 = arith.divf %185, %186 : vector<2x16xf32>
    %188 = vector.extract_strided_slice %171 {offsets = [0, 32], sizes = [2, 16], strides = [1, 1]} : vector<2x48xf32> to vector<2x16xf32>
    %189 = vector.extract_strided_slice %170 {offsets = [0, 32], sizes = [2, 16], strides = [1, 1]} : vector<2x48xf32> to vector<2x16xf32>
    %190 = arith.mulf %179, %189 : vector<2x16xf32>
    %191 = arith.addf %188, %190 : vector<2x16xf32>
    %192 = math.tanh %191 : vector<2x16xf32>
    %cst_43 = arith.constant 1.000000e+00 : f32
    %193 = vector.broadcast %cst_43 : f32 to vector<2x16xf32>
    %194 = arith.subf %193, %187 : vector<2x16xf32>
    %195 = arith.mulf %194, %192 : vector<2x16xf32>
    %196 = arith.mulf %187, %166 : vector<2x16xf32>
    %197 = arith.addf %195, %196 : vector<2x16xf32>
    %c10 = arith.constant 10 : index
    %c0_44 = arith.constant 0 : index
    %198 = vector.load %arg25[%c10, %c0_44] : memref<16x16xf32, #tpu.memory_space<vmem>>, vector<2x16xf32>
    tpu.vector_store %arg25[%c10, %c0_44], %197 {strides = array<i32>} : memref<16x16xf32, #tpu.memory_space<vmem>>, vector<2x16xf32>,
    %cst_45 = arith.constant dense<0.000000e+00> : vector<2x48xf32>
    %199 = tpu.matmul %197, %9, %cst_45 {dimension_numbers = #tpu.dot_dimension_numbers<[1], [0], [0], [1], [0, 0, 1, 1], [], []>} : vector<2x16xf32>, vector<16x48xf32>, vector<2x48xf32> -> vector<2x48xf32>
    %200 = vector.broadcast %11 : vector<1x48xf32> to vector<2x48xf32>
    %201 = arith.addf %199, %200 : vector<2x48xf32>
    %202 = vector.extract_strided_slice %7 {offsets = [12, 0], sizes = [2, 48], strides = [1, 1]} : vector<16x48xf32> to vector<2x48xf32>
    %203 = vector.extract_strided_slice %202 {offsets = [0, 0], sizes = [2, 16], strides = [1, 1]} : vector<2x48xf32> to vector<2x16xf32>
    %204 = vector.extract_strided_slice %201 {offsets = [0, 0], sizes = [2, 16], strides = [1, 1]} : vector<2x48xf32> to vector<2x16xf32>
    %205 = arith.addf %203, %204 : vector<2x16xf32>
    %206 = arith.negf %205 : vector<2x16xf32>
    %207 = math.exp %206 : vector<2x16xf32>
    %cst_46 = arith.constant 1.000000e+00 : f32
    %208 = vector.broadcast %cst_46 : f32 to vector<2x16xf32>
    %209 = arith.addf %208, %207 : vector<2x16xf32>
    %210 = arith.divf %208, %209 : vector<2x16xf32>
    %211 = vector.extract_strided_slice %202 {offsets = [0, 16], sizes = [2, 16], strides = [1, 1]} : vector<2x48xf32> to vector<2x16xf32>
    %212 = vector.extract_strided_slice %201 {offsets = [0, 16], sizes = [2, 16], strides = [1, 1]} : vector<2x48xf32> to vector<2x16xf32>
    %213 = arith.addf %211, %212 : vector<2x16xf32>
    %214 = arith.negf %213 : vector<2x16xf32>
    %215 = math.exp %214 : vector<2x16xf32>
    %cst_47 = arith.constant 1.000000e+00 : f32
    %216 = vector.broadcast %cst_47 : f32 to vector<2x16xf32>
    %217 = arith.addf %216, %215 : vector<2x16xf32>
    %218 = arith.divf %216, %217 : vector<2x16xf32>
    %219 = vector.extract_strided_slice %202 {offsets = [0, 32], sizes = [2, 16], strides = [1, 1]} : vector<2x48xf32> to vector<2x16xf32>
    %220 = vector.extract_strided_slice %201 {offsets = [0, 32], sizes = [2, 16], strides = [1, 1]} : vector<2x48xf32> to vector<2x16xf32>
    %221 = arith.mulf %210, %220 : vector<2x16xf32>
    %222 = arith.addf %219, %221 : vector<2x16xf32>
    %223 = math.tanh %222 : vector<2x16xf32>
    %cst_48 = arith.constant 1.000000e+00 : f32
    %224 = vector.broadcast %cst_48 : f32 to vector<2x16xf32>
    %225 = arith.subf %224, %218 : vector<2x16xf32>
    %226 = arith.mulf %225, %223 : vector<2x16xf32>
    %227 = arith.mulf %218, %197 : vector<2x16xf32>
    %228 = arith.addf %226, %227 : vector<2x16xf32>
    %c12 = arith.constant 12 : index
    %c0_49 = arith.constant 0 : index
    %229 = vector.load %arg25[%c12, %c0_49] : memref<16x16xf32, #tpu.memory_space<vmem>>, vector<2x16xf32>
    tpu.vector_store %arg25[%c12, %c0_49], %228 {strides = array<i32>} : memref<16x16xf32, #tpu.memory_space<vmem>>, vector<2x16xf32>,
    %cst_50 = arith.constant dense<0.000000e+00> : vector<2x48xf32>
    %230 = tpu.matmul %228, %9, %cst_50 {dimension_numbers = #tpu.dot_dimension_numbers<[1], [0], [0], [1], [0, 0, 1, 1], [], []>} : vector<2x16xf32>, vector<16x48xf32>, vector<2x48xf32> -> vector<2x48xf32>
    %231 = vector.broadcast %11 : vector<1x48xf32> to vector<2x48xf32>
    %232 = arith.addf %230, %231 : vector<2x48xf32>
    %233 = vector.extract_strided_slice %7 {offsets = [14, 0], sizes = [2, 48], strides = [1, 1]} : vector<16x48xf32> to vector<2x48xf32>
    %234 = vector.extract_strided_slice %233 {offsets = [0, 0], sizes = [2, 16], strides = [1, 1]} : vector<2x48xf32> to vector<2x16xf32>
    %235 = vector.extract_strided_slice %232 {offsets = [0, 0], sizes = [2, 16], strides = [1, 1]} : vector<2x48xf32> to vector<2x16xf32>
    %236 = arith.addf %234, %235 : vector<2x16xf32>
    %237 = arith.negf %236 : vector<2x16xf32>
    %238 = math.exp %237 : vector<2x16xf32>
    %cst_51 = arith.constant 1.000000e+00 : f32
    %239 = vector.broadcast %cst_51 : f32 to vector<2x16xf32>
    %240 = arith.addf %239, %238 : vector<2x16xf32>
    %241 = arith.divf %239, %240 : vector<2x16xf32>
    %242 = vector.extract_strided_slice %233 {offsets = [0, 16], sizes = [2, 16], strides = [1, 1]} : vector<2x48xf32> to vector<2x16xf32>
    %243 = vector.extract_strided_slice %232 {offsets = [0, 16], sizes = [2, 16], strides = [1, 1]} : vector<2x48xf32> to vector<2x16xf32>
    %244 = arith.addf %242, %243 : vector<2x16xf32>
    %245 = arith.negf %244 : vector<2x16xf32>
    %246 = math.exp %245 : vector<2x16xf32>
    %cst_52 = arith.constant 1.000000e+00 : f32
    %247 = vector.broadcast %cst_52 : f32 to vector<2x16xf32>
    %248 = arith.addf %247, %246 : vector<2x16xf32>
    %249 = arith.divf %247, %248 : vector<2x16xf32>
    %250 = vector.extract_strided_slice %233 {offsets = [0, 32], sizes = [2, 16], strides = [1, 1]} : vector<2x48xf32> to vector<2x16xf32>
    %251 = vector.extract_strided_slice %232 {offsets = [0, 32], sizes = [2, 16], strides = [1, 1]} : vector<2x48xf32> to vector<2x16xf32>
    %252 = arith.mulf %241, %251 : vector<2x16xf32>
    %253 = arith.addf %250, %252 : vector<2x16xf32>
    %254 = math.tanh %253 : vector<2x16xf32>
    %cst_53 = arith.constant 1.000000e+00 : f32
    %255 = vector.broadcast %cst_53 : f32 to vector<2x16xf32>
    %256 = arith.subf %255, %249 : vector<2x16xf32>
    %257 = arith.mulf %256, %254 : vector<2x16xf32>
    %258 = arith.mulf %249, %228 : vector<2x16xf32>
    %259 = arith.addf %257, %258 : vector<2x16xf32>
    %c14 = arith.constant 14 : index
    %c0_54 = arith.constant 0 : index
    %260 = vector.load %arg25[%c14, %c0_54] : memref<16x16xf32, #tpu.memory_space<vmem>>, vector<2x16xf32>
    tpu.vector_store %arg25[%c14, %c0_54], %259 {strides = array<i32>} : memref<16x16xf32, #tpu.memory_space<vmem>>, vector<2x16xf32>,
    %c0_55 = arith.constant 0 : index
    %c0_56 = arith.constant 0 : index
    %261 = vector.load %arg25[%c0_55, %c0_56] : memref<16x16xf32, #tpu.memory_space<vmem>>, vector<16x16xf32>
    %c0_57 = arith.constant 0 : index
    %c0_58 = arith.constant 0 : index
    %c0_59 = arith.constant 0 : index
    %262 = vector.load %arg7[%c0_57, %c0_58, %c0_59] : memref<3x16x64xf32, #tpu.memory_space<vmem>>, vector<1x16x64xf32>
    %263 = vector.shape_cast %262 : vector<1x16x64xf32> to vector<16x64xf32>
    %cst_60 = arith.constant dense<0.000000e+00> : vector<16x64xf32>
    %264 = tpu.matmul %261, %263, %cst_60 {dimension_numbers = #tpu.dot_dimension_numbers<[1], [0], [0], [1], [0, 0, 1, 1], [], []>} : vector<16x16xf32>, vector<16x64xf32>, vector<16x64xf32> -> vector<16x64xf32>
    %c0_61 = arith.constant 0 : index
    %c0_62 = arith.constant 0 : index
    %c0_63 = arith.constant 0 : index
    %265 = vector.load %arg8[%c0_61, %c0_62, %c0_63] : memref<3x1x64xf32, #tpu.memory_space<vmem>>, vector<1x1x64xf32>
    %266 = vector.shape_cast %265 : vector<1x1x64xf32> to vector<1x64xf32>
    %267 = vector.broadcast %266 : vector<1x64xf32> to vector<16x64xf32>
    %268 = arith.addf %264, %267 : vector<16x64xf32>
    %cst_64 = arith.constant 0.000000e+00 : f32
    %269 = vector.broadcast %cst_64 : f32 to vector<16x64xf32>
    %270 = arith.maximumf %268, %269 : vector<16x64xf32>
    %c0_65 = arith.constant 0 : index
    %c0_66 = arith.constant 0 : index
    %c0_67 = arith.constant 0 : index
    %271 = vector.load %arg9[%c0_65, %c0_66, %c0_67] : memref<3x64x16xf32, #tpu.memory_space<vmem>>, vector<1x64x16xf32>
    %272 = vector.shape_cast %271 : vector<1x64x16xf32> to vector<64x16xf32>
    %cst_68 = arith.constant dense<0.000000e+00> : vector<16x16xf32>
    %273 = tpu.matmul %270, %272, %cst_68 {dimension_numbers = #tpu.dot_dimension_numbers<[1], [0], [0], [1], [0, 0, 1, 1], [], []>} : vector<16x64xf32>, vector<64x16xf32>, vector<16x16xf32> -> vector<16x16xf32>
    %274 = arith.addf %0, %273 : vector<16x16xf32>
    %c0_69 = arith.constant 0 : index
    %c0_70 = arith.constant 0 : index
    %c0_71 = arith.constant 0 : index
    %275 = vector.load %arg10[%c0_69, %c0_70, %c0_71] : memref<3x1x16xf32, #tpu.memory_space<vmem>>, vector<1x1x16xf32>
    %276 = vector.shape_cast %275 : vector<1x1x16xf32> to vector<1x16xf32>
    %277 = vector.broadcast %276 : vector<1x16xf32> to vector<16x16xf32>
    %278 = arith.addf %274, %277 : vector<16x16xf32>
    %c1 = arith.constant 1 : index
    %c0_72 = arith.constant 0 : index
    %c0_73 = arith.constant 0 : index
    %279 = vector.load %arg3[%c1, %c0_72, %c0_73] : memref<3x16x48xf32, #tpu.memory_space<vmem>>, vector<1x16x48xf32>
    %280 = vector.shape_cast %279 : vector<1x16x48xf32> to vector<16x48xf32>
    %cst_74 = arith.constant dense<0.000000e+00> : vector<16x48xf32>
    %281 = tpu.matmul %278, %280, %cst_74 {dimension_numbers = #tpu.dot_dimension_numbers<[1], [0], [0], [1], [0, 0, 1, 1], [], []>} : vector<16x16xf32>, vector<16x48xf32>, vector<16x48xf32> -> vector<16x48xf32>
    %c1_75 = arith.constant 1 : index
    %c0_76 = arith.constant 0 : index
    %c0_77 = arith.constant 0 : index
    %282 = vector.load %arg5[%c1_75, %c0_76, %c0_77] : memref<3x1x48xf32, #tpu.memory_space<vmem>>, vector<1x1x48xf32>
    %283 = vector.shape_cast %282 : vector<1x1x48xf32> to vector<1x48xf32>
    %284 = vector.broadcast %283 : vector<1x48xf32> to vector<16x48xf32>
    %285 = arith.addf %281, %284 : vector<16x48xf32>
    %c1_78 = arith.constant 1 : index
    %c0_79 = arith.constant 0 : index
    %c0_80 = arith.constant 0 : index
    %286 = vector.load %arg4[%c1_78, %c0_79, %c0_80] : memref<3x16x48xf32, #tpu.memory_space<vmem>>, vector<1x16x48xf32>
    %287 = vector.shape_cast %286 : vector<1x16x48xf32> to vector<16x48xf32>
    %c1_81 = arith.constant 1 : index
    %c0_82 = arith.constant 0 : index
    %c0_83 = arith.constant 0 : index
    %288 = vector.load %arg6[%c1_81, %c0_82, %c0_83] : memref<3x1x48xf32, #tpu.memory_space<vmem>>, vector<1x1x48xf32>
    %289 = vector.shape_cast %288 : vector<1x1x48xf32> to vector<1x48xf32>
    %cst_84 = arith.constant 0.000000e+00 : f32
    %290 = vector.broadcast %cst_84 : f32 to vector<2x16xf32>
    %cst_85 = arith.constant dense<0.000000e+00> : vector<2x48xf32>
    %291 = tpu.matmul %290, %287, %cst_85 {dimension_numbers = #tpu.dot_dimension_numbers<[1], [0], [0], [1], [0, 0, 1, 1], [], []>} : vector<2x16xf32>, vector<16x48xf32>, vector<2x48xf32> -> vector<2x48xf32>
    %292 = vector.broadcast %289 : vector<1x48xf32> to vector<2x48xf32>
    %293 = arith.addf %291, %292 : vector<2x48xf32>
    %294 = vector.extract_strided_slice %285 {offsets = [0, 0], sizes = [2, 48], strides = [1, 1]} : vector<16x48xf32> to vector<2x48xf32>
    %295 = vector.extract_strided_slice %294 {offsets = [0, 0], sizes = [2, 16], strides = [1, 1]} : vector<2x48xf32> to vector<2x16xf32>
    %296 = vector.extract_strided_slice %293 {offsets = [0, 0], sizes = [2, 16], strides = [1, 1]} : vector<2x48xf32> to vector<2x16xf32>
    %297 = arith.addf %295, %296 : vector<2x16xf32>
    %298 = arith.negf %297 : vector<2x16xf32>
    %299 = math.exp %298 : vector<2x16xf32>
    %cst_86 = arith.constant 1.000000e+00 : f32
    %300 = vector.broadcast %cst_86 : f32 to vector<2x16xf32>
    %301 = arith.addf %300, %299 : vector<2x16xf32>
    %302 = arith.divf %300, %301 : vector<2x16xf32>
    %303 = vector.extract_strided_slice %294 {offsets = [0, 16], sizes = [2, 16], strides = [1, 1]} : vector<2x48xf32> to vector<2x16xf32>
    %304 = vector.extract_strided_slice %293 {offsets = [0, 16], sizes = [2, 16], strides = [1, 1]} : vector<2x48xf32> to vector<2x16xf32>
    %305 = arith.addf %303, %304 : vector<2x16xf32>
    %306 = arith.negf %305 : vector<2x16xf32>
    %307 = math.exp %306 : vector<2x16xf32>
    %cst_87 = arith.constant 1.000000e+00 : f32
    %308 = vector.broadcast %cst_87 : f32 to vector<2x16xf32>
    %309 = arith.addf %308, %307 : vector<2x16xf32>
    %310 = arith.divf %308, %309 : vector<2x16xf32>
    %311 = vector.extract_strided_slice %294 {offsets = [0, 32], sizes = [2, 16], strides = [1, 1]} : vector<2x48xf32> to vector<2x16xf32>
    %312 = vector.extract_strided_slice %293 {offsets = [0, 32], sizes = [2, 16], strides = [1, 1]} : vector<2x48xf32> to vector<2x16xf32>
    %313 = arith.mulf %302, %312 : vector<2x16xf32>
    %314 = arith.addf %311, %313 : vector<2x16xf32>
    %315 = math.tanh %314 : vector<2x16xf32>
    %cst_88 = arith.constant 1.000000e+00 : f32
    %316 = vector.broadcast %cst_88 : f32 to vector<2x16xf32>
    %317 = arith.subf %316, %310 : vector<2x16xf32>
    %318 = arith.mulf %317, %315 : vector<2x16xf32>
    %319 = arith.mulf %310, %290 : vector<2x16xf32>
    %320 = arith.addf %318, %319 : vector<2x16xf32>
    %c0_89 = arith.constant 0 : index
    %c0_90 = arith.constant 0 : index
    %321 = vector.load %arg25[%c0_89, %c0_90] : memref<16x16xf32, #tpu.memory_space<vmem>>, vector<2x16xf32>
    tpu.vector_store %arg25[%c0_89, %c0_90], %320 {strides = array<i32>} : memref<16x16xf32, #tpu.memory_space<vmem>>, vector<2x16xf32>,
    %cst_91 = arith.constant dense<0.000000e+00> : vector<2x48xf32>
    %322 = tpu.matmul %320, %287, %cst_91 {dimension_numbers = #tpu.dot_dimension_numbers<[1], [0], [0], [1], [0, 0, 1, 1], [], []>} : vector<2x16xf32>, vector<16x48xf32>, vector<2x48xf32> -> vector<2x48xf32>
    %323 = vector.broadcast %289 : vector<1x48xf32> to vector<2x48xf32>
    %324 = arith.addf %322, %323 : vector<2x48xf32>
    %325 = vector.extract_strided_slice %285 {offsets = [2, 0], sizes = [2, 48], strides = [1, 1]} : vector<16x48xf32> to vector<2x48xf32>
    %326 = vector.extract_strided_slice %325 {offsets = [0, 0], sizes = [2, 16], strides = [1, 1]} : vector<2x48xf32> to vector<2x16xf32>
    %327 = vector.extract_strided_slice %324 {offsets = [0, 0], sizes = [2, 16], strides = [1, 1]} : vector<2x48xf32> to vector<2x16xf32>
    %328 = arith.addf %326, %327 : vector<2x16xf32>
    %329 = arith.negf %328 : vector<2x16xf32>
    %330 = math.exp %329 : vector<2x16xf32>
    %cst_92 = arith.constant 1.000000e+00 : f32
    %331 = vector.broadcast %cst_92 : f32 to vector<2x16xf32>
    %332 = arith.addf %331, %330 : vector<2x16xf32>
    %333 = arith.divf %331, %332 : vector<2x16xf32>
    %334 = vector.extract_strided_slice %325 {offsets = [0, 16], sizes = [2, 16], strides = [1, 1]} : vector<2x48xf32> to vector<2x16xf32>
    %335 = vector.extract_strided_slice %324 {offsets = [0, 16], sizes = [2, 16], strides = [1, 1]} : vector<2x48xf32> to vector<2x16xf32>
    %336 = arith.addf %334, %335 : vector<2x16xf32>
    %337 = arith.negf %336 : vector<2x16xf32>
    %338 = math.exp %337 : vector<2x16xf32>
    %cst_93 = arith.constant 1.000000e+00 : f32
    %339 = vector.broadcast %cst_93 : f32 to vector<2x16xf32>
    %340 = arith.addf %339, %338 : vector<2x16xf32>
    %341 = arith.divf %339, %340 : vector<2x16xf32>
    %342 = vector.extract_strided_slice %325 {offsets = [0, 32], sizes = [2, 16], strides = [1, 1]} : vector<2x48xf32> to vector<2x16xf32>
    %343 = vector.extract_strided_slice %324 {offsets = [0, 32], sizes = [2, 16], strides = [1, 1]} : vector<2x48xf32> to vector<2x16xf32>
    %344 = arith.mulf %333, %343 : vector<2x16xf32>
    %345 = arith.addf %342, %344 : vector<2x16xf32>
    %346 = math.tanh %345 : vector<2x16xf32>
    %cst_94 = arith.constant 1.000000e+00 : f32
    %347 = vector.broadcast %cst_94 : f32 to vector<2x16xf32>
    %348 = arith.subf %347, %341 : vector<2x16xf32>
    %349 = arith.mulf %348, %346 : vector<2x16xf32>
    %350 = arith.mulf %341, %320 : vector<2x16xf32>
    %351 = arith.addf %349, %350 : vector<2x16xf32>
    %c2_95 = arith.constant 2 : index
    %c0_96 = arith.constant 0 : index
    %352 = vector.load %arg25[%c2_95, %c0_96] : memref<16x16xf32, #tpu.memory_space<vmem>>, vector<2x16xf32>
    tpu.vector_store %arg25[%c2_95, %c0_96], %351 {strides = array<i32>} : memref<16x16xf32, #tpu.memory_space<vmem>>, vector<2x16xf32>,
    %cst_97 = arith.constant dense<0.000000e+00> : vector<2x48xf32>
    %353 = tpu.matmul %351, %287, %cst_97 {dimension_numbers = #tpu.dot_dimension_numbers<[1], [0], [0], [1], [0, 0, 1, 1], [], []>} : vector<2x16xf32>, vector<16x48xf32>, vector<2x48xf32> -> vector<2x48xf32>
    %354 = vector.broadcast %289 : vector<1x48xf32> to vector<2x48xf32>
    %355 = arith.addf %353, %354 : vector<2x48xf32>
    %356 = vector.extract_strided_slice %285 {offsets = [4, 0], sizes = [2, 48], strides = [1, 1]} : vector<16x48xf32> to vector<2x48xf32>
    %357 = vector.extract_strided_slice %356 {offsets = [0, 0], sizes = [2, 16], strides = [1, 1]} : vector<2x48xf32> to vector<2x16xf32>
    %358 = vector.extract_strided_slice %355 {offsets = [0, 0], sizes = [2, 16], strides = [1, 1]} : vector<2x48xf32> to vector<2x16xf32>
    %359 = arith.addf %357, %358 : vector<2x16xf32>
    %360 = arith.negf %359 : vector<2x16xf32>
    %361 = math.exp %360 : vector<2x16xf32>
    %cst_98 = arith.constant 1.000000e+00 : f32
    %362 = vector.broadcast %cst_98 : f32 to vector<2x16xf32>
    %363 = arith.addf %362, %361 : vector<2x16xf32>
    %364 = arith.divf %362, %363 : vector<2x16xf32>
    %365 = vector.extract_strided_slice %356 {offsets = [0, 16], sizes = [2, 16], strides = [1, 1]} : vector<2x48xf32> to vector<2x16xf32>
    %366 = vector.extract_strided_slice %355 {offsets = [0, 16], sizes = [2, 16], strides = [1, 1]} : vector<2x48xf32> to vector<2x16xf32>
    %367 = arith.addf %365, %366 : vector<2x16xf32>
    %368 = arith.negf %367 : vector<2x16xf32>
    %369 = math.exp %368 : vector<2x16xf32>
    %cst_99 = arith.constant 1.000000e+00 : f32
    %370 = vector.broadcast %cst_99 : f32 to vector<2x16xf32>
    %371 = arith.addf %370, %369 : vector<2x16xf32>
    %372 = arith.divf %370, %371 : vector<2x16xf32>
    %373 = vector.extract_strided_slice %356 {offsets = [0, 32], sizes = [2, 16], strides = [1, 1]} : vector<2x48xf32> to vector<2x16xf32>
    %374 = vector.extract_strided_slice %355 {offsets = [0, 32], sizes = [2, 16], strides = [1, 1]} : vector<2x48xf32> to vector<2x16xf32>
    %375 = arith.mulf %364, %374 : vector<2x16xf32>
    %376 = arith.addf %373, %375 : vector<2x16xf32>
    %377 = math.tanh %376 : vector<2x16xf32>
    %cst_100 = arith.constant 1.000000e+00 : f32
    %378 = vector.broadcast %cst_100 : f32 to vector<2x16xf32>
    %379 = arith.subf %378, %372 : vector<2x16xf32>
    %380 = arith.mulf %379, %377 : vector<2x16xf32>
    %381 = arith.mulf %372, %351 : vector<2x16xf32>
    %382 = arith.addf %380, %381 : vector<2x16xf32>
    %c4_101 = arith.constant 4 : index
    %c0_102 = arith.constant 0 : index
    %383 = vector.load %arg25[%c4_101, %c0_102] : memref<16x16xf32, #tpu.memory_space<vmem>>, vector<2x16xf32>
    tpu.vector_store %arg25[%c4_101, %c0_102], %382 {strides = array<i32>} : memref<16x16xf32, #tpu.memory_space<vmem>>, vector<2x16xf32>,
    %cst_103 = arith.constant dense<0.000000e+00> : vector<2x48xf32>
    %384 = tpu.matmul %382, %287, %cst_103 {dimension_numbers = #tpu.dot_dimension_numbers<[1], [0], [0], [1], [0, 0, 1, 1], [], []>} : vector<2x16xf32>, vector<16x48xf32>, vector<2x48xf32> -> vector<2x48xf32>
    %385 = vector.broadcast %289 : vector<1x48xf32> to vector<2x48xf32>
    %386 = arith.addf %384, %385 : vector<2x48xf32>
    %387 = vector.extract_strided_slice %285 {offsets = [6, 0], sizes = [2, 48], strides = [1, 1]} : vector<16x48xf32> to vector<2x48xf32>
    %388 = vector.extract_strided_slice %387 {offsets = [0, 0], sizes = [2, 16], strides = [1, 1]} : vector<2x48xf32> to vector<2x16xf32>
    %389 = vector.extract_strided_slice %386 {offsets = [0, 0], sizes = [2, 16], strides = [1, 1]} : vector<2x48xf32> to vector<2x16xf32>
    %390 = arith.addf %388, %389 : vector<2x16xf32>
    %391 = arith.negf %390 : vector<2x16xf32>
    %392 = math.exp %391 : vector<2x16xf32>
    %cst_104 = arith.constant 1.000000e+00 : f32
    %393 = vector.broadcast %cst_104 : f32 to vector<2x16xf32>
    %394 = arith.addf %393, %392 : vector<2x16xf32>
    %395 = arith.divf %393, %394 : vector<2x16xf32>
    %396 = vector.extract_strided_slice %387 {offsets = [0, 16], sizes = [2, 16], strides = [1, 1]} : vector<2x48xf32> to vector<2x16xf32>
    %397 = vector.extract_strided_slice %386 {offsets = [0, 16], sizes = [2, 16], strides = [1, 1]} : vector<2x48xf32> to vector<2x16xf32>
    %398 = arith.addf %396, %397 : vector<2x16xf32>
    %399 = arith.negf %398 : vector<2x16xf32>
    %400 = math.exp %399 : vector<2x16xf32>
    %cst_105 = arith.constant 1.000000e+00 : f32
    %401 = vector.broadcast %cst_105 : f32 to vector<2x16xf32>
    %402 = arith.addf %401, %400 : vector<2x16xf32>
    %403 = arith.divf %401, %402 : vector<2x16xf32>
    %404 = vector.extract_strided_slice %387 {offsets = [0, 32], sizes = [2, 16], strides = [1, 1]} : vector<2x48xf32> to vector<2x16xf32>
    %405 = vector.extract_strided_slice %386 {offsets = [0, 32], sizes = [2, 16], strides = [1, 1]} : vector<2x48xf32> to vector<2x16xf32>
    %406 = arith.mulf %395, %405 : vector<2x16xf32>
    %407 = arith.addf %404, %406 : vector<2x16xf32>
    %408 = math.tanh %407 : vector<2x16xf32>
    %cst_106 = arith.constant 1.000000e+00 : f32
    %409 = vector.broadcast %cst_106 : f32 to vector<2x16xf32>
    %410 = arith.subf %409, %403 : vector<2x16xf32>
    %411 = arith.mulf %410, %408 : vector<2x16xf32>
    %412 = arith.mulf %403, %382 : vector<2x16xf32>
    %413 = arith.addf %411, %412 : vector<2x16xf32>
    %c6_107 = arith.constant 6 : index
    %c0_108 = arith.constant 0 : index
    %414 = vector.load %arg25[%c6_107, %c0_108] : memref<16x16xf32, #tpu.memory_space<vmem>>, vector<2x16xf32>
    tpu.vector_store %arg25[%c6_107, %c0_108], %413 {strides = array<i32>} : memref<16x16xf32, #tpu.memory_space<vmem>>, vector<2x16xf32>,
    %cst_109 = arith.constant dense<0.000000e+00> : vector<2x48xf32>
    %415 = tpu.matmul %413, %287, %cst_109 {dimension_numbers = #tpu.dot_dimension_numbers<[1], [0], [0], [1], [0, 0, 1, 1], [], []>} : vector<2x16xf32>, vector<16x48xf32>, vector<2x48xf32> -> vector<2x48xf32>
    %416 = vector.broadcast %289 : vector<1x48xf32> to vector<2x48xf32>
    %417 = arith.addf %415, %416 : vector<2x48xf32>
    %418 = vector.extract_strided_slice %285 {offsets = [8, 0], sizes = [2, 48], strides = [1, 1]} : vector<16x48xf32> to vector<2x48xf32>
    %419 = vector.extract_strided_slice %418 {offsets = [0, 0], sizes = [2, 16], strides = [1, 1]} : vector<2x48xf32> to vector<2x16xf32>
    %420 = vector.extract_strided_slice %417 {offsets = [0, 0], sizes = [2, 16], strides = [1, 1]} : vector<2x48xf32> to vector<2x16xf32>
    %421 = arith.addf %419, %420 : vector<2x16xf32>
    %422 = arith.negf %421 : vector<2x16xf32>
    %423 = math.exp %422 : vector<2x16xf32>
    %cst_110 = arith.constant 1.000000e+00 : f32
    %424 = vector.broadcast %cst_110 : f32 to vector<2x16xf32>
    %425 = arith.addf %424, %423 : vector<2x16xf32>
    %426 = arith.divf %424, %425 : vector<2x16xf32>
    %427 = vector.extract_strided_slice %418 {offsets = [0, 16], sizes = [2, 16], strides = [1, 1]} : vector<2x48xf32> to vector<2x16xf32>
    %428 = vector.extract_strided_slice %417 {offsets = [0, 16], sizes = [2, 16], strides = [1, 1]} : vector<2x48xf32> to vector<2x16xf32>
    %429 = arith.addf %427, %428 : vector<2x16xf32>
    %430 = arith.negf %429 : vector<2x16xf32>
    %431 = math.exp %430 : vector<2x16xf32>
    %cst_111 = arith.constant 1.000000e+00 : f32
    %432 = vector.broadcast %cst_111 : f32 to vector<2x16xf32>
    %433 = arith.addf %432, %431 : vector<2x16xf32>
    %434 = arith.divf %432, %433 : vector<2x16xf32>
    %435 = vector.extract_strided_slice %418 {offsets = [0, 32], sizes = [2, 16], strides = [1, 1]} : vector<2x48xf32> to vector<2x16xf32>
    %436 = vector.extract_strided_slice %417 {offsets = [0, 32], sizes = [2, 16], strides = [1, 1]} : vector<2x48xf32> to vector<2x16xf32>
    %437 = arith.mulf %426, %436 : vector<2x16xf32>
    %438 = arith.addf %435, %437 : vector<2x16xf32>
    %439 = math.tanh %438 : vector<2x16xf32>
    %cst_112 = arith.constant 1.000000e+00 : f32
    %440 = vector.broadcast %cst_112 : f32 to vector<2x16xf32>
    %441 = arith.subf %440, %434 : vector<2x16xf32>
    %442 = arith.mulf %441, %439 : vector<2x16xf32>
    %443 = arith.mulf %434, %413 : vector<2x16xf32>
    %444 = arith.addf %442, %443 : vector<2x16xf32>
    %c8_113 = arith.constant 8 : index
    %c0_114 = arith.constant 0 : index
    %445 = vector.load %arg25[%c8_113, %c0_114] : memref<16x16xf32, #tpu.memory_space<vmem>>, vector<2x16xf32>
    tpu.vector_store %arg25[%c8_113, %c0_114], %444 {strides = array<i32>} : memref<16x16xf32, #tpu.memory_space<vmem>>, vector<2x16xf32>,
    %cst_115 = arith.constant dense<0.000000e+00> : vector<2x48xf32>
    %446 = tpu.matmul %444, %287, %cst_115 {dimension_numbers = #tpu.dot_dimension_numbers<[1], [0], [0], [1], [0, 0, 1, 1], [], []>} : vector<2x16xf32>, vector<16x48xf32>, vector<2x48xf32> -> vector<2x48xf32>
    %447 = vector.broadcast %289 : vector<1x48xf32> to vector<2x48xf32>
    %448 = arith.addf %446, %447 : vector<2x48xf32>
    %449 = vector.extract_strided_slice %285 {offsets = [10, 0], sizes = [2, 48], strides = [1, 1]} : vector<16x48xf32> to vector<2x48xf32>
    %450 = vector.extract_strided_slice %449 {offsets = [0, 0], sizes = [2, 16], strides = [1, 1]} : vector<2x48xf32> to vector<2x16xf32>
    %451 = vector.extract_strided_slice %448 {offsets = [0, 0], sizes = [2, 16], strides = [1, 1]} : vector<2x48xf32> to vector<2x16xf32>
    %452 = arith.addf %450, %451 : vector<2x16xf32>
    %453 = arith.negf %452 : vector<2x16xf32>
    %454 = math.exp %453 : vector<2x16xf32>
    %cst_116 = arith.constant 1.000000e+00 : f32
    %455 = vector.broadcast %cst_116 : f32 to vector<2x16xf32>
    %456 = arith.addf %455, %454 : vector<2x16xf32>
    %457 = arith.divf %455, %456 : vector<2x16xf32>
    %458 = vector.extract_strided_slice %449 {offsets = [0, 16], sizes = [2, 16], strides = [1, 1]} : vector<2x48xf32> to vector<2x16xf32>
    %459 = vector.extract_strided_slice %448 {offsets = [0, 16], sizes = [2, 16], strides = [1, 1]} : vector<2x48xf32> to vector<2x16xf32>
    %460 = arith.addf %458, %459 : vector<2x16xf32>
    %461 = arith.negf %460 : vector<2x16xf32>
    %462 = math.exp %461 : vector<2x16xf32>
    %cst_117 = arith.constant 1.000000e+00 : f32
    %463 = vector.broadcast %cst_117 : f32 to vector<2x16xf32>
    %464 = arith.addf %463, %462 : vector<2x16xf32>
    %465 = arith.divf %463, %464 : vector<2x16xf32>
    %466 = vector.extract_strided_slice %449 {offsets = [0, 32], sizes = [2, 16], strides = [1, 1]} : vector<2x48xf32> to vector<2x16xf32>
    %467 = vector.extract_strided_slice %448 {offsets = [0, 32], sizes = [2, 16], strides = [1, 1]} : vector<2x48xf32> to vector<2x16xf32>
    %468 = arith.mulf %457, %467 : vector<2x16xf32>
    %469 = arith.addf %466, %468 : vector<2x16xf32>
    %470 = math.tanh %469 : vector<2x16xf32>
    %cst_118 = arith.constant 1.000000e+00 : f32
    %471 = vector.broadcast %cst_118 : f32 to vector<2x16xf32>
    %472 = arith.subf %471, %465 : vector<2x16xf32>
    %473 = arith.mulf %472, %470 : vector<2x16xf32>
    %474 = arith.mulf %465, %444 : vector<2x16xf32>
    %475 = arith.addf %473, %474 : vector<2x16xf32>
    %c10_119 = arith.constant 10 : index
    %c0_120 = arith.constant 0 : index
    %476 = vector.load %arg25[%c10_119, %c0_120] : memref<16x16xf32, #tpu.memory_space<vmem>>, vector<2x16xf32>
    tpu.vector_store %arg25[%c10_119, %c0_120], %475 {strides = array<i32>} : memref<16x16xf32, #tpu.memory_space<vmem>>, vector<2x16xf32>,
    %cst_121 = arith.constant dense<0.000000e+00> : vector<2x48xf32>
    %477 = tpu.matmul %475, %287, %cst_121 {dimension_numbers = #tpu.dot_dimension_numbers<[1], [0], [0], [1], [0, 0, 1, 1], [], []>} : vector<2x16xf32>, vector<16x48xf32>, vector<2x48xf32> -> vector<2x48xf32>
    %478 = vector.broadcast %289 : vector<1x48xf32> to vector<2x48xf32>
    %479 = arith.addf %477, %478 : vector<2x48xf32>
    %480 = vector.extract_strided_slice %285 {offsets = [12, 0], sizes = [2, 48], strides = [1, 1]} : vector<16x48xf32> to vector<2x48xf32>
    %481 = vector.extract_strided_slice %480 {offsets = [0, 0], sizes = [2, 16], strides = [1, 1]} : vector<2x48xf32> to vector<2x16xf32>
    %482 = vector.extract_strided_slice %479 {offsets = [0, 0], sizes = [2, 16], strides = [1, 1]} : vector<2x48xf32> to vector<2x16xf32>
    %483 = arith.addf %481, %482 : vector<2x16xf32>
    %484 = arith.negf %483 : vector<2x16xf32>
    %485 = math.exp %484 : vector<2x16xf32>
    %cst_122 = arith.constant 1.000000e+00 : f32
    %486 = vector.broadcast %cst_122 : f32 to vector<2x16xf32>
    %487 = arith.addf %486, %485 : vector<2x16xf32>
    %488 = arith.divf %486, %487 : vector<2x16xf32>
    %489 = vector.extract_strided_slice %480 {offsets = [0, 16], sizes = [2, 16], strides = [1, 1]} : vector<2x48xf32> to vector<2x16xf32>
    %490 = vector.extract_strided_slice %479 {offsets = [0, 16], sizes = [2, 16], strides = [1, 1]} : vector<2x48xf32> to vector<2x16xf32>
    %491 = arith.addf %489, %490 : vector<2x16xf32>
    %492 = arith.negf %491 : vector<2x16xf32>
    %493 = math.exp %492 : vector<2x16xf32>
    %cst_123 = arith.constant 1.000000e+00 : f32
    %494 = vector.broadcast %cst_123 : f32 to vector<2x16xf32>
    %495 = arith.addf %494, %493 : vector<2x16xf32>
    %496 = arith.divf %494, %495 : vector<2x16xf32>
    %497 = vector.extract_strided_slice %480 {offsets = [0, 32], sizes = [2, 16], strides = [1, 1]} : vector<2x48xf32> to vector<2x16xf32>
    %498 = vector.extract_strided_slice %479 {offsets = [0, 32], sizes = [2, 16], strides = [1, 1]} : vector<2x48xf32> to vector<2x16xf32>
    %499 = arith.mulf %488, %498 : vector<2x16xf32>
    %500 = arith.addf %497, %499 : vector<2x16xf32>
    %501 = math.tanh %500 : vector<2x16xf32>
    %cst_124 = arith.constant 1.000000e+00 : f32
    %502 = vector.broadcast %cst_124 : f32 to vector<2x16xf32>
    %503 = arith.subf %502, %496 : vector<2x16xf32>
    %504 = arith.mulf %503, %501 : vector<2x16xf32>
    %505 = arith.mulf %496, %475 : vector<2x16xf32>
    %506 = arith.addf %504, %505 : vector<2x16xf32>
    %c12_125 = arith.constant 12 : index
    %c0_126 = arith.constant 0 : index
    %507 = vector.load %arg25[%c12_125, %c0_126] : memref<16x16xf32, #tpu.memory_space<vmem>>, vector<2x16xf32>
    tpu.vector_store %arg25[%c12_125, %c0_126], %506 {strides = array<i32>} : memref<16x16xf32, #tpu.memory_space<vmem>>, vector<2x16xf32>,
    %cst_127 = arith.constant dense<0.000000e+00> : vector<2x48xf32>
    %508 = tpu.matmul %506, %287, %cst_127 {dimension_numbers = #tpu.dot_dimension_numbers<[1], [0], [0], [1], [0, 0, 1, 1], [], []>} : vector<2x16xf32>, vector<16x48xf32>, vector<2x48xf32> -> vector<2x48xf32>
    %509 = vector.broadcast %289 : vector<1x48xf32> to vector<2x48xf32>
    %510 = arith.addf %508, %509 : vector<2x48xf32>
    %511 = vector.extract_strided_slice %285 {offsets = [14, 0], sizes = [2, 48], strides = [1, 1]} : vector<16x48xf32> to vector<2x48xf32>
    %512 = vector.extract_strided_slice %511 {offsets = [0, 0], sizes = [2, 16], strides = [1, 1]} : vector<2x48xf32> to vector<2x16xf32>
    %513 = vector.extract_strided_slice %510 {offsets = [0, 0], sizes = [2, 16], strides = [1, 1]} : vector<2x48xf32> to vector<2x16xf32>
    %514 = arith.addf %512, %513 : vector<2x16xf32>
    %515 = arith.negf %514 : vector<2x16xf32>
    %516 = math.exp %515 : vector<2x16xf32>
    %cst_128 = arith.constant 1.000000e+00 : f32
    %517 = vector.broadcast %cst_128 : f32 to vector<2x16xf32>
    %518 = arith.addf %517, %516 : vector<2x16xf32>
    %519 = arith.divf %517, %518 : vector<2x16xf32>
    %520 = vector.extract_strided_slice %511 {offsets = [0, 16], sizes = [2, 16], strides = [1, 1]} : vector<2x48xf32> to vector<2x16xf32>
    %521 = vector.extract_strided_slice %510 {offsets = [0, 16], sizes = [2, 16], strides = [1, 1]} : vector<2x48xf32> to vector<2x16xf32>
    %522 = arith.addf %520, %521 : vector<2x16xf32>
    %523 = arith.negf %522 : vector<2x16xf32>
    %524 = math.exp %523 : vector<2x16xf32>
    %cst_129 = arith.constant 1.000000e+00 : f32
    %525 = vector.broadcast %cst_129 : f32 to vector<2x16xf32>
    %526 = arith.addf %525, %524 : vector<2x16xf32>
    %527 = arith.divf %525, %526 : vector<2x16xf32>
    %528 = vector.extract_strided_slice %511 {offsets = [0, 32], sizes = [2, 16], strides = [1, 1]} : vector<2x48xf32> to vector<2x16xf32>
    %529 = vector.extract_strided_slice %510 {offsets = [0, 32], sizes = [2, 16], strides = [1, 1]} : vector<2x48xf32> to vector<2x16xf32>
    %530 = arith.mulf %519, %529 : vector<2x16xf32>
    %531 = arith.addf %528, %530 : vector<2x16xf32>
    %532 = math.tanh %531 : vector<2x16xf32>
    %cst_130 = arith.constant 1.000000e+00 : f32
    %533 = vector.broadcast %cst_130 : f32 to vector<2x16xf32>
    %534 = arith.subf %533, %527 : vector<2x16xf32>
    %535 = arith.mulf %534, %532 : vector<2x16xf32>
    %536 = arith.mulf %527, %506 : vector<2x16xf32>
    %537 = arith.addf %535, %536 : vector<2x16xf32>
    %c14_131 = arith.constant 14 : index
    %c0_132 = arith.constant 0 : index
    %538 = vector.load %arg25[%c14_131, %c0_132] : memref<16x16xf32, #tpu.memory_space<vmem>>, vector<2x16xf32>
    tpu.vector_store %arg25[%c14_131, %c0_132], %537 {strides = array<i32>} : memref<16x16xf32, #tpu.memory_space<vmem>>, vector<2x16xf32>,
    %c0_133 = arith.constant 0 : index
    %c0_134 = arith.constant 0 : index
    %539 = vector.load %arg25[%c0_133, %c0_134] : memref<16x16xf32, #tpu.memory_space<vmem>>, vector<16x16xf32>
    %c1_135 = arith.constant 1 : index
    %c0_136 = arith.constant 0 : index
    %c0_137 = arith.constant 0 : index
    %540 = vector.load %arg7[%c1_135, %c0_136, %c0_137] : memref<3x16x64xf32, #tpu.memory_space<vmem>>, vector<1x16x64xf32>
    %541 = vector.shape_cast %540 : vector<1x16x64xf32> to vector<16x64xf32>
    %cst_138 = arith.constant dense<0.000000e+00> : vector<16x64xf32>
    %542 = tpu.matmul %539, %541, %cst_138 {dimension_numbers = #tpu.dot_dimension_numbers<[1], [0], [0], [1], [0, 0, 1, 1], [], []>} : vector<16x16xf32>, vector<16x64xf32>, vector<16x64xf32> -> vector<16x64xf32>
    %c1_139 = arith.constant 1 : index
    %c0_140 = arith.constant 0 : index
    %c0_141 = arith.constant 0 : index
    %543 = vector.load %arg8[%c1_139, %c0_140, %c0_141] : memref<3x1x64xf32, #tpu.memory_space<vmem>>, vector<1x1x64xf32>
    %544 = vector.shape_cast %543 : vector<1x1x64xf32> to vector<1x64xf32>
    %545 = vector.broadcast %544 : vector<1x64xf32> to vector<16x64xf32>
    %546 = arith.addf %542, %545 : vector<16x64xf32>
    %cst_142 = arith.constant 0.000000e+00 : f32
    %547 = vector.broadcast %cst_142 : f32 to vector<16x64xf32>
    %548 = arith.maximumf %546, %547 : vector<16x64xf32>
    %c1_143 = arith.constant 1 : index
    %c0_144 = arith.constant 0 : index
    %c0_145 = arith.constant 0 : index
    %549 = vector.load %arg9[%c1_143, %c0_144, %c0_145] : memref<3x64x16xf32, #tpu.memory_space<vmem>>, vector<1x64x16xf32>
    %550 = vector.shape_cast %549 : vector<1x64x16xf32> to vector<64x16xf32>
    %cst_146 = arith.constant dense<0.000000e+00> : vector<16x16xf32>
    %551 = tpu.matmul %548, %550, %cst_146 {dimension_numbers = #tpu.dot_dimension_numbers<[1], [0], [0], [1], [0, 0, 1, 1], [], []>} : vector<16x64xf32>, vector<64x16xf32>, vector<16x16xf32> -> vector<16x16xf32>
    %552 = arith.addf %278, %551 : vector<16x16xf32>
    %c1_147 = arith.constant 1 : index
    %c0_148 = arith.constant 0 : index
    %c0_149 = arith.constant 0 : index
    %553 = vector.load %arg10[%c1_147, %c0_148, %c0_149] : memref<3x1x16xf32, #tpu.memory_space<vmem>>, vector<1x1x16xf32>
    %554 = vector.shape_cast %553 : vector<1x1x16xf32> to vector<1x16xf32>
    %555 = vector.broadcast %554 : vector<1x16xf32> to vector<16x16xf32>
    %556 = arith.addf %552, %555 : vector<16x16xf32>
    %c2_150 = arith.constant 2 : index
    %c0_151 = arith.constant 0 : index
    %c0_152 = arith.constant 0 : index
    %557 = vector.load %arg3[%c2_150, %c0_151, %c0_152] : memref<3x16x48xf32, #tpu.memory_space<vmem>>, vector<1x16x48xf32>
    %558 = vector.shape_cast %557 : vector<1x16x48xf32> to vector<16x48xf32>
    %cst_153 = arith.constant dense<0.000000e+00> : vector<16x48xf32>
    %559 = tpu.matmul %556, %558, %cst_153 {dimension_numbers = #tpu.dot_dimension_numbers<[1], [0], [0], [1], [0, 0, 1, 1], [], []>} : vector<16x16xf32>, vector<16x48xf32>, vector<16x48xf32> -> vector<16x48xf32>
    %c2_154 = arith.constant 2 : index
    %c0_155 = arith.constant 0 : index
    %c0_156 = arith.constant 0 : index
    %560 = vector.load %arg5[%c2_154, %c0_155, %c0_156] : memref<3x1x48xf32, #tpu.memory_space<vmem>>, vector<1x1x48xf32>
    %561 = vector.shape_cast %560 : vector<1x1x48xf32> to vector<1x48xf32>
    %562 = vector.broadcast %561 : vector<1x48xf32> to vector<16x48xf32>
    %563 = arith.addf %559, %562 : vector<16x48xf32>
    %c2_157 = arith.constant 2 : index
    %c0_158 = arith.constant 0 : index
    %c0_159 = arith.constant 0 : index
    %564 = vector.load %arg4[%c2_157, %c0_158, %c0_159] : memref<3x16x48xf32, #tpu.memory_space<vmem>>, vector<1x16x48xf32>
    %565 = vector.shape_cast %564 : vector<1x16x48xf32> to vector<16x48xf32>
    %c2_160 = arith.constant 2 : index
    %c0_161 = arith.constant 0 : index
    %c0_162 = arith.constant 0 : index
    %566 = vector.load %arg6[%c2_160, %c0_161, %c0_162] : memref<3x1x48xf32, #tpu.memory_space<vmem>>, vector<1x1x48xf32>
    %567 = vector.shape_cast %566 : vector<1x1x48xf32> to vector<1x48xf32>
    %cst_163 = arith.constant 0.000000e+00 : f32
    %568 = vector.broadcast %cst_163 : f32 to vector<2x16xf32>
    %cst_164 = arith.constant dense<0.000000e+00> : vector<2x48xf32>
    %569 = tpu.matmul %568, %565, %cst_164 {dimension_numbers = #tpu.dot_dimension_numbers<[1], [0], [0], [1], [0, 0, 1, 1], [], []>} : vector<2x16xf32>, vector<16x48xf32>, vector<2x48xf32> -> vector<2x48xf32>
    %570 = vector.broadcast %567 : vector<1x48xf32> to vector<2x48xf32>
    %571 = arith.addf %569, %570 : vector<2x48xf32>
    %572 = vector.extract_strided_slice %563 {offsets = [0, 0], sizes = [2, 48], strides = [1, 1]} : vector<16x48xf32> to vector<2x48xf32>
    %573 = vector.extract_strided_slice %572 {offsets = [0, 0], sizes = [2, 16], strides = [1, 1]} : vector<2x48xf32> to vector<2x16xf32>
    %574 = vector.extract_strided_slice %571 {offsets = [0, 0], sizes = [2, 16], strides = [1, 1]} : vector<2x48xf32> to vector<2x16xf32>
    %575 = arith.addf %573, %574 : vector<2x16xf32>
    %576 = arith.negf %575 : vector<2x16xf32>
    %577 = math.exp %576 : vector<2x16xf32>
    %cst_165 = arith.constant 1.000000e+00 : f32
    %578 = vector.broadcast %cst_165 : f32 to vector<2x16xf32>
    %579 = arith.addf %578, %577 : vector<2x16xf32>
    %580 = arith.divf %578, %579 : vector<2x16xf32>
    %581 = vector.extract_strided_slice %572 {offsets = [0, 16], sizes = [2, 16], strides = [1, 1]} : vector<2x48xf32> to vector<2x16xf32>
    %582 = vector.extract_strided_slice %571 {offsets = [0, 16], sizes = [2, 16], strides = [1, 1]} : vector<2x48xf32> to vector<2x16xf32>
    %583 = arith.addf %581, %582 : vector<2x16xf32>
    %584 = arith.negf %583 : vector<2x16xf32>
    %585 = math.exp %584 : vector<2x16xf32>
    %cst_166 = arith.constant 1.000000e+00 : f32
    %586 = vector.broadcast %cst_166 : f32 to vector<2x16xf32>
    %587 = arith.addf %586, %585 : vector<2x16xf32>
    %588 = arith.divf %586, %587 : vector<2x16xf32>
    %589 = vector.extract_strided_slice %572 {offsets = [0, 32], sizes = [2, 16], strides = [1, 1]} : vector<2x48xf32> to vector<2x16xf32>
    %590 = vector.extract_strided_slice %571 {offsets = [0, 32], sizes = [2, 16], strides = [1, 1]} : vector<2x48xf32> to vector<2x16xf32>
    %591 = arith.mulf %580, %590 : vector<2x16xf32>
    %592 = arith.addf %589, %591 : vector<2x16xf32>
    %593 = math.tanh %592 : vector<2x16xf32>
    %cst_167 = arith.constant 1.000000e+00 : f32
    %594 = vector.broadcast %cst_167 : f32 to vector<2x16xf32>
    %595 = arith.subf %594, %588 : vector<2x16xf32>
    %596 = arith.mulf %595, %593 : vector<2x16xf32>
    %597 = arith.mulf %588, %568 : vector<2x16xf32>
    %598 = arith.addf %596, %597 : vector<2x16xf32>
    %c0_168 = arith.constant 0 : index
    %c0_169 = arith.constant 0 : index
    %599 = vector.load %arg25[%c0_168, %c0_169] : memref<16x16xf32, #tpu.memory_space<vmem>>, vector<2x16xf32>
    tpu.vector_store %arg25[%c0_168, %c0_169], %598 {strides = array<i32>} : memref<16x16xf32, #tpu.memory_space<vmem>>, vector<2x16xf32>,
    %cst_170 = arith.constant dense<0.000000e+00> : vector<2x48xf32>
    %600 = tpu.matmul %598, %565, %cst_170 {dimension_numbers = #tpu.dot_dimension_numbers<[1], [0], [0], [1], [0, 0, 1, 1], [], []>} : vector<2x16xf32>, vector<16x48xf32>, vector<2x48xf32> -> vector<2x48xf32>
    %601 = vector.broadcast %567 : vector<1x48xf32> to vector<2x48xf32>
    %602 = arith.addf %600, %601 : vector<2x48xf32>
    %603 = vector.extract_strided_slice %563 {offsets = [2, 0], sizes = [2, 48], strides = [1, 1]} : vector<16x48xf32> to vector<2x48xf32>
    %604 = vector.extract_strided_slice %603 {offsets = [0, 0], sizes = [2, 16], strides = [1, 1]} : vector<2x48xf32> to vector<2x16xf32>
    %605 = vector.extract_strided_slice %602 {offsets = [0, 0], sizes = [2, 16], strides = [1, 1]} : vector<2x48xf32> to vector<2x16xf32>
    %606 = arith.addf %604, %605 : vector<2x16xf32>
    %607 = arith.negf %606 : vector<2x16xf32>
    %608 = math.exp %607 : vector<2x16xf32>
    %cst_171 = arith.constant 1.000000e+00 : f32
    %609 = vector.broadcast %cst_171 : f32 to vector<2x16xf32>
    %610 = arith.addf %609, %608 : vector<2x16xf32>
    %611 = arith.divf %609, %610 : vector<2x16xf32>
    %612 = vector.extract_strided_slice %603 {offsets = [0, 16], sizes = [2, 16], strides = [1, 1]} : vector<2x48xf32> to vector<2x16xf32>
    %613 = vector.extract_strided_slice %602 {offsets = [0, 16], sizes = [2, 16], strides = [1, 1]} : vector<2x48xf32> to vector<2x16xf32>
    %614 = arith.addf %612, %613 : vector<2x16xf32>
    %615 = arith.negf %614 : vector<2x16xf32>
    %616 = math.exp %615 : vector<2x16xf32>
    %cst_172 = arith.constant 1.000000e+00 : f32
    %617 = vector.broadcast %cst_172 : f32 to vector<2x16xf32>
    %618 = arith.addf %617, %616 : vector<2x16xf32>
    %619 = arith.divf %617, %618 : vector<2x16xf32>
    %620 = vector.extract_strided_slice %603 {offsets = [0, 32], sizes = [2, 16], strides = [1, 1]} : vector<2x48xf32> to vector<2x16xf32>
    %621 = vector.extract_strided_slice %602 {offsets = [0, 32], sizes = [2, 16], strides = [1, 1]} : vector<2x48xf32> to vector<2x16xf32>
    %622 = arith.mulf %611, %621 : vector<2x16xf32>
    %623 = arith.addf %620, %622 : vector<2x16xf32>
    %624 = math.tanh %623 : vector<2x16xf32>
    %cst_173 = arith.constant 1.000000e+00 : f32
    %625 = vector.broadcast %cst_173 : f32 to vector<2x16xf32>
    %626 = arith.subf %625, %619 : vector<2x16xf32>
    %627 = arith.mulf %626, %624 : vector<2x16xf32>
    %628 = arith.mulf %619, %598 : vector<2x16xf32>
    %629 = arith.addf %627, %628 : vector<2x16xf32>
    %c2_174 = arith.constant 2 : index
    %c0_175 = arith.constant 0 : index
    %630 = vector.load %arg25[%c2_174, %c0_175] : memref<16x16xf32, #tpu.memory_space<vmem>>, vector<2x16xf32>
    tpu.vector_store %arg25[%c2_174, %c0_175], %629 {strides = array<i32>} : memref<16x16xf32, #tpu.memory_space<vmem>>, vector<2x16xf32>,
    %cst_176 = arith.constant dense<0.000000e+00> : vector<2x48xf32>
    %631 = tpu.matmul %629, %565, %cst_176 {dimension_numbers = #tpu.dot_dimension_numbers<[1], [0], [0], [1], [0, 0, 1, 1], [], []>} : vector<2x16xf32>, vector<16x48xf32>, vector<2x48xf32> -> vector<2x48xf32>
    %632 = vector.broadcast %567 : vector<1x48xf32> to vector<2x48xf32>
    %633 = arith.addf %631, %632 : vector<2x48xf32>
    %634 = vector.extract_strided_slice %563 {offsets = [4, 0], sizes = [2, 48], strides = [1, 1]} : vector<16x48xf32> to vector<2x48xf32>
    %635 = vector.extract_strided_slice %634 {offsets = [0, 0], sizes = [2, 16], strides = [1, 1]} : vector<2x48xf32> to vector<2x16xf32>
    %636 = vector.extract_strided_slice %633 {offsets = [0, 0], sizes = [2, 16], strides = [1, 1]} : vector<2x48xf32> to vector<2x16xf32>
    %637 = arith.addf %635, %636 : vector<2x16xf32>
    %638 = arith.negf %637 : vector<2x16xf32>
    %639 = math.exp %638 : vector<2x16xf32>
    %cst_177 = arith.constant 1.000000e+00 : f32
    %640 = vector.broadcast %cst_177 : f32 to vector<2x16xf32>
    %641 = arith.addf %640, %639 : vector<2x16xf32>
    %642 = arith.divf %640, %641 : vector<2x16xf32>
    %643 = vector.extract_strided_slice %634 {offsets = [0, 16], sizes = [2, 16], strides = [1, 1]} : vector<2x48xf32> to vector<2x16xf32>
    %644 = vector.extract_strided_slice %633 {offsets = [0, 16], sizes = [2, 16], strides = [1, 1]} : vector<2x48xf32> to vector<2x16xf32>
    %645 = arith.addf %643, %644 : vector<2x16xf32>
    %646 = arith.negf %645 : vector<2x16xf32>
    %647 = math.exp %646 : vector<2x16xf32>
    %cst_178 = arith.constant 1.000000e+00 : f32
    %648 = vector.broadcast %cst_178 : f32 to vector<2x16xf32>
    %649 = arith.addf %648, %647 : vector<2x16xf32>
    %650 = arith.divf %648, %649 : vector<2x16xf32>
    %651 = vector.extract_strided_slice %634 {offsets = [0, 32], sizes = [2, 16], strides = [1, 1]} : vector<2x48xf32> to vector<2x16xf32>
    %652 = vector.extract_strided_slice %633 {offsets = [0, 32], sizes = [2, 16], strides = [1, 1]} : vector<2x48xf32> to vector<2x16xf32>
    %653 = arith.mulf %642, %652 : vector<2x16xf32>
    %654 = arith.addf %651, %653 : vector<2x16xf32>
    %655 = math.tanh %654 : vector<2x16xf32>
    %cst_179 = arith.constant 1.000000e+00 : f32
    %656 = vector.broadcast %cst_179 : f32 to vector<2x16xf32>
    %657 = arith.subf %656, %650 : vector<2x16xf32>
    %658 = arith.mulf %657, %655 : vector<2x16xf32>
    %659 = arith.mulf %650, %629 : vector<2x16xf32>
    %660 = arith.addf %658, %659 : vector<2x16xf32>
    %c4_180 = arith.constant 4 : index
    %c0_181 = arith.constant 0 : index
    %661 = vector.load %arg25[%c4_180, %c0_181] : memref<16x16xf32, #tpu.memory_space<vmem>>, vector<2x16xf32>
    tpu.vector_store %arg25[%c4_180, %c0_181], %660 {strides = array<i32>} : memref<16x16xf32, #tpu.memory_space<vmem>>, vector<2x16xf32>,
    %cst_182 = arith.constant dense<0.000000e+00> : vector<2x48xf32>
    %662 = tpu.matmul %660, %565, %cst_182 {dimension_numbers = #tpu.dot_dimension_numbers<[1], [0], [0], [1], [0, 0, 1, 1], [], []>} : vector<2x16xf32>, vector<16x48xf32>, vector<2x48xf32> -> vector<2x48xf32>
    %663 = vector.broadcast %567 : vector<1x48xf32> to vector<2x48xf32>
    %664 = arith.addf %662, %663 : vector<2x48xf32>
    %665 = vector.extract_strided_slice %563 {offsets = [6, 0], sizes = [2, 48], strides = [1, 1]} : vector<16x48xf32> to vector<2x48xf32>
    %666 = vector.extract_strided_slice %665 {offsets = [0, 0], sizes = [2, 16], strides = [1, 1]} : vector<2x48xf32> to vector<2x16xf32>
    %667 = vector.extract_strided_slice %664 {offsets = [0, 0], sizes = [2, 16], strides = [1, 1]} : vector<2x48xf32> to vector<2x16xf32>
    %668 = arith.addf %666, %667 : vector<2x16xf32>
    %669 = arith.negf %668 : vector<2x16xf32>
    %670 = math.exp %669 : vector<2x16xf32>
    %cst_183 = arith.constant 1.000000e+00 : f32
    %671 = vector.broadcast %cst_183 : f32 to vector<2x16xf32>
    %672 = arith.addf %671, %670 : vector<2x16xf32>
    %673 = arith.divf %671, %672 : vector<2x16xf32>
    %674 = vector.extract_strided_slice %665 {offsets = [0, 16], sizes = [2, 16], strides = [1, 1]} : vector<2x48xf32> to vector<2x16xf32>
    %675 = vector.extract_strided_slice %664 {offsets = [0, 16], sizes = [2, 16], strides = [1, 1]} : vector<2x48xf32> to vector<2x16xf32>
    %676 = arith.addf %674, %675 : vector<2x16xf32>
    %677 = arith.negf %676 : vector<2x16xf32>
    %678 = math.exp %677 : vector<2x16xf32>
    %cst_184 = arith.constant 1.000000e+00 : f32
    %679 = vector.broadcast %cst_184 : f32 to vector<2x16xf32>
    %680 = arith.addf %679, %678 : vector<2x16xf32>
    %681 = arith.divf %679, %680 : vector<2x16xf32>
    %682 = vector.extract_strided_slice %665 {offsets = [0, 32], sizes = [2, 16], strides = [1, 1]} : vector<2x48xf32> to vector<2x16xf32>
    %683 = vector.extract_strided_slice %664 {offsets = [0, 32], sizes = [2, 16], strides = [1, 1]} : vector<2x48xf32> to vector<2x16xf32>
    %684 = arith.mulf %673, %683 : vector<2x16xf32>
    %685 = arith.addf %682, %684 : vector<2x16xf32>
    %686 = math.tanh %685 : vector<2x16xf32>
    %cst_185 = arith.constant 1.000000e+00 : f32
    %687 = vector.broadcast %cst_185 : f32 to vector<2x16xf32>
    %688 = arith.subf %687, %681 : vector<2x16xf32>
    %689 = arith.mulf %688, %686 : vector<2x16xf32>
    %690 = arith.mulf %681, %660 : vector<2x16xf32>
    %691 = arith.addf %689, %690 : vector<2x16xf32>
    %c6_186 = arith.constant 6 : index
    %c0_187 = arith.constant 0 : index
    %692 = vector.load %arg25[%c6_186, %c0_187] : memref<16x16xf32, #tpu.memory_space<vmem>>, vector<2x16xf32>
    tpu.vector_store %arg25[%c6_186, %c0_187], %691 {strides = array<i32>} : memref<16x16xf32, #tpu.memory_space<vmem>>, vector<2x16xf32>,
    %cst_188 = arith.constant dense<0.000000e+00> : vector<2x48xf32>
    %693 = tpu.matmul %691, %565, %cst_188 {dimension_numbers = #tpu.dot_dimension_numbers<[1], [0], [0], [1], [0, 0, 1, 1], [], []>} : vector<2x16xf32>, vector<16x48xf32>, vector<2x48xf32> -> vector<2x48xf32>
    %694 = vector.broadcast %567 : vector<1x48xf32> to vector<2x48xf32>
    %695 = arith.addf %693, %694 : vector<2x48xf32>
    %696 = vector.extract_strided_slice %563 {offsets = [8, 0], sizes = [2, 48], strides = [1, 1]} : vector<16x48xf32> to vector<2x48xf32>
    %697 = vector.extract_strided_slice %696 {offsets = [0, 0], sizes = [2, 16], strides = [1, 1]} : vector<2x48xf32> to vector<2x16xf32>
    %698 = vector.extract_strided_slice %695 {offsets = [0, 0], sizes = [2, 16], strides = [1, 1]} : vector<2x48xf32> to vector<2x16xf32>
    %699 = arith.addf %697, %698 : vector<2x16xf32>
    %700 = arith.negf %699 : vector<2x16xf32>
    %701 = math.exp %700 : vector<2x16xf32>
    %cst_189 = arith.constant 1.000000e+00 : f32
    %702 = vector.broadcast %cst_189 : f32 to vector<2x16xf32>
    %703 = arith.addf %702, %701 : vector<2x16xf32>
    %704 = arith.divf %702, %703 : vector<2x16xf32>
    %705 = vector.extract_strided_slice %696 {offsets = [0, 16], sizes = [2, 16], strides = [1, 1]} : vector<2x48xf32> to vector<2x16xf32>
    %706 = vector.extract_strided_slice %695 {offsets = [0, 16], sizes = [2, 16], strides = [1, 1]} : vector<2x48xf32> to vector<2x16xf32>
    %707 = arith.addf %705, %706 : vector<2x16xf32>
    %708 = arith.negf %707 : vector<2x16xf32>
    %709 = math.exp %708 : vector<2x16xf32>
    %cst_190 = arith.constant 1.000000e+00 : f32
    %710 = vector.broadcast %cst_190 : f32 to vector<2x16xf32>
    %711 = arith.addf %710, %709 : vector<2x16xf32>
    %712 = arith.divf %710, %711 : vector<2x16xf32>
    %713 = vector.extract_strided_slice %696 {offsets = [0, 32], sizes = [2, 16], strides = [1, 1]} : vector<2x48xf32> to vector<2x16xf32>
    %714 = vector.extract_strided_slice %695 {offsets = [0, 32], sizes = [2, 16], strides = [1, 1]} : vector<2x48xf32> to vector<2x16xf32>
    %715 = arith.mulf %704, %714 : vector<2x16xf32>
    %716 = arith.addf %713, %715 : vector<2x16xf32>
    %717 = math.tanh %716 : vector<2x16xf32>
    %cst_191 = arith.constant 1.000000e+00 : f32
    %718 = vector.broadcast %cst_191 : f32 to vector<2x16xf32>
    %719 = arith.subf %718, %712 : vector<2x16xf32>
    %720 = arith.mulf %719, %717 : vector<2x16xf32>
    %721 = arith.mulf %712, %691 : vector<2x16xf32>
    %722 = arith.addf %720, %721 : vector<2x16xf32>
    %c8_192 = arith.constant 8 : index
    %c0_193 = arith.constant 0 : index
    %723 = vector.load %arg25[%c8_192, %c0_193] : memref<16x16xf32, #tpu.memory_space<vmem>>, vector<2x16xf32>
    tpu.vector_store %arg25[%c8_192, %c0_193], %722 {strides = array<i32>} : memref<16x16xf32, #tpu.memory_space<vmem>>, vector<2x16xf32>,
    %cst_194 = arith.constant dense<0.000000e+00> : vector<2x48xf32>
    %724 = tpu.matmul %722, %565, %cst_194 {dimension_numbers = #tpu.dot_dimension_numbers<[1], [0], [0], [1], [0, 0, 1, 1], [], []>} : vector<2x16xf32>, vector<16x48xf32>, vector<2x48xf32> -> vector<2x48xf32>
    %725 = vector.broadcast %567 : vector<1x48xf32> to vector<2x48xf32>
    %726 = arith.addf %724, %725 : vector<2x48xf32>
    %727 = vector.extract_strided_slice %563 {offsets = [10, 0], sizes = [2, 48], strides = [1, 1]} : vector<16x48xf32> to vector<2x48xf32>
    %728 = vector.extract_strided_slice %727 {offsets = [0, 0], sizes = [2, 16], strides = [1, 1]} : vector<2x48xf32> to vector<2x16xf32>
    %729 = vector.extract_strided_slice %726 {offsets = [0, 0], sizes = [2, 16], strides = [1, 1]} : vector<2x48xf32> to vector<2x16xf32>
    %730 = arith.addf %728, %729 : vector<2x16xf32>
    %731 = arith.negf %730 : vector<2x16xf32>
    %732 = math.exp %731 : vector<2x16xf32>
    %cst_195 = arith.constant 1.000000e+00 : f32
    %733 = vector.broadcast %cst_195 : f32 to vector<2x16xf32>
    %734 = arith.addf %733, %732 : vector<2x16xf32>
    %735 = arith.divf %733, %734 : vector<2x16xf32>
    %736 = vector.extract_strided_slice %727 {offsets = [0, 16], sizes = [2, 16], strides = [1, 1]} : vector<2x48xf32> to vector<2x16xf32>
    %737 = vector.extract_strided_slice %726 {offsets = [0, 16], sizes = [2, 16], strides = [1, 1]} : vector<2x48xf32> to vector<2x16xf32>
    %738 = arith.addf %736, %737 : vector<2x16xf32>
    %739 = arith.negf %738 : vector<2x16xf32>
    %740 = math.exp %739 : vector<2x16xf32>
    %cst_196 = arith.constant 1.000000e+00 : f32
    %741 = vector.broadcast %cst_196 : f32 to vector<2x16xf32>
    %742 = arith.addf %741, %740 : vector<2x16xf32>
    %743 = arith.divf %741, %742 : vector<2x16xf32>
    %744 = vector.extract_strided_slice %727 {offsets = [0, 32], sizes = [2, 16], strides = [1, 1]} : vector<2x48xf32> to vector<2x16xf32>
    %745 = vector.extract_strided_slice %726 {offsets = [0, 32], sizes = [2, 16], strides = [1, 1]} : vector<2x48xf32> to vector<2x16xf32>
    %746 = arith.mulf %735, %745 : vector<2x16xf32>
    %747 = arith.addf %744, %746 : vector<2x16xf32>
    %748 = math.tanh %747 : vector<2x16xf32>
    %cst_197 = arith.constant 1.000000e+00 : f32
    %749 = vector.broadcast %cst_197 : f32 to vector<2x16xf32>
    %750 = arith.subf %749, %743 : vector<2x16xf32>
    %751 = arith.mulf %750, %748 : vector<2x16xf32>
    %752 = arith.mulf %743, %722 : vector<2x16xf32>
    %753 = arith.addf %751, %752 : vector<2x16xf32>
    %c10_198 = arith.constant 10 : index
    %c0_199 = arith.constant 0 : index
    %754 = vector.load %arg25[%c10_198, %c0_199] : memref<16x16xf32, #tpu.memory_space<vmem>>, vector<2x16xf32>
    tpu.vector_store %arg25[%c10_198, %c0_199], %753 {strides = array<i32>} : memref<16x16xf32, #tpu.memory_space<vmem>>, vector<2x16xf32>,
    %cst_200 = arith.constant dense<0.000000e+00> : vector<2x48xf32>
    %755 = tpu.matmul %753, %565, %cst_200 {dimension_numbers = #tpu.dot_dimension_numbers<[1], [0], [0], [1], [0, 0, 1, 1], [], []>} : vector<2x16xf32>, vector<16x48xf32>, vector<2x48xf32> -> vector<2x48xf32>
    %756 = vector.broadcast %567 : vector<1x48xf32> to vector<2x48xf32>
    %757 = arith.addf %755, %756 : vector<2x48xf32>
    %758 = vector.extract_strided_slice %563 {offsets = [12, 0], sizes = [2, 48], strides = [1, 1]} : vector<16x48xf32> to vector<2x48xf32>
    %759 = vector.extract_strided_slice %758 {offsets = [0, 0], sizes = [2, 16], strides = [1, 1]} : vector<2x48xf32> to vector<2x16xf32>
    %760 = vector.extract_strided_slice %757 {offsets = [0, 0], sizes = [2, 16], strides = [1, 1]} : vector<2x48xf32> to vector<2x16xf32>
    %761 = arith.addf %759, %760 : vector<2x16xf32>
    %762 = arith.negf %761 : vector<2x16xf32>
    %763 = math.exp %762 : vector<2x16xf32>
    %cst_201 = arith.constant 1.000000e+00 : f32
    %764 = vector.broadcast %cst_201 : f32 to vector<2x16xf32>
    %765 = arith.addf %764, %763 : vector<2x16xf32>
    %766 = arith.divf %764, %765 : vector<2x16xf32>
    %767 = vector.extract_strided_slice %758 {offsets = [0, 16], sizes = [2, 16], strides = [1, 1]} : vector<2x48xf32> to vector<2x16xf32>
    %768 = vector.extract_strided_slice %757 {offsets = [0, 16], sizes = [2, 16], strides = [1, 1]} : vector<2x48xf32> to vector<2x16xf32>
    %769 = arith.addf %767, %768 : vector<2x16xf32>
    %770 = arith.negf %769 : vector<2x16xf32>
    %771 = math.exp %770 : vector<2x16xf32>
    %cst_202 = arith.constant 1.000000e+00 : f32
    %772 = vector.broadcast %cst_202 : f32 to vector<2x16xf32>
    %773 = arith.addf %772, %771 : vector<2x16xf32>
    %774 = arith.divf %772, %773 : vector<2x16xf32>
    %775 = vector.extract_strided_slice %758 {offsets = [0, 32], sizes = [2, 16], strides = [1, 1]} : vector<2x48xf32> to vector<2x16xf32>
    %776 = vector.extract_strided_slice %757 {offsets = [0, 32], sizes = [2, 16], strides = [1, 1]} : vector<2x48xf32> to vector<2x16xf32>
    %777 = arith.mulf %766, %776 : vector<2x16xf32>
    %778 = arith.addf %775, %777 : vector<2x16xf32>
    %779 = math.tanh %778 : vector<2x16xf32>
    %cst_203 = arith.constant 1.000000e+00 : f32
    %780 = vector.broadcast %cst_203 : f32 to vector<2x16xf32>
    %781 = arith.subf %780, %774 : vector<2x16xf32>
    %782 = arith.mulf %781, %779 : vector<2x16xf32>
    %783 = arith.mulf %774, %753 : vector<2x16xf32>
    %784 = arith.addf %782, %783 : vector<2x16xf32>
    %c12_204 = arith.constant 12 : index
    %c0_205 = arith.constant 0 : index
    %785 = vector.load %arg25[%c12_204, %c0_205] : memref<16x16xf32, #tpu.memory_space<vmem>>, vector<2x16xf32>
    tpu.vector_store %arg25[%c12_204, %c0_205], %784 {strides = array<i32>} : memref<16x16xf32, #tpu.memory_space<vmem>>, vector<2x16xf32>,
    %cst_206 = arith.constant dense<0.000000e+00> : vector<2x48xf32>
    %786 = tpu.matmul %784, %565, %cst_206 {dimension_numbers = #tpu.dot_dimension_numbers<[1], [0], [0], [1], [0, 0, 1, 1], [], []>} : vector<2x16xf32>, vector<16x48xf32>, vector<2x48xf32> -> vector<2x48xf32>
    %787 = vector.broadcast %567 : vector<1x48xf32> to vector<2x48xf32>
    %788 = arith.addf %786, %787 : vector<2x48xf32>
    %789 = vector.extract_strided_slice %563 {offsets = [14, 0], sizes = [2, 48], strides = [1, 1]} : vector<16x48xf32> to vector<2x48xf32>
    %790 = vector.extract_strided_slice %789 {offsets = [0, 0], sizes = [2, 16], strides = [1, 1]} : vector<2x48xf32> to vector<2x16xf32>
    %791 = vector.extract_strided_slice %788 {offsets = [0, 0], sizes = [2, 16], strides = [1, 1]} : vector<2x48xf32> to vector<2x16xf32>
    %792 = arith.addf %790, %791 : vector<2x16xf32>
    %793 = arith.negf %792 : vector<2x16xf32>
    %794 = math.exp %793 : vector<2x16xf32>
    %cst_207 = arith.constant 1.000000e+00 : f32
    %795 = vector.broadcast %cst_207 : f32 to vector<2x16xf32>
    %796 = arith.addf %795, %794 : vector<2x16xf32>
    %797 = arith.divf %795, %796 : vector<2x16xf32>
    %798 = vector.extract_strided_slice %789 {offsets = [0, 16], sizes = [2, 16], strides = [1, 1]} : vector<2x48xf32> to vector<2x16xf32>
    %799 = vector.extract_strided_slice %788 {offsets = [0, 16], sizes = [2, 16], strides = [1, 1]} : vector<2x48xf32> to vector<2x16xf32>
    %800 = arith.addf %798, %799 : vector<2x16xf32>
    %801 = arith.negf %800 : vector<2x16xf32>
    %802 = math.exp %801 : vector<2x16xf32>
    %cst_208 = arith.constant 1.000000e+00 : f32
    %803 = vector.broadcast %cst_208 : f32 to vector<2x16xf32>
    %804 = arith.addf %803, %802 : vector<2x16xf32>
    %805 = arith.divf %803, %804 : vector<2x16xf32>
    %806 = vector.extract_strided_slice %789 {offsets = [0, 32], sizes = [2, 16], strides = [1, 1]} : vector<2x48xf32> to vector<2x16xf32>
    %807 = vector.extract_strided_slice %788 {offsets = [0, 32], sizes = [2, 16], strides = [1, 1]} : vector<2x48xf32> to vector<2x16xf32>
    %808 = arith.mulf %797, %807 : vector<2x16xf32>
    %809 = arith.addf %806, %808 : vector<2x16xf32>
    %810 = math.tanh %809 : vector<2x16xf32>
    %cst_209 = arith.constant 1.000000e+00 : f32
    %811 = vector.broadcast %cst_209 : f32 to vector<2x16xf32>
    %812 = arith.subf %811, %805 : vector<2x16xf32>
    %813 = arith.mulf %812, %810 : vector<2x16xf32>
    %814 = arith.mulf %805, %784 : vector<2x16xf32>
    %815 = arith.addf %813, %814 : vector<2x16xf32>
    %c14_210 = arith.constant 14 : index
    %c0_211 = arith.constant 0 : index
    %816 = vector.load %arg25[%c14_210, %c0_211] : memref<16x16xf32, #tpu.memory_space<vmem>>, vector<2x16xf32>
    tpu.vector_store %arg25[%c14_210, %c0_211], %815 {strides = array<i32>} : memref<16x16xf32, #tpu.memory_space<vmem>>, vector<2x16xf32>,
    %c0_212 = arith.constant 0 : index
    %c0_213 = arith.constant 0 : index
    %817 = vector.load %arg25[%c0_212, %c0_213] : memref<16x16xf32, #tpu.memory_space<vmem>>, vector<16x16xf32>
    %c2_214 = arith.constant 2 : index
    %c0_215 = arith.constant 0 : index
    %c0_216 = arith.constant 0 : index
    %818 = vector.load %arg7[%c2_214, %c0_215, %c0_216] : memref<3x16x64xf32, #tpu.memory_space<vmem>>, vector<1x16x64xf32>
    %819 = vector.shape_cast %818 : vector<1x16x64xf32> to vector<16x64xf32>
    %cst_217 = arith.constant dense<0.000000e+00> : vector<16x64xf32>
    %820 = tpu.matmul %817, %819, %cst_217 {dimension_numbers = #tpu.dot_dimension_numbers<[1], [0], [0], [1], [0, 0, 1, 1], [], []>} : vector<16x16xf32>, vector<16x64xf32>, vector<16x64xf32> -> vector<16x64xf32>
    %c2_218 = arith.constant 2 : index
    %c0_219 = arith.constant 0 : index
    %c0_220 = arith.constant 0 : index
    %821 = vector.load %arg8[%c2_218, %c0_219, %c0_220] : memref<3x1x64xf32, #tpu.memory_space<vmem>>, vector<1x1x64xf32>
    %822 = vector.shape_cast %821 : vector<1x1x64xf32> to vector<1x64xf32>
    %823 = vector.broadcast %822 : vector<1x64xf32> to vector<16x64xf32>
    %824 = arith.addf %820, %823 : vector<16x64xf32>
    %cst_221 = arith.constant 0.000000e+00 : f32
    %825 = vector.broadcast %cst_221 : f32 to vector<16x64xf32>
    %826 = arith.maximumf %824, %825 : vector<16x64xf32>
    %c2_222 = arith.constant 2 : index
    %c0_223 = arith.constant 0 : index
    %c0_224 = arith.constant 0 : index
    %827 = vector.load %arg9[%c2_222, %c0_223, %c0_224] : memref<3x64x16xf32, #tpu.memory_space<vmem>>, vector<1x64x16xf32>
    %828 = vector.shape_cast %827 : vector<1x64x16xf32> to vector<64x16xf32>
    %cst_225 = arith.constant dense<0.000000e+00> : vector<16x16xf32>
    %829 = tpu.matmul %826, %828, %cst_225 {dimension_numbers = #tpu.dot_dimension_numbers<[1], [0], [0], [1], [0, 0, 1, 1], [], []>} : vector<16x64xf32>, vector<64x16xf32>, vector<16x16xf32> -> vector<16x16xf32>
    %830 = arith.addf %556, %829 : vector<16x16xf32>
    %c2_226 = arith.constant 2 : index
    %c0_227 = arith.constant 0 : index
    %c0_228 = arith.constant 0 : index
    %831 = vector.load %arg10[%c2_226, %c0_227, %c0_228] : memref<3x1x16xf32, #tpu.memory_space<vmem>>, vector<1x1x16xf32>
    %832 = vector.shape_cast %831 : vector<1x1x16xf32> to vector<1x16xf32>
    %833 = vector.broadcast %832 : vector<1x16xf32> to vector<16x16xf32>
    %834 = arith.addf %830, %833 : vector<16x16xf32>
    %c0_229 = arith.constant 0 : index
    %c0_230 = arith.constant 0 : index
    %835 = vector.load %arg2[%c0_229, %c0_230] : memref<16x16xf32, #tpu.memory_space<vmem>>, vector<16x16xf32>
    %cst_231 = arith.constant dense<0.000000e+00> : vector<16x16xf32>
    %836 = tpu.matmul %835, %834, %cst_231 {dimension_numbers = #tpu.dot_dimension_numbers<[1], [0], [0], [1], [0, 0, 1, 1], [], []>} : vector<16x16xf32>, vector<16x16xf32>, vector<16x16xf32> -> vector<16x16xf32>
    %837 = vector.extract_strided_slice %836 {offsets = [0, 0], sizes = [8, 16], strides = [1, 1]} : vector<16x16xf32> to vector<8x16xf32>
    %c0_232 = arith.constant 0 : index
    %c0_233 = arith.constant 0 : index
    %838 = vector.load %arg11[%c0_232, %c0_233] : memref<16x32xf32, #tpu.memory_space<vmem>>, vector<16x32xf32>
    %cst_234 = arith.constant dense<0.000000e+00> : vector<8x32xf32>
    %839 = tpu.matmul %837, %838, %cst_234 {dimension_numbers = #tpu.dot_dimension_numbers<[1], [0], [0], [1], [0, 0, 1, 1], [], []>} : vector<8x16xf32>, vector<16x32xf32>, vector<8x32xf32> -> vector<8x32xf32>
    %840 = vector.extract_strided_slice %839 {offsets = [0, 0], sizes = [8, 16], strides = [1, 1]} : vector<8x32xf32> to vector<8x16xf32>
    %841 = vector.extract_strided_slice %839 {offsets = [0, 16], sizes = [8, 16], strides = [1, 1]} : vector<8x32xf32> to vector<8x16xf32>
    %842 = tpu.concatenate %840, %841 in 0 : vector<8x16xf32>, vector<8x16xf32> -> vector<16x16xf32>
    %c0_235 = arith.constant 0 : index
    %c0_236 = arith.constant 0 : index
    %843 = vector.load %arg12[%c0_235, %c0_236] : memref<16x48xf32, #tpu.memory_space<vmem>>, vector<16x48xf32>
    %cst_237 = arith.constant dense<0.000000e+00> : vector<16x48xf32>
    %844 = tpu.matmul %842, %843, %cst_237 {dimension_numbers = #tpu.dot_dimension_numbers<[1], [0], [0], [1], [0, 0, 1, 1], [], []>} : vector<16x16xf32>, vector<16x48xf32>, vector<16x48xf32> -> vector<16x48xf32>
    %c0_238 = arith.constant 0 : index
    %c0_239 = arith.constant 0 : index
    %845 = vector.load %arg13[%c0_238, %c0_239] : memref<1x48xf32, #tpu.memory_space<vmem>>, vector<1x48xf32>
    %846 = vector.broadcast %845 : vector<1x48xf32> to vector<16x48xf32>
    %847 = arith.addf %844, %846 : vector<16x48xf32>
    %848 = vector.extract_strided_slice %847 {offsets = [0, 0], sizes = [16, 16], strides = [1, 1]} : vector<16x48xf32> to vector<16x16xf32>
    %cst_240 = arith.constant 5.000000e-01 : f32
    %849 = vector.broadcast %cst_240 : f32 to vector<16x16xf32>
    %850 = arith.mulf %848, %849 : vector<16x16xf32>
    %851 = vector.extract_strided_slice %847 {offsets = [0, 16], sizes = [16, 16], strides = [1, 1]} : vector<16x48xf32> to vector<16x16xf32>
    %852 = vector.extract_strided_slice %847 {offsets = [0, 32], sizes = [16, 16], strides = [1, 1]} : vector<16x48xf32> to vector<16x16xf32>
    %c0_241 = arith.constant 0 : index
    %c0_242 = arith.constant 0 : index
    %853 = vector.load %arg15[%c0_241, %c0_242] : memref<1x16xf32, #tpu.memory_space<vmem>>, vector<1x16xf32>
    %854 = vector.extract_strided_slice %850 {offsets = [0, 0], sizes = [16, 4], strides = [1, 1]} : vector<16x16xf32> to vector<16x4xf32>
    %855 = vector.extract_strided_slice %851 {offsets = [0, 0], sizes = [16, 4], strides = [1, 1]} : vector<16x16xf32> to vector<16x4xf32>
    %856 = vector.extract_strided_slice %852 {offsets = [0, 0], sizes = [16, 4], strides = [1, 1]} : vector<16x16xf32> to vector<16x4xf32>
    %cst_243 = arith.constant dense<0.000000e+00> : vector<16x16xf32>
    %857 = tpu.matmul %854, %855, %cst_243 {dimension_numbers = #tpu.dot_dimension_numbers<[1], [1], [0], [0], [0, 0, 1, 0], [], []>} : vector<16x4xf32>, vector<16x4xf32>, vector<16x16xf32> -> vector<16x16xf32>
    %cst_244 = arith.constant dense<0xFF800000> : vector<16xf32>
    %858 = vector.multi_reduction <maximumf>, %857, %cst_244 [1] : vector<16x16xf32> to vector<16xf32>
    %859 = vector.shape_cast %858 : vector<16xf32> to vector<16x1xf32>
    %860 = vector.broadcast %859 : vector<16x1xf32> to vector<16x16xf32>
    %861 = arith.subf %857, %860 : vector<16x16xf32>
    %862 = math.exp %861 : vector<16x16xf32>
    %cst_245 = arith.constant dense<0.000000e+00> : vector<16xf32>
    %863 = vector.multi_reduction <add>, %862, %cst_245 [1] : vector<16x16xf32> to vector<16xf32>
    %864 = vector.shape_cast %863 : vector<16xf32> to vector<16x1xf32>
    %865 = tpu.reciprocal %864 {approx = true} : vector<16x1xf32> -> vector<16x1xf32>
    %866 = vector.broadcast %865 : vector<16x1xf32> to vector<16x16xf32>
    %867 = arith.mulf %862, %866 : vector<16x16xf32>
    %cst_246 = arith.constant dense<0.000000e+00> : vector<16x4xf32>
    %868 = tpu.matmul %867, %856, %cst_246 {dimension_numbers = #tpu.dot_dimension_numbers<[1], [0], [0], [1], [0, 0, 1, 1], [], []>} : vector<16x16xf32>, vector<16x4xf32>, vector<16x4xf32> -> vector<16x4xf32>
    %c0_247 = arith.constant 0 : index
    %c0_248 = arith.constant 0 : index
    %c0_249 = arith.constant 0 : index
    %869 = vector.load %arg14[%c0_247, %c0_248, %c0_249] : memref<4x4x16xf32, #tpu.memory_space<vmem>>, vector<1x4x16xf32>
    %870 = vector.shape_cast %869 : vector<1x4x16xf32> to vector<4x16xf32>
    %cst_250 = arith.constant dense<0.000000e+00> : vector<16x16xf32>
    %871 = tpu.matmul %868, %870, %cst_250 {dimension_numbers = #tpu.dot_dimension_numbers<[1], [0], [0], [1], [0, 0, 1, 1], [], []>} : vector<16x4xf32>, vector<4x16xf32>, vector<16x16xf32> -> vector<16x16xf32>
    %872 = vector.broadcast %853 : vector<1x16xf32> to vector<16x16xf32>
    %873 = arith.addf %872, %871 : vector<16x16xf32>
    %874 = vector.extract_strided_slice %850 {offsets = [0, 4], sizes = [16, 4], strides = [1, 1]} : vector<16x16xf32> to vector<16x4xf32>
    %875 = vector.extract_strided_slice %851 {offsets = [0, 4], sizes = [16, 4], strides = [1, 1]} : vector<16x16xf32> to vector<16x4xf32>
    %876 = vector.extract_strided_slice %852 {offsets = [0, 4], sizes = [16, 4], strides = [1, 1]} : vector<16x16xf32> to vector<16x4xf32>
    %cst_251 = arith.constant dense<0.000000e+00> : vector<16x16xf32>
    %877 = tpu.matmul %874, %875, %cst_251 {dimension_numbers = #tpu.dot_dimension_numbers<[1], [1], [0], [0], [0, 0, 1, 0], [], []>} : vector<16x4xf32>, vector<16x4xf32>, vector<16x16xf32> -> vector<16x16xf32>
    %cst_252 = arith.constant dense<0xFF800000> : vector<16xf32>
    %878 = vector.multi_reduction <maximumf>, %877, %cst_252 [1] : vector<16x16xf32> to vector<16xf32>
    %879 = vector.shape_cast %878 : vector<16xf32> to vector<16x1xf32>
    %880 = vector.broadcast %879 : vector<16x1xf32> to vector<16x16xf32>
    %881 = arith.subf %877, %880 : vector<16x16xf32>
    %882 = math.exp %881 : vector<16x16xf32>
    %cst_253 = arith.constant dense<0.000000e+00> : vector<16xf32>
    %883 = vector.multi_reduction <add>, %882, %cst_253 [1] : vector<16x16xf32> to vector<16xf32>
    %884 = vector.shape_cast %883 : vector<16xf32> to vector<16x1xf32>
    %885 = tpu.reciprocal %884 {approx = true} : vector<16x1xf32> -> vector<16x1xf32>
    %886 = vector.broadcast %885 : vector<16x1xf32> to vector<16x16xf32>
    %887 = arith.mulf %882, %886 : vector<16x16xf32>
    %cst_254 = arith.constant dense<0.000000e+00> : vector<16x4xf32>
    %888 = tpu.matmul %887, %876, %cst_254 {dimension_numbers = #tpu.dot_dimension_numbers<[1], [0], [0], [1], [0, 0, 1, 1], [], []>} : vector<16x16xf32>, vector<16x4xf32>, vector<16x4xf32> -> vector<16x4xf32>
    %c1_255 = arith.constant 1 : index
    %c0_256 = arith.constant 0 : index
    %c0_257 = arith.constant 0 : index
    %889 = vector.load %arg14[%c1_255, %c0_256, %c0_257] : memref<4x4x16xf32, #tpu.memory_space<vmem>>, vector<1x4x16xf32>
    %890 = vector.shape_cast %889 : vector<1x4x16xf32> to vector<4x16xf32>
    %cst_258 = arith.constant dense<0.000000e+00> : vector<16x16xf32>
    %891 = tpu.matmul %888, %890, %cst_258 {dimension_numbers = #tpu.dot_dimension_numbers<[1], [0], [0], [1], [0, 0, 1, 1], [], []>} : vector<16x4xf32>, vector<4x16xf32>, vector<16x16xf32> -> vector<16x16xf32>
    %892 = arith.addf %873, %891 : vector<16x16xf32>
    %893 = vector.extract_strided_slice %850 {offsets = [0, 8], sizes = [16, 4], strides = [1, 1]} : vector<16x16xf32> to vector<16x4xf32>
    %894 = vector.extract_strided_slice %851 {offsets = [0, 8], sizes = [16, 4], strides = [1, 1]} : vector<16x16xf32> to vector<16x4xf32>
    %895 = vector.extract_strided_slice %852 {offsets = [0, 8], sizes = [16, 4], strides = [1, 1]} : vector<16x16xf32> to vector<16x4xf32>
    %cst_259 = arith.constant dense<0.000000e+00> : vector<16x16xf32>
    %896 = tpu.matmul %893, %894, %cst_259 {dimension_numbers = #tpu.dot_dimension_numbers<[1], [1], [0], [0], [0, 0, 1, 0], [], []>} : vector<16x4xf32>, vector<16x4xf32>, vector<16x16xf32> -> vector<16x16xf32>
    %cst_260 = arith.constant dense<0xFF800000> : vector<16xf32>
    %897 = vector.multi_reduction <maximumf>, %896, %cst_260 [1] : vector<16x16xf32> to vector<16xf32>
    %898 = vector.shape_cast %897 : vector<16xf32> to vector<16x1xf32>
    %899 = vector.broadcast %898 : vector<16x1xf32> to vector<16x16xf32>
    %900 = arith.subf %896, %899 : vector<16x16xf32>
    %901 = math.exp %900 : vector<16x16xf32>
    %cst_261 = arith.constant dense<0.000000e+00> : vector<16xf32>
    %902 = vector.multi_reduction <add>, %901, %cst_261 [1] : vector<16x16xf32> to vector<16xf32>
    %903 = vector.shape_cast %902 : vector<16xf32> to vector<16x1xf32>
    %904 = tpu.reciprocal %903 {approx = true} : vector<16x1xf32> -> vector<16x1xf32>
    %905 = vector.broadcast %904 : vector<16x1xf32> to vector<16x16xf32>
    %906 = arith.mulf %901, %905 : vector<16x16xf32>
    %cst_262 = arith.constant dense<0.000000e+00> : vector<16x4xf32>
    %907 = tpu.matmul %906, %895, %cst_262 {dimension_numbers = #tpu.dot_dimension_numbers<[1], [0], [0], [1], [0, 0, 1, 1], [], []>} : vector<16x16xf32>, vector<16x4xf32>, vector<16x4xf32> -> vector<16x4xf32>
    %c2_263 = arith.constant 2 : index
    %c0_264 = arith.constant 0 : index
    %c0_265 = arith.constant 0 : index
    %908 = vector.load %arg14[%c2_263, %c0_264, %c0_265] : memref<4x4x16xf32, #tpu.memory_space<vmem>>, vector<1x4x16xf32>
    %909 = vector.shape_cast %908 : vector<1x4x16xf32> to vector<4x16xf32>
    %cst_266 = arith.constant dense<0.000000e+00> : vector<16x16xf32>
    %910 = tpu.matmul %907, %909, %cst_266 {dimension_numbers = #tpu.dot_dimension_numbers<[1], [0], [0], [1], [0, 0, 1, 1], [], []>} : vector<16x4xf32>, vector<4x16xf32>, vector<16x16xf32> -> vector<16x16xf32>
    %911 = arith.addf %892, %910 : vector<16x16xf32>
    %912 = vector.extract_strided_slice %850 {offsets = [0, 12], sizes = [16, 4], strides = [1, 1]} : vector<16x16xf32> to vector<16x4xf32>
    %913 = vector.extract_strided_slice %851 {offsets = [0, 12], sizes = [16, 4], strides = [1, 1]} : vector<16x16xf32> to vector<16x4xf32>
    %914 = vector.extract_strided_slice %852 {offsets = [0, 12], sizes = [16, 4], strides = [1, 1]} : vector<16x16xf32> to vector<16x4xf32>
    %cst_267 = arith.constant dense<0.000000e+00> : vector<16x16xf32>
    %915 = tpu.matmul %912, %913, %cst_267 {dimension_numbers = #tpu.dot_dimension_numbers<[1], [1], [0], [0], [0, 0, 1, 0], [], []>} : vector<16x4xf32>, vector<16x4xf32>, vector<16x16xf32> -> vector<16x16xf32>
    %cst_268 = arith.constant dense<0xFF800000> : vector<16xf32>
    %916 = vector.multi_reduction <maximumf>, %915, %cst_268 [1] : vector<16x16xf32> to vector<16xf32>
    %917 = vector.shape_cast %916 : vector<16xf32> to vector<16x1xf32>
    %918 = vector.broadcast %917 : vector<16x1xf32> to vector<16x16xf32>
    %919 = arith.subf %915, %918 : vector<16x16xf32>
    %920 = math.exp %919 : vector<16x16xf32>
    %cst_269 = arith.constant dense<0.000000e+00> : vector<16xf32>
    %921 = vector.multi_reduction <add>, %920, %cst_269 [1] : vector<16x16xf32> to vector<16xf32>
    %922 = vector.shape_cast %921 : vector<16xf32> to vector<16x1xf32>
    %923 = tpu.reciprocal %922 {approx = true} : vector<16x1xf32> -> vector<16x1xf32>
    %924 = vector.broadcast %923 : vector<16x1xf32> to vector<16x16xf32>
    %925 = arith.mulf %920, %924 : vector<16x16xf32>
    %cst_270 = arith.constant dense<0.000000e+00> : vector<16x4xf32>
    %926 = tpu.matmul %925, %914, %cst_270 {dimension_numbers = #tpu.dot_dimension_numbers<[1], [0], [0], [1], [0, 0, 1, 1], [], []>} : vector<16x16xf32>, vector<16x4xf32>, vector<16x4xf32> -> vector<16x4xf32>
    %c3 = arith.constant 3 : index
    %c0_271 = arith.constant 0 : index
    %c0_272 = arith.constant 0 : index
    %927 = vector.load %arg14[%c3, %c0_271, %c0_272] : memref<4x4x16xf32, #tpu.memory_space<vmem>>, vector<1x4x16xf32>
    %928 = vector.shape_cast %927 : vector<1x4x16xf32> to vector<4x16xf32>
    %cst_273 = arith.constant dense<0.000000e+00> : vector<16x16xf32>
    %929 = tpu.matmul %926, %928, %cst_273 {dimension_numbers = #tpu.dot_dimension_numbers<[1], [0], [0], [1], [0, 0, 1, 1], [], []>} : vector<16x4xf32>, vector<4x16xf32>, vector<16x16xf32> -> vector<16x16xf32>
    %930 = arith.addf %911, %929 : vector<16x16xf32>
    %931 = arith.addf %842, %930 : vector<16x16xf32>
    %c0_274 = arith.constant 0 : index
    %c0_275 = arith.constant 0 : index
    %932 = vector.load %arg20[%c0_274, %c0_275] : memref<1x16xf32, #tpu.memory_space<vmem>>, vector<1x16xf32>
    %c0_276 = arith.constant 0 : index
    %c0_277 = arith.constant 0 : index
    %933 = vector.load %arg21[%c0_276, %c0_277] : memref<1x16xf32, #tpu.memory_space<vmem>>, vector<1x16xf32>
    %cst_278 = arith.constant dense<0.000000e+00> : vector<16xf32>
    %934 = vector.multi_reduction <add>, %931, %cst_278 [1] : vector<16x16xf32> to vector<16xf32>
    %935 = vector.shape_cast %934 : vector<16xf32> to vector<16x1xf32>
    %cst_279 = arith.constant 1.600000e+01 : f32
    %936 = vector.broadcast %cst_279 : f32 to vector<16x1xf32>
    %937 = arith.divf %935, %936 : vector<16x1xf32>
    %938 = vector.broadcast %937 : vector<16x1xf32> to vector<16x16xf32>
    %939 = arith.subf %931, %938 : vector<16x16xf32>
    %940 = arith.mulf %939, %939 : vector<16x16xf32>
    %cst_280 = arith.constant dense<0.000000e+00> : vector<16xf32>
    %941 = vector.multi_reduction <add>, %940, %cst_280 [1] : vector<16x16xf32> to vector<16xf32>
    %942 = vector.shape_cast %941 : vector<16xf32> to vector<16x1xf32>
    %cst_281 = arith.constant 1.600000e+01 : f32
    %943 = vector.broadcast %cst_281 : f32 to vector<16x1xf32>
    %944 = arith.divf %942, %943 : vector<16x1xf32>
    %945 = vector.broadcast %937 : vector<16x1xf32> to vector<16x16xf32>
    %946 = arith.subf %931, %945 : vector<16x16xf32>
    %cst_282 = arith.constant 9.99999974E-6 : f32
    %947 = vector.broadcast %cst_282 : f32 to vector<16x1xf32>
    %948 = arith.addf %944, %947 : vector<16x1xf32>
    %949 = math.rsqrt %948 : vector<16x1xf32>
    %950 = vector.broadcast %949 : vector<16x1xf32> to vector<16x16xf32>
    %951 = arith.mulf %946, %950 : vector<16x16xf32>
    %952 = vector.broadcast %932 : vector<1x16xf32> to vector<16x16xf32>
    %953 = arith.mulf %951, %952 : vector<16x16xf32>
    %954 = vector.broadcast %933 : vector<1x16xf32> to vector<16x16xf32>
    %955 = arith.addf %953, %954 : vector<16x16xf32>
    %c0_283 = arith.constant 0 : index
    %c0_284 = arith.constant 0 : index
    %956 = vector.load %arg16[%c0_283, %c0_284] : memref<16x64xf32, #tpu.memory_space<vmem>>, vector<16x64xf32>
    %cst_285 = arith.constant dense<0.000000e+00> : vector<16x64xf32>
    %957 = tpu.matmul %955, %956, %cst_285 {dimension_numbers = #tpu.dot_dimension_numbers<[1], [0], [0], [1], [0, 0, 1, 1], [], []>} : vector<16x16xf32>, vector<16x64xf32>, vector<16x64xf32> -> vector<16x64xf32>
    %c0_286 = arith.constant 0 : index
    %c0_287 = arith.constant 0 : index
    %958 = vector.load %arg17[%c0_286, %c0_287] : memref<1x64xf32, #tpu.memory_space<vmem>>, vector<1x64xf32>
    %959 = vector.broadcast %958 : vector<1x64xf32> to vector<16x64xf32>
    %960 = arith.addf %957, %959 : vector<16x64xf32>
    %cst_288 = arith.constant 0.000000e+00 : f32
    %961 = vector.broadcast %cst_288 : f32 to vector<16x64xf32>
    %962 = arith.maximumf %960, %961 : vector<16x64xf32>
    %c0_289 = arith.constant 0 : index
    %c0_290 = arith.constant 0 : index
    %963 = vector.load %arg18[%c0_289, %c0_290] : memref<64x16xf32, #tpu.memory_space<vmem>>, vector<64x16xf32>
    %cst_291 = arith.constant dense<0.000000e+00> : vector<16x16xf32>
    %964 = tpu.matmul %962, %963, %cst_291 {dimension_numbers = #tpu.dot_dimension_numbers<[1], [0], [0], [1], [0, 0, 1, 1], [], []>} : vector<16x64xf32>, vector<64x16xf32>, vector<16x16xf32> -> vector<16x16xf32>
    %c0_292 = arith.constant 0 : index
    %c0_293 = arith.constant 0 : index
    %965 = vector.load %arg19[%c0_292, %c0_293] : memref<1x16xf32, #tpu.memory_space<vmem>>, vector<1x16xf32>
    %966 = vector.broadcast %965 : vector<1x16xf32> to vector<16x16xf32>
    %967 = arith.addf %964, %966 : vector<16x16xf32>
    %968 = arith.addf %955, %967 : vector<16x16xf32>
    %c0_294 = arith.constant 0 : index
    %c0_295 = arith.constant 0 : index
    %969 = vector.load %arg22[%c0_294, %c0_295] : memref<1x16xf32, #tpu.memory_space<vmem>>, vector<1x16xf32>
    %c0_296 = arith.constant 0 : index
    %c0_297 = arith.constant 0 : index
    %970 = vector.load %arg23[%c0_296, %c0_297] : memref<1x16xf32, #tpu.memory_space<vmem>>, vector<1x16xf32>
    %cst_298 = arith.constant dense<0.000000e+00> : vector<16xf32>
    %971 = vector.multi_reduction <add>, %968, %cst_298 [1] : vector<16x16xf32> to vector<16xf32>
    %972 = vector.shape_cast %971 : vector<16xf32> to vector<16x1xf32>
    %cst_299 = arith.constant 1.600000e+01 : f32
    %973 = vector.broadcast %cst_299 : f32 to vector<16x1xf32>
    %974 = arith.divf %972, %973 : vector<16x1xf32>
    %975 = vector.broadcast %974 : vector<16x1xf32> to vector<16x16xf32>
    %976 = arith.subf %968, %975 : vector<16x16xf32>
    %977 = arith.mulf %976, %976 : vector<16x16xf32>
    %cst_300 = arith.constant dense<0.000000e+00> : vector<16xf32>
    %978 = vector.multi_reduction <add>, %977, %cst_300 [1] : vector<16x16xf32> to vector<16xf32>
    %979 = vector.shape_cast %978 : vector<16xf32> to vector<16x1xf32>
    %cst_301 = arith.constant 1.600000e+01 : f32
    %980 = vector.broadcast %cst_301 : f32 to vector<16x1xf32>
    %981 = arith.divf %979, %980 : vector<16x1xf32>
    %982 = vector.broadcast %974 : vector<16x1xf32> to vector<16x16xf32>
    %983 = arith.subf %968, %982 : vector<16x16xf32>
    %cst_302 = arith.constant 9.99999974E-6 : f32
    %984 = vector.broadcast %cst_302 : f32 to vector<16x1xf32>
    %985 = arith.addf %981, %984 : vector<16x1xf32>
    %986 = math.rsqrt %985 : vector<16x1xf32>
    %987 = vector.broadcast %986 : vector<16x1xf32> to vector<16x16xf32>
    %988 = arith.mulf %983, %987 : vector<16x16xf32>
    %989 = vector.broadcast %969 : vector<1x16xf32> to vector<16x16xf32>
    %990 = arith.mulf %988, %989 : vector<16x16xf32>
    %991 = vector.broadcast %970 : vector<1x16xf32> to vector<16x16xf32>
    %992 = arith.addf %990, %991 : vector<16x16xf32>
    %cst_303 = arith.constant 0.000000e+00 : f32
    %993 = vector.broadcast %cst_303 : f32 to vector<16x16xf32>
    %994 = arith.maximumf %992, %993 : vector<16x16xf32>
    %c0_304 = arith.constant 0 : index
    %c0_305 = arith.constant 0 : index
    %c0_306 = arith.constant 0 : index
    %995 = vector.load %arg24[%c0_304, %c0_305, %c0_306] : memref<2x16x16xf32, #tpu.memory_space<vmem>>, vector<1x16x16xf32>
    %996 = vector.shape_cast %995 : vector<1x16x16xf32> to vector<16x16xf32>
    %997 = vector.shape_cast %994 : vector<16x16xf32> to vector<1x16x16xf32>
    tpu.vector_store %arg24[%c0_304, %c0_305, %c0_306], %997 {strides = array<i32>} : memref<2x16x16xf32, #tpu.memory_space<vmem>>, vector<1x16x16xf32>,
    %998 = vector.extract_strided_slice %836 {offsets = [8, 0], sizes = [8, 16], strides = [1, 1]} : vector<16x16xf32> to vector<8x16xf32>
    %c0_307 = arith.constant 0 : index
    %c0_308 = arith.constant 0 : index
    %999 = vector.load %arg11[%c0_307, %c0_308] : memref<16x32xf32, #tpu.memory_space<vmem>>, vector<16x32xf32>
    %cst_309 = arith.constant dense<0.000000e+00> : vector<8x32xf32>
    %1000 = tpu.matmul %998, %999, %cst_309 {dimension_numbers = #tpu.dot_dimension_numbers<[1], [0], [0], [1], [0, 0, 1, 1], [], []>} : vector<8x16xf32>, vector<16x32xf32>, vector<8x32xf32> -> vector<8x32xf32>
    %1001 = vector.extract_strided_slice %1000 {offsets = [0, 0], sizes = [8, 16], strides = [1, 1]} : vector<8x32xf32> to vector<8x16xf32>
    %1002 = vector.extract_strided_slice %1000 {offsets = [0, 16], sizes = [8, 16], strides = [1, 1]} : vector<8x32xf32> to vector<8x16xf32>
    %1003 = tpu.concatenate %1001, %1002 in 0 : vector<8x16xf32>, vector<8x16xf32> -> vector<16x16xf32>
    %c0_310 = arith.constant 0 : index
    %c0_311 = arith.constant 0 : index
    %1004 = vector.load %arg12[%c0_310, %c0_311] : memref<16x48xf32, #tpu.memory_space<vmem>>, vector<16x48xf32>
    %cst_312 = arith.constant dense<0.000000e+00> : vector<16x48xf32>
    %1005 = tpu.matmul %1003, %1004, %cst_312 {dimension_numbers = #tpu.dot_dimension_numbers<[1], [0], [0], [1], [0, 0, 1, 1], [], []>} : vector<16x16xf32>, vector<16x48xf32>, vector<16x48xf32> -> vector<16x48xf32>
    %c0_313 = arith.constant 0 : index
    %c0_314 = arith.constant 0 : index
    %1006 = vector.load %arg13[%c0_313, %c0_314] : memref<1x48xf32, #tpu.memory_space<vmem>>, vector<1x48xf32>
    %1007 = vector.broadcast %1006 : vector<1x48xf32> to vector<16x48xf32>
    %1008 = arith.addf %1005, %1007 : vector<16x48xf32>
    %1009 = vector.extract_strided_slice %1008 {offsets = [0, 0], sizes = [16, 16], strides = [1, 1]} : vector<16x48xf32> to vector<16x16xf32>
    %cst_315 = arith.constant 5.000000e-01 : f32
    %1010 = vector.broadcast %cst_315 : f32 to vector<16x16xf32>
    %1011 = arith.mulf %1009, %1010 : vector<16x16xf32>
    %1012 = vector.extract_strided_slice %1008 {offsets = [0, 16], sizes = [16, 16], strides = [1, 1]} : vector<16x48xf32> to vector<16x16xf32>
    %1013 = vector.extract_strided_slice %1008 {offsets = [0, 32], sizes = [16, 16], strides = [1, 1]} : vector<16x48xf32> to vector<16x16xf32>
    %c0_316 = arith.constant 0 : index
    %c0_317 = arith.constant 0 : index
    %1014 = vector.load %arg15[%c0_316, %c0_317] : memref<1x16xf32, #tpu.memory_space<vmem>>, vector<1x16xf32>
    %1015 = vector.extract_strided_slice %1011 {offsets = [0, 0], sizes = [16, 4], strides = [1, 1]} : vector<16x16xf32> to vector<16x4xf32>
    %1016 = vector.extract_strided_slice %1012 {offsets = [0, 0], sizes = [16, 4], strides = [1, 1]} : vector<16x16xf32> to vector<16x4xf32>
    %1017 = vector.extract_strided_slice %1013 {offsets = [0, 0], sizes = [16, 4], strides = [1, 1]} : vector<16x16xf32> to vector<16x4xf32>
    %cst_318 = arith.constant dense<0.000000e+00> : vector<16x16xf32>
    %1018 = tpu.matmul %1015, %1016, %cst_318 {dimension_numbers = #tpu.dot_dimension_numbers<[1], [1], [0], [0], [0, 0, 1, 0], [], []>} : vector<16x4xf32>, vector<16x4xf32>, vector<16x16xf32> -> vector<16x16xf32>
    %cst_319 = arith.constant dense<0xFF800000> : vector<16xf32>
    %1019 = vector.multi_reduction <maximumf>, %1018, %cst_319 [1] : vector<16x16xf32> to vector<16xf32>
    %1020 = vector.shape_cast %1019 : vector<16xf32> to vector<16x1xf32>
    %1021 = vector.broadcast %1020 : vector<16x1xf32> to vector<16x16xf32>
    %1022 = arith.subf %1018, %1021 : vector<16x16xf32>
    %1023 = math.exp %1022 : vector<16x16xf32>
    %cst_320 = arith.constant dense<0.000000e+00> : vector<16xf32>
    %1024 = vector.multi_reduction <add>, %1023, %cst_320 [1] : vector<16x16xf32> to vector<16xf32>
    %1025 = vector.shape_cast %1024 : vector<16xf32> to vector<16x1xf32>
    %1026 = tpu.reciprocal %1025 {approx = true} : vector<16x1xf32> -> vector<16x1xf32>
    %1027 = vector.broadcast %1026 : vector<16x1xf32> to vector<16x16xf32>
    %1028 = arith.mulf %1023, %1027 : vector<16x16xf32>
    %cst_321 = arith.constant dense<0.000000e+00> : vector<16x4xf32>
    %1029 = tpu.matmul %1028, %1017, %cst_321 {dimension_numbers = #tpu.dot_dimension_numbers<[1], [0], [0], [1], [0, 0, 1, 1], [], []>} : vector<16x16xf32>, vector<16x4xf32>, vector<16x4xf32> -> vector<16x4xf32>
    %c0_322 = arith.constant 0 : index
    %c0_323 = arith.constant 0 : index
    %c0_324 = arith.constant 0 : index
    %1030 = vector.load %arg14[%c0_322, %c0_323, %c0_324] : memref<4x4x16xf32, #tpu.memory_space<vmem>>, vector<1x4x16xf32>
    %1031 = vector.shape_cast %1030 : vector<1x4x16xf32> to vector<4x16xf32>
    %cst_325 = arith.constant dense<0.000000e+00> : vector<16x16xf32>
    %1032 = tpu.matmul %1029, %1031, %cst_325 {dimension_numbers = #tpu.dot_dimension_numbers<[1], [0], [0], [1], [0, 0, 1, 1], [], []>} : vector<16x4xf32>, vector<4x16xf32>, vector<16x16xf32> -> vector<16x16xf32>
    %1033 = vector.broadcast %1014 : vector<1x16xf32> to vector<16x16xf32>
    %1034 = arith.addf %1033, %1032 : vector<16x16xf32>
    %1035 = vector.extract_strided_slice %1011 {offsets = [0, 4], sizes = [16, 4], strides = [1, 1]} : vector<16x16xf32> to vector<16x4xf32>
    %1036 = vector.extract_strided_slice %1012 {offsets = [0, 4], sizes = [16, 4], strides = [1, 1]} : vector<16x16xf32> to vector<16x4xf32>
    %1037 = vector.extract_strided_slice %1013 {offsets = [0, 4], sizes = [16, 4], strides = [1, 1]} : vector<16x16xf32> to vector<16x4xf32>
    %cst_326 = arith.constant dense<0.000000e+00> : vector<16x16xf32>
    %1038 = tpu.matmul %1035, %1036, %cst_326 {dimension_numbers = #tpu.dot_dimension_numbers<[1], [1], [0], [0], [0, 0, 1, 0], [], []>} : vector<16x4xf32>, vector<16x4xf32>, vector<16x16xf32> -> vector<16x16xf32>
    %cst_327 = arith.constant dense<0xFF800000> : vector<16xf32>
    %1039 = vector.multi_reduction <maximumf>, %1038, %cst_327 [1] : vector<16x16xf32> to vector<16xf32>
    %1040 = vector.shape_cast %1039 : vector<16xf32> to vector<16x1xf32>
    %1041 = vector.broadcast %1040 : vector<16x1xf32> to vector<16x16xf32>
    %1042 = arith.subf %1038, %1041 : vector<16x16xf32>
    %1043 = math.exp %1042 : vector<16x16xf32>
    %cst_328 = arith.constant dense<0.000000e+00> : vector<16xf32>
    %1044 = vector.multi_reduction <add>, %1043, %cst_328 [1] : vector<16x16xf32> to vector<16xf32>
    %1045 = vector.shape_cast %1044 : vector<16xf32> to vector<16x1xf32>
    %1046 = tpu.reciprocal %1045 {approx = true} : vector<16x1xf32> -> vector<16x1xf32>
    %1047 = vector.broadcast %1046 : vector<16x1xf32> to vector<16x16xf32>
    %1048 = arith.mulf %1043, %1047 : vector<16x16xf32>
    %cst_329 = arith.constant dense<0.000000e+00> : vector<16x4xf32>
    %1049 = tpu.matmul %1048, %1037, %cst_329 {dimension_numbers = #tpu.dot_dimension_numbers<[1], [0], [0], [1], [0, 0, 1, 1], [], []>} : vector<16x16xf32>, vector<16x4xf32>, vector<16x4xf32> -> vector<16x4xf32>
    %c1_330 = arith.constant 1 : index
    %c0_331 = arith.constant 0 : index
    %c0_332 = arith.constant 0 : index
    %1050 = vector.load %arg14[%c1_330, %c0_331, %c0_332] : memref<4x4x16xf32, #tpu.memory_space<vmem>>, vector<1x4x16xf32>
    %1051 = vector.shape_cast %1050 : vector<1x4x16xf32> to vector<4x16xf32>
    %cst_333 = arith.constant dense<0.000000e+00> : vector<16x16xf32>
    %1052 = tpu.matmul %1049, %1051, %cst_333 {dimension_numbers = #tpu.dot_dimension_numbers<[1], [0], [0], [1], [0, 0, 1, 1], [], []>} : vector<16x4xf32>, vector<4x16xf32>, vector<16x16xf32> -> vector<16x16xf32>
    %1053 = arith.addf %1034, %1052 : vector<16x16xf32>
    %1054 = vector.extract_strided_slice %1011 {offsets = [0, 8], sizes = [16, 4], strides = [1, 1]} : vector<16x16xf32> to vector<16x4xf32>
    %1055 = vector.extract_strided_slice %1012 {offsets = [0, 8], sizes = [16, 4], strides = [1, 1]} : vector<16x16xf32> to vector<16x4xf32>
    %1056 = vector.extract_strided_slice %1013 {offsets = [0, 8], sizes = [16, 4], strides = [1, 1]} : vector<16x16xf32> to vector<16x4xf32>
    %cst_334 = arith.constant dense<0.000000e+00> : vector<16x16xf32>
    %1057 = tpu.matmul %1054, %1055, %cst_334 {dimension_numbers = #tpu.dot_dimension_numbers<[1], [1], [0], [0], [0, 0, 1, 0], [], []>} : vector<16x4xf32>, vector<16x4xf32>, vector<16x16xf32> -> vector<16x16xf32>
    %cst_335 = arith.constant dense<0xFF800000> : vector<16xf32>
    %1058 = vector.multi_reduction <maximumf>, %1057, %cst_335 [1] : vector<16x16xf32> to vector<16xf32>
    %1059 = vector.shape_cast %1058 : vector<16xf32> to vector<16x1xf32>
    %1060 = vector.broadcast %1059 : vector<16x1xf32> to vector<16x16xf32>
    %1061 = arith.subf %1057, %1060 : vector<16x16xf32>
    %1062 = math.exp %1061 : vector<16x16xf32>
    %cst_336 = arith.constant dense<0.000000e+00> : vector<16xf32>
    %1063 = vector.multi_reduction <add>, %1062, %cst_336 [1] : vector<16x16xf32> to vector<16xf32>
    %1064 = vector.shape_cast %1063 : vector<16xf32> to vector<16x1xf32>
    %1065 = tpu.reciprocal %1064 {approx = true} : vector<16x1xf32> -> vector<16x1xf32>
    %1066 = vector.broadcast %1065 : vector<16x1xf32> to vector<16x16xf32>
    %1067 = arith.mulf %1062, %1066 : vector<16x16xf32>
    %cst_337 = arith.constant dense<0.000000e+00> : vector<16x4xf32>
    %1068 = tpu.matmul %1067, %1056, %cst_337 {dimension_numbers = #tpu.dot_dimension_numbers<[1], [0], [0], [1], [0, 0, 1, 1], [], []>} : vector<16x16xf32>, vector<16x4xf32>, vector<16x4xf32> -> vector<16x4xf32>
    %c2_338 = arith.constant 2 : index
    %c0_339 = arith.constant 0 : index
    %c0_340 = arith.constant 0 : index
    %1069 = vector.load %arg14[%c2_338, %c0_339, %c0_340] : memref<4x4x16xf32, #tpu.memory_space<vmem>>, vector<1x4x16xf32>
    %1070 = vector.shape_cast %1069 : vector<1x4x16xf32> to vector<4x16xf32>
    %cst_341 = arith.constant dense<0.000000e+00> : vector<16x16xf32>
    %1071 = tpu.matmul %1068, %1070, %cst_341 {dimension_numbers = #tpu.dot_dimension_numbers<[1], [0], [0], [1], [0, 0, 1, 1], [], []>} : vector<16x4xf32>, vector<4x16xf32>, vector<16x16xf32> -> vector<16x16xf32>
    %1072 = arith.addf %1053, %1071 : vector<16x16xf32>
    %1073 = vector.extract_strided_slice %1011 {offsets = [0, 12], sizes = [16, 4], strides = [1, 1]} : vector<16x16xf32> to vector<16x4xf32>
    %1074 = vector.extract_strided_slice %1012 {offsets = [0, 12], sizes = [16, 4], strides = [1, 1]} : vector<16x16xf32> to vector<16x4xf32>
    %1075 = vector.extract_strided_slice %1013 {offsets = [0, 12], sizes = [16, 4], strides = [1, 1]} : vector<16x16xf32> to vector<16x4xf32>
    %cst_342 = arith.constant dense<0.000000e+00> : vector<16x16xf32>
    %1076 = tpu.matmul %1073, %1074, %cst_342 {dimension_numbers = #tpu.dot_dimension_numbers<[1], [1], [0], [0], [0, 0, 1, 0], [], []>} : vector<16x4xf32>, vector<16x4xf32>, vector<16x16xf32> -> vector<16x16xf32>
    %cst_343 = arith.constant dense<0xFF800000> : vector<16xf32>
    %1077 = vector.multi_reduction <maximumf>, %1076, %cst_343 [1] : vector<16x16xf32> to vector<16xf32>
    %1078 = vector.shape_cast %1077 : vector<16xf32> to vector<16x1xf32>
    %1079 = vector.broadcast %1078 : vector<16x1xf32> to vector<16x16xf32>
    %1080 = arith.subf %1076, %1079 : vector<16x16xf32>
    %1081 = math.exp %1080 : vector<16x16xf32>
    %cst_344 = arith.constant dense<0.000000e+00> : vector<16xf32>
    %1082 = vector.multi_reduction <add>, %1081, %cst_344 [1] : vector<16x16xf32> to vector<16xf32>
    %1083 = vector.shape_cast %1082 : vector<16xf32> to vector<16x1xf32>
    %1084 = tpu.reciprocal %1083 {approx = true} : vector<16x1xf32> -> vector<16x1xf32>
    %1085 = vector.broadcast %1084 : vector<16x1xf32> to vector<16x16xf32>
    %1086 = arith.mulf %1081, %1085 : vector<16x16xf32>
    %cst_345 = arith.constant dense<0.000000e+00> : vector<16x4xf32>
    %1087 = tpu.matmul %1086, %1075, %cst_345 {dimension_numbers = #tpu.dot_dimension_numbers<[1], [0], [0], [1], [0, 0, 1, 1], [], []>} : vector<16x16xf32>, vector<16x4xf32>, vector<16x4xf32> -> vector<16x4xf32>
    %c3_346 = arith.constant 3 : index
    %c0_347 = arith.constant 0 : index
    %c0_348 = arith.constant 0 : index
    %1088 = vector.load %arg14[%c3_346, %c0_347, %c0_348] : memref<4x4x16xf32, #tpu.memory_space<vmem>>, vector<1x4x16xf32>
    %1089 = vector.shape_cast %1088 : vector<1x4x16xf32> to vector<4x16xf32>
    %cst_349 = arith.constant dense<0.000000e+00> : vector<16x16xf32>
    %1090 = tpu.matmul %1087, %1089, %cst_349 {dimension_numbers = #tpu.dot_dimension_numbers<[1], [0], [0], [1], [0, 0, 1, 1], [], []>} : vector<16x4xf32>, vector<4x16xf32>, vector<16x16xf32> -> vector<16x16xf32>
    %1091 = arith.addf %1072, %1090 : vector<16x16xf32>
    %1092 = arith.addf %1003, %1091 : vector<16x16xf32>
    %c0_350 = arith.constant 0 : index
    %c0_351 = arith.constant 0 : index
    %1093 = vector.load %arg20[%c0_350, %c0_351] : memref<1x16xf32, #tpu.memory_space<vmem>>, vector<1x16xf32>
    %c0_352 = arith.constant 0 : index
    %c0_353 = arith.constant 0 : index
    %1094 = vector.load %arg21[%c0_352, %c0_353] : memref<1x16xf32, #tpu.memory_space<vmem>>, vector<1x16xf32>
    %cst_354 = arith.constant dense<0.000000e+00> : vector<16xf32>
    %1095 = vector.multi_reduction <add>, %1092, %cst_354 [1] : vector<16x16xf32> to vector<16xf32>
    %1096 = vector.shape_cast %1095 : vector<16xf32> to vector<16x1xf32>
    %cst_355 = arith.constant 1.600000e+01 : f32
    %1097 = vector.broadcast %cst_355 : f32 to vector<16x1xf32>
    %1098 = arith.divf %1096, %1097 : vector<16x1xf32>
    %1099 = vector.broadcast %1098 : vector<16x1xf32> to vector<16x16xf32>
    %1100 = arith.subf %1092, %1099 : vector<16x16xf32>
    %1101 = arith.mulf %1100, %1100 : vector<16x16xf32>
    %cst_356 = arith.constant dense<0.000000e+00> : vector<16xf32>
    %1102 = vector.multi_reduction <add>, %1101, %cst_356 [1] : vector<16x16xf32> to vector<16xf32>
    %1103 = vector.shape_cast %1102 : vector<16xf32> to vector<16x1xf32>
    %cst_357 = arith.constant 1.600000e+01 : f32
    %1104 = vector.broadcast %cst_357 : f32 to vector<16x1xf32>
    %1105 = arith.divf %1103, %1104 : vector<16x1xf32>
    %1106 = vector.broadcast %1098 : vector<16x1xf32> to vector<16x16xf32>
    %1107 = arith.subf %1092, %1106 : vector<16x16xf32>
    %cst_358 = arith.constant 9.99999974E-6 : f32
    %1108 = vector.broadcast %cst_358 : f32 to vector<16x1xf32>
    %1109 = arith.addf %1105, %1108 : vector<16x1xf32>
    %1110 = math.rsqrt %1109 : vector<16x1xf32>
    %1111 = vector.broadcast %1110 : vector<16x1xf32> to vector<16x16xf32>
    %1112 = arith.mulf %1107, %1111 : vector<16x16xf32>
    %1113 = vector.broadcast %1093 : vector<1x16xf32> to vector<16x16xf32>
    %1114 = arith.mulf %1112, %1113 : vector<16x16xf32>
    %1115 = vector.broadcast %1094 : vector<1x16xf32> to vector<16x16xf32>
    %1116 = arith.addf %1114, %1115 : vector<16x16xf32>
    %c0_359 = arith.constant 0 : index
    %c0_360 = arith.constant 0 : index
    %1117 = vector.load %arg16[%c0_359, %c0_360] : memref<16x64xf32, #tpu.memory_space<vmem>>, vector<16x64xf32>
    %cst_361 = arith.constant dense<0.000000e+00> : vector<16x64xf32>
    %1118 = tpu.matmul %1116, %1117, %cst_361 {dimension_numbers = #tpu.dot_dimension_numbers<[1], [0], [0], [1], [0, 0, 1, 1], [], []>} : vector<16x16xf32>, vector<16x64xf32>, vector<16x64xf32> -> vector<16x64xf32>
    %c0_362 = arith.constant 0 : index
    %c0_363 = arith.constant 0 : index
    %1119 = vector.load %arg17[%c0_362, %c0_363] : memref<1x64xf32, #tpu.memory_space<vmem>>, vector<1x64xf32>
    %1120 = vector.broadcast %1119 : vector<1x64xf32> to vector<16x64xf32>
    %1121 = arith.addf %1118, %1120 : vector<16x64xf32>
    %cst_364 = arith.constant 0.000000e+00 : f32
    %1122 = vector.broadcast %cst_364 : f32 to vector<16x64xf32>
    %1123 = arith.maximumf %1121, %1122 : vector<16x64xf32>
    %c0_365 = arith.constant 0 : index
    %c0_366 = arith.constant 0 : index
    %1124 = vector.load %arg18[%c0_365, %c0_366] : memref<64x16xf32, #tpu.memory_space<vmem>>, vector<64x16xf32>
    %cst_367 = arith.constant dense<0.000000e+00> : vector<16x16xf32>
    %1125 = tpu.matmul %1123, %1124, %cst_367 {dimension_numbers = #tpu.dot_dimension_numbers<[1], [0], [0], [1], [0, 0, 1, 1], [], []>} : vector<16x64xf32>, vector<64x16xf32>, vector<16x16xf32> -> vector<16x16xf32>
    %c0_368 = arith.constant 0 : index
    %c0_369 = arith.constant 0 : index
    %1126 = vector.load %arg19[%c0_368, %c0_369] : memref<1x16xf32, #tpu.memory_space<vmem>>, vector<1x16xf32>
    %1127 = vector.broadcast %1126 : vector<1x16xf32> to vector<16x16xf32>
    %1128 = arith.addf %1125, %1127 : vector<16x16xf32>
    %1129 = arith.addf %1116, %1128 : vector<16x16xf32>
    %c0_370 = arith.constant 0 : index
    %c0_371 = arith.constant 0 : index
    %1130 = vector.load %arg22[%c0_370, %c0_371] : memref<1x16xf32, #tpu.memory_space<vmem>>, vector<1x16xf32>
    %c0_372 = arith.constant 0 : index
    %c0_373 = arith.constant 0 : index
    %1131 = vector.load %arg23[%c0_372, %c0_373] : memref<1x16xf32, #tpu.memory_space<vmem>>, vector<1x16xf32>
    %cst_374 = arith.constant dense<0.000000e+00> : vector<16xf32>
    %1132 = vector.multi_reduction <add>, %1129, %cst_374 [1] : vector<16x16xf32> to vector<16xf32>
    %1133 = vector.shape_cast %1132 : vector<16xf32> to vector<16x1xf32>
    %cst_375 = arith.constant 1.600000e+01 : f32
    %1134 = vector.broadcast %cst_375 : f32 to vector<16x1xf32>
    %1135 = arith.divf %1133, %1134 : vector<16x1xf32>
    %1136 = vector.broadcast %1135 : vector<16x1xf32> to vector<16x16xf32>
    %1137 = arith.subf %1129, %1136 : vector<16x16xf32>
    %1138 = arith.mulf %1137, %1137 : vector<16x16xf32>
    %cst_376 = arith.constant dense<0.000000e+00> : vector<16xf32>
    %1139 = vector.multi_reduction <add>, %1138, %cst_376 [1] : vector<16x16xf32> to vector<16xf32>
    %1140 = vector.shape_cast %1139 : vector<16xf32> to vector<16x1xf32>
    %cst_377 = arith.constant 1.600000e+01 : f32
    %1141 = vector.broadcast %cst_377 : f32 to vector<16x1xf32>
    %1142 = arith.divf %1140, %1141 : vector<16x1xf32>
    %1143 = vector.broadcast %1135 : vector<16x1xf32> to vector<16x16xf32>
    %1144 = arith.subf %1129, %1143 : vector<16x16xf32>
    %cst_378 = arith.constant 9.99999974E-6 : f32
    %1145 = vector.broadcast %cst_378 : f32 to vector<16x1xf32>
    %1146 = arith.addf %1142, %1145 : vector<16x1xf32>
    %1147 = math.rsqrt %1146 : vector<16x1xf32>
    %1148 = vector.broadcast %1147 : vector<16x1xf32> to vector<16x16xf32>
    %1149 = arith.mulf %1144, %1148 : vector<16x16xf32>
    %1150 = vector.broadcast %1130 : vector<1x16xf32> to vector<16x16xf32>
    %1151 = arith.mulf %1149, %1150 : vector<16x16xf32>
    %1152 = vector.broadcast %1131 : vector<1x16xf32> to vector<16x16xf32>
    %1153 = arith.addf %1151, %1152 : vector<16x16xf32>
    %cst_379 = arith.constant 0.000000e+00 : f32
    %1154 = vector.broadcast %cst_379 : f32 to vector<16x16xf32>
    %1155 = arith.maximumf %1153, %1154 : vector<16x16xf32>
    %c1_380 = arith.constant 1 : index
    %c0_381 = arith.constant 0 : index
    %c0_382 = arith.constant 0 : index
    %1156 = vector.load %arg24[%c1_380, %c0_381, %c0_382] : memref<2x16x16xf32, #tpu.memory_space<vmem>>, vector<1x16x16xf32>
    %1157 = vector.shape_cast %1156 : vector<1x16x16xf32> to vector<16x16xf32>
    %1158 = vector.shape_cast %1155 : vector<16x16xf32> to vector<1x16x16xf32>
    tpu.vector_store %arg24[%c1_380, %c0_381, %c0_382], %1158 {strides = array<i32>} : memref<2x16x16xf32, #tpu.memory_space<vmem>>, vector<1x16x16xf32>,
    return
  }
  func.func @transform_0(%arg0: i32) -> (i32, i32) {
    %c0_i32 = arith.constant 0 : i32
    %c0_i32_0 = arith.constant 0 : i32
    %c0_i32_1 = arith.constant 0 : i32
    return %c0_i32, %c0_i32_0 : i32, i32
  }
  func.func @transform_1(%arg0: i32) -> (i32, i32) {
    %c0_i32 = arith.constant 0 : i32
    %c0_i32_0 = arith.constant 0 : i32
    %c0_i32_1 = arith.constant 0 : i32
    return %c0_i32, %c0_i32_0 : i32, i32
  }
  func.func @transform_2(%arg0: i32) -> (i32, i32, i32) {
    %c0_i32 = arith.constant 0 : i32
    %c0_i32_0 = arith.constant 0 : i32
    %c0_i32_1 = arith.constant 0 : i32
    %c0_i32_2 = arith.constant 0 : i32
    return %c0_i32, %c0_i32_0, %c0_i32_1 : i32, i32, i32
  }
  func.func @transform_3(%arg0: i32) -> (i32, i32, i32) {
    %c0_i32 = arith.constant 0 : i32
    %c0_i32_0 = arith.constant 0 : i32
    %c0_i32_1 = arith.constant 0 : i32
    %c0_i32_2 = arith.constant 0 : i32
    return %c0_i32, %c0_i32_0, %c0_i32_1 : i32, i32, i32
  }
  func.func @transform_4(%arg0: i32) -> (i32, i32, i32) {
    %c0_i32 = arith.constant 0 : i32
    %c0_i32_0 = arith.constant 0 : i32
    %c0_i32_1 = arith.constant 0 : i32
    %c0_i32_2 = arith.constant 0 : i32
    return %c0_i32, %c0_i32_0, %c0_i32_1 : i32, i32, i32
  }
  func.func @transform_5(%arg0: i32) -> (i32, i32, i32) {
    %c0_i32 = arith.constant 0 : i32
    %c0_i32_0 = arith.constant 0 : i32
    %c0_i32_1 = arith.constant 0 : i32
    %c0_i32_2 = arith.constant 0 : i32
    return %c0_i32, %c0_i32_0, %c0_i32_1 : i32, i32, i32
  }
  func.func @transform_6(%arg0: i32) -> (i32, i32, i32) {
    %c0_i32 = arith.constant 0 : i32
    %c0_i32_0 = arith.constant 0 : i32
    %c0_i32_1 = arith.constant 0 : i32
    %c0_i32_2 = arith.constant 0 : i32
    return %c0_i32, %c0_i32_0, %c0_i32_1 : i32, i32, i32
  }
  func.func @transform_7(%arg0: i32) -> (i32, i32, i32) {
    %c0_i32 = arith.constant 0 : i32
    %c0_i32_0 = arith.constant 0 : i32
    %c0_i32_1 = arith.constant 0 : i32
    %c0_i32_2 = arith.constant 0 : i32
    return %c0_i32, %c0_i32_0, %c0_i32_1 : i32, i32, i32
  }
  func.func @transform_8(%arg0: i32) -> (i32, i32, i32) {
    %c0_i32 = arith.constant 0 : i32
    %c0_i32_0 = arith.constant 0 : i32
    %c0_i32_1 = arith.constant 0 : i32
    %c0_i32_2 = arith.constant 0 : i32
    return %c0_i32, %c0_i32_0, %c0_i32_1 : i32, i32, i32
  }
  func.func @transform_9(%arg0: i32) -> (i32, i32, i32) {
    %c0_i32 = arith.constant 0 : i32
    %c0_i32_0 = arith.constant 0 : i32
    %c0_i32_1 = arith.constant 0 : i32
    %c0_i32_2 = arith.constant 0 : i32
    return %c0_i32, %c0_i32_0, %c0_i32_1 : i32, i32, i32
  }
  func.func @transform_10(%arg0: i32) -> (i32, i32) {
    %c0_i32 = arith.constant 0 : i32
    %c0_i32_0 = arith.constant 0 : i32
    %c0_i32_1 = arith.constant 0 : i32
    return %c0_i32, %c0_i32_0 : i32, i32
  }
  func.func @transform_11(%arg0: i32) -> (i32, i32) {
    %c0_i32 = arith.constant 0 : i32
    %c0_i32_0 = arith.constant 0 : i32
    %c0_i32_1 = arith.constant 0 : i32
    return %c0_i32, %c0_i32_0 : i32, i32
  }
  func.func @transform_12(%arg0: i32) -> (i32, i32) {
    %c0_i32 = arith.constant 0 : i32
    %c0_i32_0 = arith.constant 0 : i32
    %c0_i32_1 = arith.constant 0 : i32
    return %c0_i32, %c0_i32_0 : i32, i32
  }
  func.func @transform_13(%arg0: i32) -> (i32, i32, i32) {
    %c0_i32 = arith.constant 0 : i32
    %c0_i32_0 = arith.constant 0 : i32
    %c0_i32_1 = arith.constant 0 : i32
    %c0_i32_2 = arith.constant 0 : i32
    return %c0_i32, %c0_i32_0, %c0_i32_1 : i32, i32, i32
  }
  func.func @transform_14(%arg0: i32) -> (i32, i32) {
    %c0_i32 = arith.constant 0 : i32
    %c0_i32_0 = arith.constant 0 : i32
    %c0_i32_1 = arith.constant 0 : i32
    return %c0_i32, %c0_i32_0 : i32, i32
  }
  func.func @transform_15(%arg0: i32) -> (i32, i32) {
    %c0_i32 = arith.constant 0 : i32
    %c0_i32_0 = arith.constant 0 : i32
    %c0_i32_1 = arith.constant 0 : i32
    return %c0_i32, %c0_i32_0 : i32, i32
  }
  func.func @transform_16(%arg0: i32) -> (i32, i32) {
    %c0_i32 = arith.constant 0 : i32
    %c0_i32_0 = arith.constant 0 : i32
    %c0_i32_1 = arith.constant 0 : i32
    return %c0_i32, %c0_i32_0 : i32, i32
  }
  func.func @transform_17(%arg0: i32) -> (i32, i32) {
    %c0_i32 = arith.constant 0 : i32
    %c0_i32_0 = arith.constant 0 : i32
    %c0_i32_1 = arith.constant 0 : i32
    return %c0_i32, %c0_i32_0 : i32, i32
  }
  func.func @transform_18(%arg0: i32) -> (i32, i32) {
    %c0_i32 = arith.constant 0 : i32
    %c0_i32_0 = arith.constant 0 : i32
    %c0_i32_1 = arith.constant 0 : i32
    return %c0_i32, %c0_i32_0 : i32, i32
  }
  func.func @transform_19(%arg0: i32) -> (i32, i32) {
    %c0_i32 = arith.constant 0 : i32
    %c0_i32_0 = arith.constant 0 : i32
    %c0_i32_1 = arith.constant 0 : i32
    return %c0_i32, %c0_i32_0 : i32, i32
  }
  func.func @transform_20(%arg0: i32) -> (i32, i32) {
    %c0_i32 = arith.constant 0 : i32
    %c0_i32_0 = arith.constant 0 : i32
    %c0_i32_1 = arith.constant 0 : i32
    return %c0_i32, %c0_i32_0 : i32, i32
  }
  func.func @transform_21(%arg0: i32) -> (i32, i32) {
    %c0_i32 = arith.constant 0 : i32
    %c0_i32_0 = arith.constant 0 : i32
    %c0_i32_1 = arith.constant 0 : i32
    return %c0_i32, %c0_i32_0 : i32, i32
  }
  func.func @transform_22(%arg0: i32) -> (i32, i32) {
    %c0_i32 = arith.constant 0 : i32
    %c0_i32_0 = arith.constant 0 : i32
    %c0_i32_1 = arith.constant 0 : i32
    return %c0_i32, %c0_i32_0 : i32, i32
  }
  func.func @transform_23(%arg0: i32) -> (i32, i32, i32) {
    %c0_i32 = arith.constant 0 : i32
    %c0_i32_0 = arith.constant 0 : i32
    %c0_i32_1 = arith.constant 0 : i32
    %c0_i32_2 = arith.constant 0 : i32
    return %c0_i32, %c0_i32_0, %c0_i32_1 : i32, i32, i32
  }
}

</mosaic_0001>

<bundles_post_ra>
// kernel: decoder_forward.1
= control target key start
LH: loop header
LB: loop body
LE: loop exit
PB: predicated region body
PF: predicated region fallthrough
CT: control target
= control target key end

     0   :  { %vm85_vm0 = vcmask 130048   ;;  %v8482_v3 = vmov 0.0|0.0   ;;  %vm8483_vm1 = vmmov 0   ;;  %v8484_v4 = vmov 0.0   ;;  %s9730_s27 = smov 112   ;;  %s9755_s29 = smov 96   ;;  %s9694_s2 = inlined_call_operand.vmem [shape: f32[3,16,48], index: 2, kind: input, shape index: {}]   ;;  %s9695_s0 = inlined_call_operand.vmem [shape: f32[16,16], index: 0, kind: input, shape index: {}]   ;;  %s9696_s3 = inlined_call_operand.vmem [shape: f32[3,16,48], index: 3, kind: input, shape index: {}]   ;;  %s9697_s4 = inlined_call_operand.vmem [shape: f32[3,1,48], index: 4, kind: input, shape index: {}]   ;;  %s9698_s5 = inlined_call_operand.vmem [shape: f32[3,1,48], index: 5, kind: input, shape index: {}]   ;;  %s9699_s6 = inlined_call_operand.vmem [shape: f32[3,16,64], index: 6, kind: input, shape index: {}]   ;;  %s9700_s8 = inlined_call_operand.vmem [shape: f32[3,64,16], index: 8, kind: input, shape index: {}]   ;;  %s9701_s7 = inlined_call_operand.vmem [shape: f32[3,1,64], index: 7, kind: input, shape index: {}]   ;;  %s9702_s9 = inlined_call_operand.vmem [shape: f32[3,1,16], index: 9, kind: input, shape index: {}]   ;;  %s9703_s1 = inlined_call_operand.vmem [shape: f32[16,16], index: 1, kind: input, shape index: {}]   ;;  %s9704_s10 = inlined_call_operand.vmem [shape: f32[16,32], index: 10, kind: input, shape index: {}]   ;;  %s9705_s11 = inlined_call_operand.vmem [shape: f32[16,48], index: 11, kind: input, shape index: {}]   ;;  %s9706_s12 = inlined_call_operand.vmem [shape: f32[1,48], index: 12, kind: input, shape index: {}]   ;;  %s9707_s13 = inlined_call_operand.vmem [shape: f32[4,4,16], index: 13, kind: input, shape index: {}]   ;;  %s9708_s14 = inlined_call_operand.vmem [shape: f32[1,16], index: 14, kind: input, shape index: {}]   ;;  %s9709_s15 = inlined_call_operand.vmem [shape: f32[16,64], index: 15, kind: input, shape index: {}]   ;;  %s9710_s17 = inlined_call_operand.vmem [shape: f32[64,16], index: 17, kind: input, shape index: {}]   ;;  %s9711_s19 = inlined_call_operand.vmem [shape: f32[1,16], index: 19, kind: input, shape index: {}]   ;;  %s9712_s20 = inlined_call_operand.vmem [shape: f32[1,16], index: 20, kind: input, shape index: {}]   ;;  %s9713_s16 = inlined_call_operand.vmem [shape: f32[1,64], index: 16, kind: input, shape index: {}]   ;;  %s9714_s18 = inlined_call_operand.vmem [shape: f32[1,16], index: 18, kind: input, shape index: {}]   ;;  %s9715_s21 = inlined_call_operand.vmem [shape: f32[1,16], index: 21, kind: input, shape index: {}]   ;;  %s9716_s22 = inlined_call_operand.vmem [shape: f32[1,16], index: 22, kind: input, shape index: {}]   ;;  %s9717_s23 = inlined_call_operand.vmem [shape: f32[2,16,16], index: 23, kind: output, shape index: {}]  }
   0x1   :  { %9733 = sst [smem:[#allocation3_spill]] %s9694_s2  ;;  %7875 = vmatprep.subr.bf16.mxu1 %v8482_v3  ;;  %7384 = vmatprep.mubr.msk.f32.mxu1 %vm8483_vm1, %v8484_v4  ;;  %vm279_vm2 = vcmask 123904   ;;  %vm387_vm3 = vcmask 125954   ;;  %vm609_vm4 = vcmask 130054   ;;  %vm498_vm5 = vcmask 128004   ;;  %s9756_s2 = smov 32  }
   0x2   :  { %9734 = sst [smem:[#allocation4_spill]] %s9695_s0  ;;  %s9746_s24 = sld [smem:[#allocation3_spill]]  ;;  %vm1147_vm6 = vcmask 523264   ;;  %vm3825_vm7 = vcmask 31744   ;;  %vm4027_vm9 = vcmask 1043456  }
   0x3   :  { %9735 = sst [smem:[#allocation5_spill]] %s9696_s3  ;;  %s9747_s3 = sld [smem:[#allocation4_spill]]  ;;  %vm9296_vm8 = vmpackc.low %vm3825_vm7, %vm3825_vm7 }
   0x4   :  { %9736 = sst [smem:[#allocation6_spill]] %s9697_s4  ;;  %s8493_s28 = smov 104  }
   0x5   :  { %9737 = sst [smem:[#allocation7_spill]] %s9698_s5  ;;  %s9749_s25 = sld [smem:[#allocation6_spill]] }
   0x6   :  { %9738 = sst [smem:[#allocation8_spill]] %s9699_s6  ;;  %s9750_s26 = sld [smem:[#allocation7_spill]] }
   0x7   :  { %9739 = sst [smem:[#allocation9_spill]] %s9700_s8  ;;  %s9726_s8 = smov 32  }
   0x8   :  { %9740 = sst [smem:[#allocation10_spill]] %s9701_s7  ;;  %v76_v0 = vld [vmem:[%s9746_s24] sm:$0xff]  ;;  %v77_v1 = vld [vmem:[%s9746_s24 + $0x8] sm:$0xff]  ;;  %s9748_s7 = sld [smem:[#allocation5_spill]] }
   0x9   :  { %9741 = sst [smem:[#allocation11_spill]] %s9713_s16  ;;  %v8626_v2 = vld [vmem:[%s9747_s3] sm:$0xff]  ;;  %v7865_v5 = vpack.c.bf16 %v77_v1, %v76_v0  ;;  %v8644_v9 = vld [vmem:[%s9747_s3 + $0x8] sm:$0xff]  ;;  %s9728_s3 = smov 96  }
   0xa   :  { %9742 = sst [smem:[#allocation12_spill]] %s9714_s18  ;;  %7363 = vmatprep.mubr.msk.f32.mxu0 %vm85_vm0, %v8626_v2  ;;  %s9751_s4 = sld [smem:[#allocation8_spill]] }
   0xb   :  { %9743 = sst [smem:[#allocation13_spill]] %s9715_s21  ;;  %7866 = vmatprep.subr.bf16.mxu0 %v7865_v5  ;;  %v6876_v10 = vld [vmem:[%s9749_s25] ss:$0 sm:$0xff]  ;;  %s9752_s0 = sld [smem:[#allocation9_spill]] }
   0xc   :  { %9744 = sst [smem:[#allocation14_spill]] %s9716_s22  ;;  %7868 = vmatpush3.bf16.msra.mxu0 %v7865_v5  ;;  %v8668_v14 = vld [vmem:[%s9750_s26] ss:$0 sm:$0xff]  ;;  %s9754_s5 = sld [smem:[#allocation10_spill]] }
   0xd   :  { %9745 = sst [smem:[#allocation15_spill]] %s9717_s23  ;;  %7869 = vmatprep.subr.bf16.mxu0 %v8482_v3  ;;  %s8494_s21 = smov 100  }
   0xe   :  { %v167_v6 = vld [vmem:[%s9748_s7] sm:$0xff]  ;;  %v168_v7 = vld [vmem:[%s9748_s7 + $0x8] sm:$0xff]  ;;  %s9763_s6 = sld [smem:[#allocation15_spill]] }
   0xf   :  { %v8639_v8 = vpack.c.bf16 %v168_v7, %v167_v6  ;;  %7364 = vmatmul.mubr.msk.f32.vlgmr.msra.gmra.mrb[0].mxu0 %vm85_vm0, %v8644_v9 }
  0x10   :  { %7370 = vmatprep.mubr.msk.f32.mxu0 %vm8483_vm1, %v8484_v4 }
  0x11   :  { %7877 = vmatpush3.bf16.msra.mxu1 %v8639_v8  ;;  %7871 = vmatpush3.bf16.msra.mxu0 %v8639_v8 }
  0x12   :  { %7881 = vmatprep.subr.bf16.mxu1 %v8482_v3  ;;  %7872 = vmatprep.subr.bf16.mxu0 %v8482_v3 }
  0x14   :  { %7371 = vmatmul.mubr.f32.vlgmr.msra.gmra.mrb[2].mxu0 %v8484_v4 }
  0x15   :  { %7874 = vmatpush3.bf16.msra.mxu0 %v8639_v8  ;;  %7377 = vmatprep.mubr.msk.f32.mxu0 %vm8483_vm1, %v8484_v4 }
  0x16   :  { %7878 = vmatprep.subr.bf16.mxu0 %v8482_v3 }
  0xe2   :  { %v7365_v11 = vpop.f32.mrb[0].mxu0 }
  0xe3   :  { %v8663_v12 = vadd.f32 %v7365_v11, %v6876_v10  ;;  %v158_v13 = vpop.f32.mrb[1].mxu0 }
  0xe4   :  { %v8672_v18 = vadd.f32 %v6876_v10, %v158_v13 }
  0xe7   :  { %v245_v15 = vpop.f32.mrb[2].mxu0 }
  0xe8   :  { %v246_v16 = vadd.f32 %v8668_v14, %v245_v15  ;;  %v7372_v17 = vpop.f32.mrb[3].mxu0 }
  0xea   :  { %257 = vrot.lane.b32.xlu0 %v246_v16, %s9728_s3  ;;  %v249_v19 = vadd.f32 %v246_v16, %v8672_v18 }
  0xec   :  { %v6880_v20 = vmul.f32 -1.442695, %v249_v19 }
  0xee   :  { %8258 = vpow2.f32 %v6880_v20 }
  0xf8   :  { %v8259_v21 = vpop.eup %8258 }
  0xf9   :  { %v253_v22 = vadd.f32 1.0, %v8259_v21 }
  0xfb   :  { %8260 = vrcp.f32 %v253_v22 }
 0x105   :  { %v8261_v23 = vpop.eup %8260 }
 0x106   :  { %v267_v29 = vsub.f32 1.0, %v8261_v23  ;;  %v273_v31 = vmul.f32 0.0, %v8261_v23 }
 0x15c   :  { %v258_v24 = vpop.permute.xlu0 %257 }
 0x15d   :  { %v260_v25 = vmul.f32 %v8261_v23, %v258_v24 }
 0x15f   :  { %262 = vrot.lane.b32.xlu0 %v260_v25, %s9726_s8 }
 0x1d1   :  { %v263_v26 = vpop.permute.xlu0 %262 }
 0x1d2   :  { %v265_v27 = vadd.f32 %v263_v26, %v8672_v18 }
 0x1d4   :  { %8262 = vtanh.f32 %v265_v27 }
 0x1de   :  { %v8263_v28 = vpop.eup %8262 }
 0x1df   :  { %269 = vrot.lane.b32.xlu1 %v8263_v28, %s9730_s27 }
 0x251   :  { %v270_v30 = vpop.permute.xlu1 %269 }
 0x252   :  { %v272_v32 = vmul.f32 %v270_v30, %v267_v29 }
 0x254   :  { %v274_v33 = vadd.f32 %v273_v31, %v272_v32 }
 0x256   :  { %276 = vrot.lane.b32.xlu1 %v274_v33, %s9730_s27  ;;  %v379_v49 = vrot.slane %v274_v33, 6 }
 0x2c8   :  { %v277_v34 = vpop.permute.xlu1 %276 }
 0x2c9   :  { %280 = vst.msk [vmem:[#allocation2] sm:$0x3] %vm279_vm2, %v277_v34  ;;  %7378 = vmatmul.mubr.msk.f32.vlgmr.msra.gmra.mrb[4].mxu0 %vm85_vm0, %v277_v34 }
 0x2ca   :  { %7880 = vmatpush3.bf16.msra.mxu0 %v8639_v8  ;;  %7391 = vmatprep.mubr.msk.f32.mxu0 %vm8483_vm1, %v8484_v4 }
 0x2cb   :  { %7884 = vmatprep.subr.bf16.mxu0 %v8482_v3 }
 0x39c   :  { %v349_v35 = vpop.f32.mrb[4].mxu0 }
 0x39d   :  { %v350_v36 = vadd.f32 %v8668_v14, %v349_v35  ;;  %v7379_v37 = vpop.f32.mrb[5].mxu0 }
 0x39f   :  { %v354_v38 = vrot.slane %v350_v36, 6 }
 0x3a1   :  { %363 = vrot.lane.b32.xlu0 %v354_v38, %s9728_s3  ;;  %v356_v39 = vadd.f32 %v354_v38, %v8672_v18 }
 0x3a3   :  { %v6882_v40 = vmul.f32 -1.442695, %v356_v39 }
 0x3a5   :  { %8264 = vpow2.f32 %v6882_v40 }
 0x3af   :  { %v8265_v41 = vpop.eup %8264 }
 0x3b0   :  { %v360_v42 = vadd.f32 1.0, %v8265_v41 }
 0x3b2   :  { %8266 = vrcp.f32 %v360_v42 }
 0x3bc   :  { %v8267_v43 = vpop.eup %8266 }
 0x3bd   :  { %v373_v50 = vsub.f32 1.0, %v8267_v43  ;;  %v381_v53 = vmul.f32 %v8267_v43, %v379_v49 }
 0x413   :  { %v364_v44 = vpop.permute.xlu0 %363 }
 0x414   :  { %v366_v45 = vmul.f32 %v8267_v43, %v364_v44 }
 0x416   :  { %368 = vrot.lane.b32.xlu1 %v366_v45, %s9726_s8 }
 0x488   :  { %v369_v46 = vpop.permute.xlu1 %368 }
 0x489   :  { %v371_v47 = vadd.f32 %v369_v46, %v8672_v18 }
 0x48b   :  { %8268 = vtanh.f32 %v371_v47 }
 0x495   :  { %v8269_v48 = vpop.eup %8268 }
 0x496   :  { %375 = vrot.lane.b32.xlu0 %v8269_v48, %s9730_s27 }
 0x508   :  { %v376_v51 = vpop.permute.xlu0 %375 }
 0x509   :  { %v378_v52 = vmul.f32 %v376_v51, %v373_v50 }
 0x50b   :  { %v8691_v54 = vadd.f32 %v381_v53, %v378_v52 }
 0x50d   :  { %v389_v55 = vrot.slane %v8691_v54, 2  ;;  %v490_v15 = vrot.slane %v8691_v54, 6 }
 0x50f   :  { %390 = vrot.lane.b32.xlu1 %v389_v55, %s9730_s27 }
 0x581   :  { %v391_v56 = vpop.permute.xlu1 %390 }
 0x582   :  { %7385 = vmatmul.mubr.msk.f32.vlgmr.msra.gmra.mrb[0].mxu1 %vm85_vm0, %v391_v56 }
 0x583   :  { %7883 = vmatpush3.bf16.msra.mxu1 %v8639_v8  ;;  %7398 = vmatprep.mubr.msk.f32.mxu1 %vm8483_vm1, %v8484_v4 }
 0x584   :  { %7887 = vmatprep.subr.bf16.mxu1 %v8482_v3 }
 0x655   :  { %v460_v57 = vpop.f32.mrb[0].mxu1 }
 0x656   :  { %v461_v58 = vadd.f32 %v8668_v14, %v460_v57  ;;  %v7386_v59 = vpop.f32.mrb[1].mxu1 }
 0x658   :  { %v465_v60 = vrot.slane %v461_v58, 4 }
 0x65a   :  { %474 = vrot.lane.b32.xlu0 %v465_v60, %s9728_s3  ;;  %v467_v61 = vadd.f32 %v465_v60, %v8672_v18 }
 0x65c   :  { %v6884_v62 = vmul.f32 -1.442695, %v467_v61 }
 0x65e   :  { %8270 = vpow2.f32 %v6884_v62 }
 0x668   :  { %v8271_v63 = vpop.eup %8270 }
 0x669   :  { %v471_v0 = vadd.f32 1.0, %v8271_v63 }
 0x66b   :  { %8272 = vrcp.f32 %v471_v0 }
 0x675   :  { %v8273_v1 = vpop.eup %8272 }
 0x676   :  { %v484_v13 = vsub.f32 1.0, %v8273_v1  ;;  %v492_v17 = vmul.f32 %v8273_v1, %v490_v15 }
 0x6cc   :  { %v475_v5 = vpop.permute.xlu0 %474 }
 0x6cd   :  { %v477_v6 = vmul.f32 %v8273_v1, %v475_v5 }
 0x6cf   :  { %479 = vrot.lane.b32.xlu1 %v477_v6, %s9726_s8 }
 0x741   :  { %v480_v7 = vpop.permute.xlu1 %479 }
 0x742   :  { %v482_v10 = vadd.f32 %v480_v7, %v8672_v18 }
 0x744   :  { %8274 = vtanh.f32 %v482_v10 }
 0x74e   :  { %v8275_v11 = vpop.eup %8274 }
 0x74f   :  { %486 = vrot.lane.b32.xlu0 %v8275_v11, %s9730_s27 }
 0x7c1   :  { %v487_v16 = vpop.permute.xlu0 %486 }
 0x7c2   :  { %v489_v19 = vmul.f32 %v487_v16, %v484_v13 }
 0x7c4   :  { %v8707_v20 = vadd.f32 %v492_v17, %v489_v19 }
 0x7c6   :  { %v500_v21 = vrot.slane %v8707_v20, 4  ;;  %v601_v38 = vrot.slane %v8707_v20, 6 }
 0x7c8   :  { %501 = vrot.lane.b32.xlu1 %v500_v21, %s9730_s27 }
 0x83a   :  { %v502_v22 = vpop.permute.xlu1 %501 }
 0x83b   :  { %7392 = vmatmul.mubr.msk.f32.vlgmr.msra.gmra.mrb[6].mxu0 %vm85_vm0, %v502_v22 }
 0x83c   :  { %7886 = vmatpush3.bf16.msra.mxu0 %v8639_v8  ;;  %7405 = vmatprep.mubr.msk.f32.mxu0 %vm8483_vm1, %v8484_v4 }
 0x83d   :  { %7890 = vmatprep.subr.bf16.mxu0 %v8482_v3 }
 0x90e   :  { %v571_v23 = vpop.f32.mrb[6].mxu0 }
 0x90f   :  { %v572_v24 = vadd.f32 %v8668_v14, %v571_v23  ;;  %v7393_v25 = vpop.f32.mrb[7].mxu0 }
 0x911   :  { %v576_v26 = vrot.slane %v572_v24, 2 }
 0x913   :  { %585 = vrot.lane.b32.xlu0 %v576_v26, %s9728_s3  ;;  %v578_v27 = vadd.f32 %v576_v26, %v8672_v18 }
 0x915   :  { %v6886_v28 = vmul.f32 -1.442695, %v578_v27 }
 0x917   :  { %8276 = vpow2.f32 %v6886_v28 }
 0x921   :  { %v8277_v29 = vpop.eup %8276 }
 0x922   :  { %v582_v30 = vadd.f32 1.0, %v8277_v29 }
 0x924   :  { %8278 = vrcp.f32 %v582_v30 }
 0x92e   :  { %v8279_v31 = vpop.eup %8278 }
 0x92f   :  { %v595_v37 = vsub.f32 1.0, %v8279_v31  ;;  %v603_v40 = vmul.f32 %v8279_v31, %v601_v38 }
 0x985   :  { %v586_v32 = vpop.permute.xlu0 %585 }
 0x986   :  { %v588_v33 = vmul.f32 %v8279_v31, %v586_v32 }
 0x988   :  { %590 = vrot.lane.b32.xlu1 %v588_v33, %s9726_s8 }
 0x9fa   :  { %v591_v34 = vpop.permute.xlu1 %590 }
 0x9fb   :  { %v593_v35 = vadd.f32 %v591_v34, %v8672_v18 }
 0x9fd   :  { %8280 = vtanh.f32 %v593_v35 }
 0xa07   :  { %v8281_v36 = vpop.eup %8280 }
 0xa08   :  { %597 = vrot.lane.b32.xlu0 %v8281_v36, %s9730_s27 }
 0xa7a   :  { %v598_v39 = vpop.permute.xlu0 %597 }
 0xa7b   :  { %v600_v41 = vmul.f32 %v598_v39, %v595_v37 }
 0xa7d   :  { %v8723_v42 = vadd.f32 %v603_v40, %v600_v41 }
 0xa7f   :  { %v611_v43 = vrot.slane %v8723_v42, 6 }
 0xa81   :  { %612 = vrot.lane.b32.xlu1 %v611_v43, %s9730_s27 }
 0xaf3   :  { %v613_v44 = vpop.permute.xlu1 %612 }
 0xaf4   :  { %7399 = vmatmul.mubr.msk.f32.vlgmr.msra.gmra.mrb[2].mxu1 %vm85_vm0, %v613_v44 }
 0xaf5   :  { %7889 = vmatpush3.bf16.msra.mxu1 %v8639_v8  ;;  %7412 = vmatprep.mubr.msk.f32.mxu1 %vm8483_vm1, %v8484_v4 }
 0xbc7   :  { %v682_v18 = vpop.f32.mrb[2].mxu1 }
 0xbc8   :  { %v683_v45 = vadd.f32 %v8668_v14, %v682_v18  ;;  %v7400_v46 = vpop.f32.mrb[3].mxu1 }
 0xbca   :  { %694 = vrot.lane.b32.xlu0 %v683_v45, %s9728_s3  ;;  %v686_v47 = vadd.f32 %v683_v45, %v8663_v12 }
 0xbcc   :  { %v6888_v48 = vmul.f32 -1.442695, %v686_v47 }
 0xbce   :  { %8282 = vpow2.f32 %v6888_v48 }
 0xbd8   :  { %v8283_v49 = vpop.eup %8282 }
 0xbd9   :  { %v690_v50 = vadd.f32 1.0, %v8283_v49 }
 0xbdb   :  { %8284 = vrcp.f32 %v690_v50 }
 0xbe5   :  { %v8285_v51 = vpop.eup %8284 }
 0xbe6   :  { %v704_v58 = vsub.f32 1.0, %v8285_v51  ;;  %v711_v60 = vmul.f32 %v8285_v51, %v611_v43 }
 0xc3c   :  { %v695_v52 = vpop.permute.xlu0 %694 }
 0xc3d   :  { %v697_v53 = vmul.f32 %v8285_v51, %v695_v52 }
 0xc3f   :  { %699 = vrot.lane.b32.xlu1 %v697_v53, %s9726_s8 }
 0xcb1   :  { %v700_v55 = vpop.permute.xlu1 %699 }
 0xcb2   :  { %v702_v56 = vadd.f32 %v700_v55, %v8663_v12 }
 0xcb4   :  { %8286 = vtanh.f32 %v702_v56 }
 0xcbe   :  { %v8287_v57 = vpop.eup %8286 }
 0xcbf   :  { %706 = vrot.lane.b32.xlu0 %v8287_v57, %s9730_s27 }
 0xd31   :  { %v707_v59 = vpop.permute.xlu0 %706 }
 0xd32   :  { %v709_v61 = vmul.f32 %v707_v59, %v704_v58 }
 0xd34   :  { %v712_v62 = vadd.f32 %v711_v60, %v709_v61 }
 0xd36   :  { %714 = vrot.lane.b32.xlu1 %v712_v62, %s9730_s27  ;;  %v816_v22 = vrot.slane %v712_v62, 6 }
 0xda8   :  { %v715_v63 = vpop.permute.xlu1 %714 }
 0xda9   :  { %717 = vst.msk [vmem:[#allocation2 + $0x8] sm:$0x3] %vm279_vm2, %v715_v63  ;;  %7406 = vmatmul.mubr.msk.f32.vlgmr.msra.gmra.mrb[8].mxu0 %vm85_vm0, %v715_v63 }
 0xdaa   :  { %7892 = vmatpush3.bf16.msra.mxu0 %v8639_v8  ;;  %7419 = vmatprep.mubr.msk.f32.mxu0 %vm8483_vm1, %v8484_v4 }
 0xe7c   :  { %v786_v0 = vpop.f32.mrb[8].mxu0 }
 0xe7d   :  { %v787_v1 = vadd.f32 %v8668_v14, %v786_v0  ;;  %v7407_v5 = vpop.f32.mrb[9].mxu0 }
 0xe7f   :  { %v791_v6 = vrot.slane %v787_v1, 6 }
 0xe81   :  { %800 = vrot.lane.b32.xlu0 %v791_v6, %s9728_s3  ;;  %v793_v7 = vadd.f32 %v791_v6, %v8663_v12 }
 0xe83   :  { %v6890_v10 = vmul.f32 -1.442695, %v793_v7 }
 0xe85   :  { %8288 = vpow2.f32 %v6890_v10 }
 0xe8f   :  { %v8289_v11 = vpop.eup %8288 }
 0xe90   :  { %v797_v13 = vadd.f32 1.0, %v8289_v11 }
 0xe92   :  { %8290 = vrcp.f32 %v797_v13 }
 0xe9c   :  { %v8291_v15 = vpop.eup %8290 }
 0xe9d   :  { %v810_v23 = vsub.f32 1.0, %v8291_v15  ;;  %v818_v26 = vmul.f32 %v8291_v15, %v816_v22 }
 0xef3   :  { %v801_v16 = vpop.permute.xlu0 %800 }
 0xef4   :  { %v803_v8 = vmul.f32 %v8291_v15, %v801_v16 }
 0xef6   :  { %805 = vrot.lane.b32.xlu1 %v803_v8, %s9726_s8  ;;  %v1140_v8 = vld [vmem:[%s9752_s0 + $0x8] sm:$0xff] }
 0xf68   :  { %v806_v17 = vpop.permute.xlu1 %805 }
 0xf69   :  { %v808_v19 = vadd.f32 %v806_v17, %v8663_v12  ;;  %v1141_v17 = vld [vmem:[%s9752_s0 + $0x10] sm:$0xff] }
 0xf6b   :  { %8292 = vtanh.f32 %v808_v19 }
 0xf75   :  { %v8293_v21 = vpop.eup %8292 }
 0xf76   :  { %812 = vrot.lane.b32.xlu0 %v8293_v21, %s9730_s27  ;;  %v1142_v21 = vld [vmem:[%s9752_s0 + $0x18] sm:$0xff] }
 0xfe8   :  { %v813_v24 = vpop.permute.xlu0 %812 }
 0xfe9   :  { %v815_v25 = vmul.f32 %v813_v24, %v810_v23  ;;  %v7901_v23 = vpack.c.bf16 %v1142_v21, %v1141_v17  ;;  %v1143_v24 = vld [vmem:[%s9752_s0 + $0x20] sm:$0xff] }
 0xfeb   :  { %v8749_v27 = vadd.f32 %v818_v26, %v815_v25  ;;  %v1144_v25 = vld [vmem:[%s9752_s0 + $0x28] sm:$0xff] }
 0xfed   :  { %v825_v28 = vrot.slane %v8749_v27, 2  ;;  %v926_v45 = vrot.slane %v8749_v27, 6 }
 0xfef   :  { %826 = vrot.lane.b32.xlu1 %v825_v28, %s9730_s27 }
0x1061   :  { %v827_v29 = vpop.permute.xlu1 %826 }
0x1062   :  { %7413 = vmatmul.mubr.msk.f32.vlgmr.msra.gmra.mrb[4].mxu1 %vm85_vm0, %v827_v29 }
0x1135   :  { %v896_v30 = vpop.f32.mrb[4].mxu1 }
0x1136   :  { %v897_v31 = vadd.f32 %v8668_v14, %v896_v30  ;;  %v7414_v32 = vpop.f32.mrb[5].mxu1 }
0x1137   :  { %v1145_v32 = vld [vmem:[%s9752_s0 + $0x30] sm:$0xff] }
0x1138   :  { %v901_v33 = vrot.slane %v897_v31, 4 }
0x113a   :  { %910 = vrot.lane.b32.xlu0 %v901_v33, %s9728_s3  ;;  %v903_v34 = vadd.f32 %v901_v33, %v8663_v12  ;;  %v1146_v33 = vld [vmem:[%s9752_s0 + $0x38] sm:$0xff] }
0x113c   :  { %v6892_v35 = vmul.f32 -1.442695, %v903_v34  ;;  %v7909_v34 = vpack.c.bf16 %v1146_v33, %v1145_v32 }
0x113e   :  { %8294 = vpow2.f32 %v6892_v35  ;;  %v6895_v35 = vld [vmem:[%s9754_s5] ss:$0 sm:$0xff] }
0x1148   :  { %v8295_v36 = vpop.eup %8294 }
0x1149   :  { %v907_v37 = vadd.f32 1.0, %v8295_v36 }
0x114b   :  { %8296 = vrcp.f32 %v907_v37 }
0x1155   :  { %v8297_v38 = vpop.eup %8296 }
0x1156   :  { %v920_v18 = vsub.f32 1.0, %v8297_v38  ;;  %v928_v47 = vmul.f32 %v8297_v38, %v926_v45  ;;  %v6907_v45 = vld [vmem:[%s9748_s7 + $0x10] sm:$0xff] }
0x11ac   :  { %v911_v39 = vpop.permute.xlu0 %910 }
0x11ad   :  { %v913_v40 = vmul.f32 %v8297_v38, %v911_v39 }
0x11af   :  { %915 = vrot.lane.b32.xlu1 %v913_v40, %s9726_s8 }
0x1221   :  { %v916_v41 = vpop.permute.xlu1 %915 }
0x1222   :  { %v918_v43 = vadd.f32 %v916_v41, %v8663_v12 }
0x1224   :  { %8298 = vtanh.f32 %v918_v43  ;;  %v6901_v43 = vld [vmem:[%s9746_s24 + $0x10] sm:$0xff] }
0x122e   :  { %v8299_v44 = vpop.eup %8298 }
0x122f   :  { %922 = vrot.lane.b32.xlu0 %v8299_v44, %s9730_s27  ;;  %v6902_v44 = vld [vmem:[%s9746_s24 + $0x18] sm:$0xff] }
0x12a1   :  { %v923_v46 = vpop.permute.xlu0 %922 }
0x12a2   :  { %v925_v48 = vmul.f32 %v923_v46, %v920_v18  ;;  %v7913_v18 = vpack.c.bf16 %v6902_v44, %v6901_v43  ;;  %v6908_v46 = vld [vmem:[%s9748_s7 + $0x18] sm:$0xff] }
0x12a4   :  { %v929_v49 = vadd.f32 %v928_v47, %v925_v48  ;;  %v8838_v47 = vpack.c.bf16 %v6908_v46, %v6907_v45 }
0x12a6   :  { %v935_v50 = vrot.slane %v929_v49, 4  ;;  %v1036_v11 = vrot.slane %v929_v49, 6 }
0x12a8   :  { %936 = vrot.lane.b32.xlu1 %v935_v50, %s9730_s27  ;;  %v6900_v50 = vld [vmem:[%s9702_s9] ss:$0 sm:$0xff] }
0x131a   :  { %v937_v51 = vpop.permute.xlu1 %936 }
0x131b   :  { %7420 = vmatmul.mubr.msk.f32.vlgmr.msra.gmra.mrb[10].mxu0 %vm85_vm0, %v937_v51 }
0x13ee   :  { %v1006_v52 = vpop.f32.mrb[10].mxu0 }
0x13ef   :  { %v1007_v53 = vadd.f32 %v8668_v14, %v1006_v52  ;;  %v7421_v55 = vpop.f32.mrb[11].mxu0 }
0x13f1   :  { %v1011_v56 = vrot.slane %v1007_v53, 2 }
0x13f3   :  { %1020 = vrot.lane.b32.xlu0 %v1011_v56, %s9728_s3  ;;  %v1013_v57 = vadd.f32 %v1011_v56, %v8663_v12  ;;  %s9753_s3 = smov 112  }
0x13f5   :  { %v6894_v58 = vmul.f32 -1.442695, %v1013_v57 }
0x13f7   :  { %8300 = vpow2.f32 %v6894_v58  ;;  %v8872_v58 = vld [vmem:[%s9750_s26 + $0x1] ss:$0 sm:$0xff] }
0x1401   :  { %v8301_v59 = vpop.eup %8300 }
0x1402   :  { %v1017_v60 = vadd.f32 1.0, %v8301_v59 }
0x1404   :  { %8302 = vrcp.f32 %v1017_v60 }
0x140e   :  { %v8303_v61 = vpop.eup %8302 }
0x140f   :  { %v1030_v10 = vsub.f32 1.0, %v8303_v61  ;;  %v1038_v15 = vmul.f32 %v8303_v61, %v1036_v11 }
0x1465   :  { %v1021_v62 = vpop.permute.xlu0 %1020 }
0x1466   :  { %v1023_v63 = vmul.f32 %v8303_v61, %v1021_v62 }
0x1468   :  { %1025 = vrot.lane.b32.xlu1 %v1023_v63, %s9726_s8 }
0x146c   :  { %384 = vrot.lane.b32.xlu1 %v8691_v54, %s9730_s27 }
0x1470   :  { %606 = vrot.lane.b32.xlu1 %v8723_v42, %s9730_s27  ;;  %v1048_v42 = vld [vmem:[%s9751_s4 + $0x8] sm:$0xff] }
0x1474   :  { %931 = vrot.lane.b32.xlu1 %v929_v49, %s9730_s27 }
0x14da   :  { %v1026_v14 = vpop.permute.xlu1 %1025 }
0x14db   :  { %v1028_v0 = vadd.f32 %v1026_v14, %v8663_v12  ;;  %v1047_v12 = vld [vmem:[%s9751_s4] sm:$0xff] }
0x14dc   :  { %v7893_v7 = vpack.c.bf16 %v1048_v42, %v1047_v12 }
0x14dd   :  { %8304 = vtanh.f32 %v1028_v0 }
0x14de   :  { %v385_v1 = vpop.permute.xlu1 %384  ;;  %7894 = vmatprep.subr.bf16.mxu1 %v7893_v7 }
0x14df   :  { %388 = vst.msk [vmem:[#allocation2] sm:$0xc] %vm387_vm3, %v385_v1  ;;  %7896 = vmatpush3.bf16.msra.mxu1 %v7893_v7 }
0x14e0   :  { %7914 = vmatprep.subr.bf16.mxu1 %v7913_v18 }
0x14e2   :  { %v607_v5 = vpop.permute.xlu1 %606 }
0x14e3   :  { %610 = vst.msk [vmem:[#allocation2] sm:$0xc0] %vm609_vm4, %v607_v5 }
0x14e6   :  { %v932_v6 = vpop.permute.xlu1 %931 }
0x14e7   :  { %v8305_v54 = vpop.eup %8304  ;;  %934 = vst.msk [vmem:[#allocation2 + $0x8] sm:$0x30] %vm498_vm5, %v932_v6 }
0x14e8   :  { %1032 = vrot.lane.b32.xlu0 %v8305_v54, %s9730_s27 }
0x14ec   :  { %495 = vrot.lane.b32.xlu0 %v8707_v20, %s9730_s27  ;;  %v1139_v20 = vld [vmem:[%s9752_s0] sm:$0xff] }
0x14ed   :  { %v7897_v19 = vpack.c.bf16 %v1140_v8, %v1139_v20 }
0x14ef   :  { %7898 = vmatprep.subr.bf16.mxu0 %v7897_v19 }
0x14f0   :  { %821 = vrot.lane.b32.xlu0 %v8749_v27, %s9730_s27  ;;  %7900 = vmatpush3.bf16.msra.mxu0 %v7897_v19  ;;  %v7905_v27 = vpack.c.bf16 %v1144_v25, %v1143_v24  ;;  %s8492_s27 = smov 116  }
0x14f1   :  { %7902 = vmatprep.subr.bf16.mxu0 %v7901_v23 }
0x14f4   :  { %7904 = vmatpush3.bf16.msra.mxu0 %v7901_v23 }
0x14f5   :  { %7906 = vmatprep.subr.bf16.mxu0 %v7905_v27 }
0x14f8   :  { %7908 = vmatpush3.bf16.msra.mxu0 %v7905_v27 }
0x14f9   :  { %7910 = vmatprep.subr.bf16.mxu0 %v7909_v34 }
0x14fc   :  { %7912 = vmatpush3.bf16.msra.mxu0 %v7909_v34 }
0x14fd   :  { %7926 = vmatprep.subr.bf16.mxu0 %v8482_v3 }
0x155a   :  { %v1033_v13 = vpop.permute.xlu0 %1032 }
0x155b   :  { %v1035_v16 = vmul.f32 %v1033_v13, %v1030_v10 }
0x155d   :  { %v1039_v22 = vadd.f32 %v1038_v15, %v1035_v16 }
0x155e   :  { %v496_v26 = vpop.permute.xlu0 %495 }
0x155f   :  { %499 = vst.msk [vmem:[#allocation2] sm:$0x30] %vm498_vm5, %v496_v26  ;;  %1041 = vrot.lane.b32.xlu0 %v1039_v22, %s9753_s3 }
0x1562   :  { %v822_v28 = vpop.permute.xlu0 %821 }
0x1563   :  { %824 = vst.msk [vmem:[#allocation2 + $0x8] sm:$0xc] %vm387_vm3, %v822_v28 }
0x1566   :  { %v1045_v29 = vld [vmem:[#allocation2] sm:$0xff] }
0x1567   :  { %7426 = vmatprep.mubr.msk.f32.mxu1 %vm85_vm0, %v1045_v29 }
0x15d1   :  { %v1042_v30 = vpop.permute.xlu0 %1041 }
0x15d2   :  { %1044 = vst.msk [vmem:[#allocation2 + $0x8] sm:$0xc0] %vm609_vm4, %v1042_v30 }
0x15d9   :  { %v1046_v31 = vld [vmem:[#allocation2 + $0x8] sm:$0xff] }
0x15da   :  { %7427 = vmatmul.mubr.msk.f32.vlgmr.msra.gmra.mrb[6].mxu1 %vm85_vm0, %v1046_v31 }
0x15db   :  { %7916 = vmatpush3.bf16.msra.mxu1 %v7913_v18 }
0x15dc   :  { %7917 = vmatprep.subr.bf16.mxu1 %v8482_v3 }
0x16ad   :  { %v7428_v36 = vpop.f32.mrb[6].mxu1 }
0x16ae   :  { %v1134_v37 = vadd.f32 %v7428_v36, %v6895_v35  ;;  %v1128_v38 = vpop.f32.mrb[7].mxu1 }
0x16af   :  { %v1129_v39 = vadd.f32 %v6895_v35, %v1128_v38 }
0x16b0   :  { %v1138_v41 = vmax.f32 %v1134_v37, 0.0 }
0x16b1   :  { %v1137_v40 = vmax.f32 %v1129_v39, 0.0 }
0x16b3   :  { %7445 = vmatprep.mubr.msk.f32.mxu0 %vm1147_vm6, %v1137_v40 }
0x16b4   :  { %7446 = vmatmul.mubr.msk.f32.vlgmr.msra.gmra.mrb[12].mxu0 %vm1147_vm6, %v1138_v41 }
0x16b5   :  { %7480 = vmatprep.mubr.msk.f32.mxu0 %vm8483_vm1, %v8484_v4  ;;  %7928 = vmatpush3.bf16.msra.mxu0 %v8838_v47 }
0x16b6   :  { %7932 = vmatprep.subr.bf16.mxu0 %v8482_v3 }
0x1787   :  { %v7447_v48 = vpop.f32.mrb[12].mxu0 }
0x1788   :  { %v1230_v49 = vadd.f32 %v7447_v48, %v8644_v9  ;;  %v1220_v51 = vpop.f32.mrb[13].mxu0 }
0x1789   :  { %v1229_v52 = vadd.f32 %v1220_v51, %v8626_v2  ;;  %v6904_v2 = vld [vmem:[%s9749_s25 + $0x1] ss:$0 sm:$0xff] }
0x178a   :  { %v8849_v55 = vadd.f32 %v6900_v50, %v1230_v49 }
0x178b   :  { %v8847_v53 = vadd.f32 %v6900_v50, %v1229_v52 }
0x178d   :  { %7452 = vmatprep.mubr.msk.f32.mxu1 %vm85_vm0, %v8847_v53 }
0x178e   :  { %7453 = vmatmul.mubr.msk.f32.vlgmr.msra.gmra.mrb[8].mxu1 %vm85_vm0, %v8849_v55 }
0x178f   :  { %7919 = vmatpush3.bf16.msra.mxu1 %v8838_v47  ;;  %7459 = vmatprep.mubr.msk.f32.mxu1 %vm8483_vm1, %v8484_v4 }
0x1790   :  { %7920 = vmatprep.subr.bf16.mxu1 %v8482_v3 }
0x1792   :  { %7460 = vmatmul.mubr.f32.vlgmr.msra.gmra.mrb[10].mxu1 %v8484_v4 }
0x1793   :  { %7922 = vmatpush3.bf16.msra.mxu1 %v8838_v47  ;;  %7466 = vmatprep.mubr.msk.f32.mxu1 %vm8483_vm1, %v8484_v4 }
0x1794   :  { %7923 = vmatprep.subr.bf16.mxu1 %v8482_v3 }
0x1861   :  { %v7454_v9 = vpop.f32.mrb[8].mxu1 }
0x1862   :  { %v8867_v56 = vadd.f32 %v7454_v9, %v6904_v2  ;;  %v1323_v57 = vpop.f32.mrb[9].mxu1 }
0x1863   :  { %v8876_v62 = vadd.f32 %v6904_v2, %v1323_v57 }
0x1865   :  { %v1409_v59 = vpop.f32.mrb[10].mxu1 }
0x1866   :  { %v1410_v60 = vadd.f32 %v8872_v58, %v1409_v59  ;;  %v7461_v61 = vpop.f32.mrb[11].mxu1 }
0x1868   :  { %1421 = vrot.lane.b32.xlu1 %v1410_v60, %s9755_s29  ;;  %v1413_v63 = vadd.f32 %v1410_v60, %v8876_v62 }
0x186a   :  { %v6911_v14 = vmul.f32 -1.442695, %v1413_v63 }
0x186c   :  { %8306 = vpow2.f32 %v6911_v14 }
0x1876   :  { %v8307_v0 = vpop.eup %8306 }
0x1877   :  { %v1417_v1 = vadd.f32 1.0, %v8307_v0 }
0x1879   :  { %8308 = vrcp.f32 %v1417_v1 }
0x1883   :  { %v8309_v5 = vpop.eup %8308 }
0x1884   :  { %v1431_v10 = vsub.f32 1.0, %v8309_v5  ;;  %v1437_v13 = vmul.f32 0.0, %v8309_v5 }
0x18da   :  { %v1422_v6 = vpop.permute.xlu1 %1421 }
0x18db   :  { %v1424_v54 = vmul.f32 %v8309_v5, %v1422_v6 }
0x18dd   :  { %1426 = vrot.lane.b32.xlu0 %v1424_v54, %s9756_s2 }
0x194f   :  { %v1427_v12 = vpop.permute.xlu0 %1426 }
0x1950   :  { %v1429_v42 = vadd.f32 %v1427_v12, %v8876_v62 }
0x1952   :  { %8310 = vtanh.f32 %v1429_v42 }
0x195c   :  { %v8311_v7 = vpop.eup %8310 }
0x195d   :  { %1433 = vrot.lane.b32.xlu1 %v8311_v7, %s9753_s3 }
0x19cf   :  { %v1434_v11 = vpop.permute.xlu1 %1433 }
0x19d0   :  { %v1436_v15 = vmul.f32 %v1434_v11, %v1431_v10 }
0x19d2   :  { %v1438_v16 = vadd.f32 %v1437_v13, %v1436_v15 }
0x19d4   :  { %1440 = vrot.lane.b32.xlu0 %v1438_v16, %s9753_s3  ;;  %v1542_v32 = vrot.slane %v1438_v16, 6 }
0x1a46   :  { %v1441_v20 = vpop.permute.xlu0 %1440 }
0x1a47   :  { %1443 = vst.msk [vmem:[#allocation2] sm:$0x3] %vm279_vm2, %v1441_v20  ;;  %7467 = vmatmul.mubr.msk.f32.vlgmr.msra.gmra.mrb[12].mxu1 %vm85_vm0, %v1441_v20 }
0x1a48   :  { %7925 = vmatpush3.bf16.msra.mxu1 %v8838_v47  ;;  %7473 = vmatprep.mubr.msk.f32.mxu1 %vm8483_vm1, %v8484_v4 }
0x1a49   :  { %7929 = vmatprep.subr.bf16.mxu1 %v8482_v3 }
0x1b1a   :  { %v1512_v8 = vpop.f32.mrb[12].mxu1 }
0x1b1b   :  { %v1513_v17 = vadd.f32 %v8872_v58, %v1512_v8  ;;  %v7468_v19 = vpop.f32.mrb[13].mxu1 }
0x1b1d   :  { %v1517_v21 = vrot.slane %v1513_v17, 6 }
0x1b1f   :  { %1526 = vrot.lane.b32.xlu1 %v1517_v21, %s9755_s29  ;;  %v1519_v22 = vadd.f32 %v1517_v21, %v8876_v62 }
0x1b21   :  { %v6913_v23 = vmul.f32 -1.442695, %v1519_v22 }
0x1b23   :  { %8312 = vpow2.f32 %v6913_v23 }
0x1b2d   :  { %v8313_v24 = vpop.eup %8312 }
0x1b2e   :  { %v1523_v25 = vadd.f32 1.0, %v8313_v24 }
0x1b30   :  { %8314 = vrcp.f32 %v1523_v25 }
0x1b3a   :  { %v8315_v26 = vpop.eup %8314 }
0x1b3b   :  { %v1536_v33 = vsub.f32 1.0, %v8315_v26  ;;  %v1544_v36 = vmul.f32 %v8315_v26, %v1542_v32 }
0x1b91   :  { %v1527_v27 = vpop.permute.xlu1 %1526 }
0x1b92   :  { %v1529_v28 = vmul.f32 %v8315_v26, %v1527_v27 }
0x1b94   :  { %1531 = vrot.lane.b32.xlu0 %v1529_v28, %s9756_s2 }
0x1c06   :  { %v1532_v29 = vpop.permute.xlu0 %1531 }
0x1c07   :  { %v1534_v30 = vadd.f32 %v1532_v29, %v8876_v62 }
0x1c09   :  { %8316 = vtanh.f32 %v1534_v30 }
0x1c13   :  { %v8317_v31 = vpop.eup %8316 }
0x1c14   :  { %1538 = vrot.lane.b32.xlu1 %v8317_v31, %s9753_s3 }
0x1c86   :  { %v1539_v34 = vpop.permute.xlu1 %1538 }
0x1c87   :  { %v1541_v35 = vmul.f32 %v1539_v34, %v1536_v33 }
0x1c89   :  { %v8895_v37 = vadd.f32 %v1544_v36, %v1541_v35 }
0x1c8b   :  { %v1551_v38 = vrot.slane %v8895_v37, 2  ;;  %v1652_v59 = vrot.slane %v8895_v37, 6 }
0x1c8d   :  { %1552 = vrot.lane.b32.xlu0 %v1551_v38, %s9753_s3 }
0x1cff   :  { %v1553_v39 = vpop.permute.xlu0 %1552 }
0x1d00   :  { %7474 = vmatmul.mubr.msk.f32.vlgmr.msra.gmra.mrb[14].mxu1 %vm85_vm0, %v1553_v39 }
0x1d01   :  { %7931 = vmatpush3.bf16.msra.mxu1 %v8838_v47  ;;  %7487 = vmatprep.mubr.msk.f32.mxu1 %vm8483_vm1, %v8484_v4 }
0x1d02   :  { %7935 = vmatprep.subr.bf16.mxu1 %v8482_v3 }
0x1dd3   :  { %v1622_v40 = vpop.f32.mrb[14].mxu1 }
0x1dd4   :  { %v1623_v41 = vadd.f32 %v8872_v58, %v1622_v40  ;;  %v7475_v43 = vpop.f32.mrb[15].mxu1 }
0x1dd6   :  { %v1627_v44 = vrot.slane %v1623_v41, 4 }
0x1dd8   :  { %1636 = vrot.lane.b32.xlu1 %v1627_v44, %s9755_s29  ;;  %v1629_v18 = vadd.f32 %v1627_v44, %v8876_v62 }
0x1dda   :  { %v6915_v45 = vmul.f32 -1.442695, %v1629_v18 }
0x1ddc   :  { %8318 = vpow2.f32 %v6915_v45 }
0x1de6   :  { %v8319_v46 = vpop.eup %8318 }
0x1de7   :  { %v1633_v48 = vadd.f32 1.0, %v8319_v46 }
0x1de9   :  { %8320 = vrcp.f32 %v1633_v48 }
0x1df3   :  { %v8321_v49 = vpop.eup %8320 }
0x1df4   :  { %v1646_v57 = vsub.f32 1.0, %v8321_v49  ;;  %v1654_v61 = vmul.f32 %v8321_v49, %v1652_v59 }
0x1e4a   :  { %v1637_v50 = vpop.permute.xlu1 %1636 }
0x1e4b   :  { %v1639_v51 = vmul.f32 %v8321_v49, %v1637_v50 }
0x1e4d   :  { %1641 = vrot.lane.b32.xlu0 %v1639_v51, %s9756_s2 }
0x1ebf   :  { %v1642_v52 = vpop.permute.xlu0 %1641 }
0x1ec0   :  { %v1644_v2 = vadd.f32 %v1642_v52, %v8876_v62 }
0x1ec2   :  { %8322 = vtanh.f32 %v1644_v2 }
0x1ecc   :  { %v8323_v9 = vpop.eup %8322 }
0x1ecd   :  { %1648 = vrot.lane.b32.xlu1 %v8323_v9, %s9753_s3 }
0x1f3f   :  { %v1649_v60 = vpop.permute.xlu1 %1648 }
0x1f40   :  { %v1651_v63 = vmul.f32 %v1649_v60, %v1646_v57 }
0x1f42   :  { %v8911_v14 = vadd.f32 %v1654_v61, %v1651_v63 }
0x1f44   :  { %v1661_v0 = vrot.slane %v8911_v14, 4  ;;  %v1762_v21 = vrot.slane %v8911_v14, 6 }
0x1f46   :  { %1662 = vrot.lane.b32.xlu0 %v1661_v0, %s9753_s3 }
0x1fb8   :  { %v1663_v1 = vpop.permute.xlu0 %1662 }
0x1fb9   :  { %7481 = vmatmul.mubr.msk.f32.vlgmr.msra.gmra.mrb[14].mxu0 %vm85_vm0, %v1663_v1 }
0x1fba   :  { %7934 = vmatpush3.bf16.msra.mxu0 %v8838_v47  ;;  %7494 = vmatprep.mubr.msk.f32.mxu0 %vm8483_vm1, %v8484_v4 }
0x1fbb   :  { %7938 = vmatprep.subr.bf16.mxu0 %v8482_v3 }
0x208c   :  { %v1732_v5 = vpop.f32.mrb[14].mxu0 }
0x208d   :  { %v1733_v6 = vadd.f32 %v8872_v58, %v1732_v5  ;;  %v7482_v54 = vpop.f32.mrb[15].mxu0 }
0x208f   :  { %v1737_v12 = vrot.slane %v1733_v6, 2 }
0x2091   :  { %1746 = vrot.lane.b32.xlu1 %v1737_v12, %s9755_s29  ;;  %v1739_v42 = vadd.f32 %v1737_v12, %v8876_v62 }
0x2093   :  { %v6917_v7 = vmul.f32 -1.442695, %v1739_v42 }
0x2095   :  { %8324 = vpow2.f32 %v6917_v7 }
0x209f   :  { %v8325_v10 = vpop.eup %8324 }
0x20a0   :  { %v1743_v11 = vadd.f32 1.0, %v8325_v10 }
0x20a2   :  { %8326 = vrcp.f32 %v1743_v11 }
0x20ac   :  { %v8327_v13 = vpop.eup %8326 }
0x20ad   :  { %v1756_v19 = vsub.f32 1.0, %v8327_v13  ;;  %v1764_v23 = vmul.f32 %v8327_v13, %v1762_v21 }
0x2103   :  { %v1747_v15 = vpop.permute.xlu1 %1746 }
0x2104   :  { %v1749_v16 = vmul.f32 %v8327_v13, %v1747_v15 }
0x2106   :  { %1751 = vrot.lane.b32.xlu0 %v1749_v16, %s9756_s2 }
0x2178   :  { %v1752_v20 = vpop.permute.xlu0 %1751 }
0x2179   :  { %v1754_v8 = vadd.f32 %v1752_v20, %v8876_v62 }
0x217b   :  { %8328 = vtanh.f32 %v1754_v8 }
0x2185   :  { %v8329_v17 = vpop.eup %8328 }
0x2186   :  { %1758 = vrot.lane.b32.xlu1 %v8329_v17, %s9753_s3 }
0x21f8   :  { %v1759_v22 = vpop.permute.xlu1 %1758 }
0x21f9   :  { %v1761_v24 = vmul.f32 %v1759_v22, %v1756_v19 }
0x21fb   :  { %v8927_v25 = vadd.f32 %v1764_v23, %v1761_v24 }
0x21fd   :  { %v1771_v26 = vrot.slane %v8927_v25, 6 }
0x21ff   :  { %1772 = vrot.lane.b32.xlu0 %v1771_v26, %s9753_s3 }
0x2271   :  { %v1773_v27 = vpop.permute.xlu0 %1772 }
0x2272   :  { %7488 = vmatmul.mubr.msk.f32.vlgmr.msra.gmra.mrb[16].mxu1 %vm85_vm0, %v1773_v27 }
0x2273   :  { %7937 = vmatpush3.bf16.msra.mxu1 %v8838_v47  ;;  %7501 = vmatprep.mubr.msk.f32.mxu1 %vm8483_vm1, %v8484_v4 }
0x2345   :  { %v1842_v62 = vpop.f32.mrb[16].mxu1 }
0x2346   :  { %v1843_v28 = vadd.f32 %v8872_v58, %v1842_v62  ;;  %v7489_v29 = vpop.f32.mrb[17].mxu1 }
0x2348   :  { %1854 = vrot.lane.b32.xlu1 %v1843_v28, %s9755_s29  ;;  %v1846_v30 = vadd.f32 %v1843_v28, %v8867_v56 }
0x234a   :  { %v6919_v31 = vmul.f32 -1.442695, %v1846_v30 }
0x234c   :  { %8330 = vpow2.f32 %v6919_v31 }
0x2356   :  { %v8331_v32 = vpop.eup %8330 }
0x2357   :  { %v1850_v33 = vadd.f32 1.0, %v8331_v32 }
0x2359   :  { %8332 = vrcp.f32 %v1850_v33 }
0x2363   :  { %v8333_v34 = vpop.eup %8332 }
0x2364   :  { %v1864_v41 = vsub.f32 1.0, %v8333_v34  ;;  %v1871_v44 = vmul.f32 %v8333_v34, %v1771_v26 }
0x23ba   :  { %v1855_v35 = vpop.permute.xlu1 %1854 }
0x23bb   :  { %v1857_v36 = vmul.f32 %v8333_v34, %v1855_v35 }
0x23bd   :  { %1859 = vrot.lane.b32.xlu0 %v1857_v36, %s9756_s2 }
0x242f   :  { %v1860_v38 = vpop.permute.xlu0 %1859 }
0x2430   :  { %v1862_v39 = vadd.f32 %v1860_v38, %v8867_v56 }
0x2432   :  { %8334 = vtanh.f32 %v1862_v39 }
0x243c   :  { %v8335_v40 = vpop.eup %8334 }
0x243d   :  { %1866 = vrot.lane.b32.xlu1 %v8335_v40, %s9753_s3 }
0x24af   :  { %v1867_v43 = vpop.permute.xlu1 %1866 }
0x24b0   :  { %v1869_v18 = vmul.f32 %v1867_v43, %v1864_v41 }
0x24b2   :  { %v1872_v45 = vadd.f32 %v1871_v44, %v1869_v18 }
0x24b4   :  { %1874 = vrot.lane.b32.xlu0 %v1872_v45, %s9753_s3  ;;  %v1976_v1 = vrot.slane %v1872_v45, 6 }
0x2526   :  { %v1875_v46 = vpop.permute.xlu0 %1874 }
0x2527   :  { %1877 = vst.msk [vmem:[#allocation2 + $0x8] sm:$0x3] %vm279_vm2, %v1875_v46  ;;  %7495 = vmatmul.mubr.msk.f32.vlgmr.msra.gmra.mrb[16].mxu0 %vm85_vm0, %v1875_v46 }
0x2528   :  { %7940 = vmatpush3.bf16.msra.mxu0 %v8838_v47  ;;  %7508 = vmatprep.mubr.msk.f32.mxu0 %vm8483_vm1, %v8484_v4 }
0x25fa   :  { %v1946_v48 = vpop.f32.mrb[16].mxu0 }
0x25fb   :  { %v1947_v49 = vadd.f32 %v8872_v58, %v1946_v48  ;;  %v7496_v50 = vpop.f32.mrb[17].mxu0 }
0x25fd   :  { %v1951_v51 = vrot.slane %v1947_v49, 6 }
0x25ff   :  { %1960 = vrot.lane.b32.xlu1 %v1951_v51, %s9755_s29  ;;  %v1953_v52 = vadd.f32 %v1951_v51, %v8867_v56 }
0x2601   :  { %v6921_v2 = vmul.f32 -1.442695, %v1953_v52 }
0x2603   :  { %8336 = vpow2.f32 %v6921_v2 }
0x260d   :  { %v8337_v9 = vpop.eup %8336 }
0x260e   :  { %v1957_v57 = vadd.f32 1.0, %v8337_v9 }
0x2610   :  { %8338 = vrcp.f32 %v1957_v57 }
0x261a   :  { %v8339_v59 = vpop.eup %8338 }
0x261b   :  { %v1970_v5 = vsub.f32 1.0, %v8339_v59  ;;  %v1978_v12 = vmul.f32 %v8339_v59, %v1976_v1 }
0x2671   :  { %v1961_v60 = vpop.permute.xlu1 %1960 }
0x2672   :  { %v1963_v47 = vmul.f32 %v8339_v59, %v1961_v60  ;;  %v6933_v59 = vld [vmem:[%s9752_s0 + $0x48] sm:$0xff]  ;;  %v6934_v60 = vld [vmem:[%s9752_s0 + $0x50] sm:$0xff] }
0x2674   :  { %1965 = vrot.lane.b32.xlu0 %v1963_v47, %s9756_s2 }
0x26e6   :  { %v1966_v61 = vpop.permute.xlu0 %1965 }
0x26e7   :  { %v1968_v63 = vadd.f32 %v1966_v61, %v8867_v56 }
0x26e9   :  { %8340 = vtanh.f32 %v1968_v63 }
0x26f3   :  { %v8341_v0 = vpop.eup %8340 }
0x26f4   :  { %1972 = vrot.lane.b32.xlu1 %v8341_v0, %s9753_s3  ;;  %v6935_v0 = vld [vmem:[%s9752_s0 + $0x58] sm:$0xff] }
0x26f5   :  { %v7949_v1 = vpack.c.bf16 %v6935_v0, %v6934_v60 }
0x2766   :  { %v1973_v6 = vpop.permute.xlu1 %1972 }
0x2767   :  { %v1975_v54 = vmul.f32 %v1973_v6, %v1970_v5  ;;  %v6936_v5 = vld [vmem:[%s9752_s0 + $0x60] sm:$0xff]  ;;  %v6937_v6 = vld [vmem:[%s9752_s0 + $0x68] sm:$0xff] }
0x2769   :  { %v8953_v42 = vadd.f32 %v1978_v12, %v1975_v54 }
0x276b   :  { %v1985_v7 = vrot.slane %v8953_v42, 2  ;;  %v2086_v28 = vrot.slane %v8953_v42, 6 }
0x276d   :  { %1986 = vrot.lane.b32.xlu0 %v1985_v7, %s9753_s3 }
0x27df   :  { %v1987_v10 = vpop.permute.xlu0 %1986 }
0x27e0   :  { %7502 = vmatmul.mubr.msk.f32.vlgmr.msra.gmra.mrb[18].mxu1 %vm85_vm0, %v1987_v10 }
0x28b3   :  { %v2056_v11 = vpop.f32.mrb[18].mxu1 }
0x28b4   :  { %v2057_v13 = vadd.f32 %v8872_v58, %v2056_v11  ;;  %v7503_v15 = vpop.f32.mrb[19].mxu1 }
0x28b5   :  { %v6938_v15 = vld [vmem:[%s9752_s0 + $0x70] sm:$0xff] }
0x28b6   :  { %v2061_v16 = vrot.slane %v2057_v13, 4 }
0x28b8   :  { %2070 = vrot.lane.b32.xlu1 %v2061_v16, %s9755_s29  ;;  %v2063_v20 = vadd.f32 %v2061_v16, %v8867_v56  ;;  %v6939_v16 = vld [vmem:[%s9752_s0 + $0x78] sm:$0xff] }
0x28ba   :  { %v6923_v8 = vmul.f32 -1.442695, %v2063_v20  ;;  %v7957_v20 = vpack.c.bf16 %v6939_v16, %v6938_v15 }
0x28bc   :  { %8342 = vpow2.f32 %v6923_v8  ;;  %v6929_v8 = vld [vmem:[%s9754_s5 + $0x1] ss:$0 sm:$0xff] }
0x28c6   :  { %v8343_v17 = vpop.eup %8342 }
0x28c7   :  { %v2067_v19 = vadd.f32 1.0, %v8343_v17 }
0x28c9   :  { %8344 = vrcp.f32 %v2067_v19 }
0x28d3   :  { %v8345_v21 = vpop.eup %8344 }
0x28d4   :  { %v2080_v62 = vsub.f32 1.0, %v8345_v21  ;;  %v2088_v30 = vmul.f32 %v8345_v21, %v2086_v28  ;;  %v6950_v28 = vld [vmem:[%s9748_s7 + $0x20] sm:$0xff] }
0x292a   :  { %v2071_v22 = vpop.permute.xlu1 %2070 }
0x292b   :  { %v2073_v23 = vmul.f32 %v8345_v21, %v2071_v22 }
0x292d   :  { %2075 = vrot.lane.b32.xlu0 %v2073_v23, %s9756_s2 }
0x299f   :  { %v2076_v24 = vpop.permute.xlu0 %2075 }
0x29a0   :  { %v2078_v26 = vadd.f32 %v2076_v24, %v8867_v56 }
0x29a2   :  { %8346 = vtanh.f32 %v2078_v26  ;;  %v6944_v26 = vld [vmem:[%s9746_s24 + $0x20] sm:$0xff] }
0x29ac   :  { %v8347_v27 = vpop.eup %8346 }
0x29ad   :  { %2082 = vrot.lane.b32.xlu1 %v8347_v27, %s9753_s3  ;;  %v6945_v27 = vld [vmem:[%s9746_s24 + $0x28] sm:$0xff]  ;;  %s8496_s24 = smov 84  }
0x2a1f   :  { %v2083_v29 = vpop.permute.xlu1 %2082 }
0x2a20   :  { %v2085_v31 = vmul.f32 %v2083_v29, %v2080_v62  ;;  %v7961_v62 = vpack.c.bf16 %v6945_v27, %v6944_v26  ;;  %v6951_v29 = vld [vmem:[%s9748_s7 + $0x28] sm:$0xff]  ;;  %s9762_s7 = sld [smem:[#allocation14_spill]] }
0x2a22   :  { %v2089_v32 = vadd.f32 %v2088_v30, %v2085_v31  ;;  %v9042_v30 = vpack.c.bf16 %v6951_v29, %v6950_v28 }
0x2a24   :  { %v2095_v33 = vrot.slane %v2089_v32, 4  ;;  %v2196_v9 = vrot.slane %v2089_v32, 6 }
0x2a26   :  { %2096 = vrot.lane.b32.xlu0 %v2095_v33, %s9753_s3  ;;  %v6943_v33 = vld [vmem:[%s9702_s9 + $0x1] ss:$0 sm:$0xff] }
0x2a98   :  { %v2097_v34 = vpop.permute.xlu0 %2096 }
0x2a99   :  { %7509 = vmatmul.mubr.msk.f32.vlgmr.msra.gmra.mrb[18].mxu0 %vm85_vm0, %v2097_v34 }
0x2b6c   :  { %v2166_v35 = vpop.f32.mrb[18].mxu0 }
0x2b6d   :  { %v2167_v36 = vadd.f32 %v8872_v58, %v2166_v35  ;;  %v7510_v38 = vpop.f32.mrb[19].mxu0 }
0x2b6f   :  { %v2171_v39 = vrot.slane %v2167_v36, 2 }
0x2b71   :  { %2180 = vrot.lane.b32.xlu1 %v2171_v39, %s9755_s29  ;;  %v2173_v40 = vadd.f32 %v2171_v39, %v8867_v56 }
0x2b73   :  { %v6925_v41 = vmul.f32 -1.442695, %v2173_v40 }
0x2b75   :  { %8348 = vpow2.f32 %v6925_v41  ;;  %v9076_v41 = vld [vmem:[%s9750_s26 + $0x2] ss:$0 sm:$0xff]  ;;  %s8490_s26 = smov 120  }
0x2b7f   :  { %v8349_v43 = vpop.eup %8348 }
0x2b80   :  { %v2177_v44 = vadd.f32 1.0, %v8349_v43 }
0x2b82   :  { %8350 = vrcp.f32 %v2177_v44 }
0x2b8c   :  { %v8351_v18 = vpop.eup %8350 }
0x2b8d   :  { %v2190_v2 = vsub.f32 1.0, %v8351_v18  ;;  %v2198_v47 = vmul.f32 %v8351_v18, %v2196_v9 }
0x2be3   :  { %v2181_v45 = vpop.permute.xlu1 %2180 }
0x2be4   :  { %v2183_v46 = vmul.f32 %v8351_v18, %v2181_v45 }
0x2be6   :  { %2185 = vrot.lane.b32.xlu0 %v2183_v46, %s9756_s2 }
0x2bea   :  { %1547 = vrot.lane.b32.xlu0 %v8895_v37, %s9753_s3  ;;  %v6927_v37 = vld [vmem:[%s9751_s4 + $0x18] sm:$0xff] }
0x2bee   :  { %1767 = vrot.lane.b32.xlu0 %v8927_v25, %s9753_s3 }
0x2bf2   :  { %2091 = vrot.lane.b32.xlu0 %v2089_v32, %s9753_s3 }
0x2c58   :  { %v2186_v58 = vpop.permute.xlu0 %2185 }
0x2c59   :  { %v2188_v48 = vadd.f32 %v2186_v58, %v8867_v56  ;;  %v6926_v56 = vld [vmem:[%s9751_s4 + $0x10] sm:$0xff] }
0x2c5a   :  { %v7941_v25 = vpack.c.bf16 %v6927_v37, %v6926_v56 }
0x2c5b   :  { %8352 = vtanh.f32 %v2188_v48 }
0x2c5c   :  { %v1548_v49 = vpop.permute.xlu0 %1547  ;;  %7942 = vmatprep.subr.bf16.mxu1 %v7941_v25 }
0x2c5d   :  { %1550 = vst.msk [vmem:[#allocation2] sm:$0xc] %vm387_vm3, %v1548_v49  ;;  %7944 = vmatpush3.bf16.msra.mxu1 %v7941_v25 }
0x2c5e   :  { %7962 = vmatprep.subr.bf16.mxu1 %v7961_v62 }
0x2c60   :  { %v1768_v50 = vpop.permute.xlu0 %1767 }
0x2c61   :  { %1770 = vst.msk [vmem:[#allocation2] sm:$0xc0] %vm609_vm4, %v1768_v50 }
0x2c64   :  { %v2092_v51 = vpop.permute.xlu0 %2091 }
0x2c65   :  { %v8353_v52 = vpop.eup %8352  ;;  %2094 = vst.msk [vmem:[#allocation2 + $0x8] sm:$0x30] %vm498_vm5, %v2092_v51 }
0x2c66   :  { %2192 = vrot.lane.b32.xlu1 %v8353_v52, %s9753_s3 }
0x2c6a   :  { %1657 = vrot.lane.b32.xlu1 %v8911_v14, %s9753_s3  ;;  %v6932_v14 = vld [vmem:[%s9752_s0 + $0x40] sm:$0xff] }
0x2c6b   :  { %v7945_v63 = vpack.c.bf16 %v6933_v59, %v6932_v14 }
0x2c6d   :  { %7946 = vmatprep.subr.bf16.mxu0 %v7945_v63 }
0x2c6e   :  { %1981 = vrot.lane.b32.xlu1 %v8953_v42, %s9753_s3  ;;  %7948 = vmatpush3.bf16.msra.mxu0 %v7945_v63  ;;  %v7953_v42 = vpack.c.bf16 %v6937_v6, %v6936_v5 }
0x2c6f   :  { %7950 = vmatprep.subr.bf16.mxu0 %v7949_v1 }
0x2c72   :  { %7952 = vmatpush3.bf16.msra.mxu0 %v7949_v1 }
0x2c73   :  { %7954 = vmatprep.subr.bf16.mxu0 %v7953_v42 }
0x2c76   :  { %7956 = vmatpush3.bf16.msra.mxu0 %v7953_v42 }
0x2c77   :  { %7958 = vmatprep.subr.bf16.mxu0 %v7957_v20 }
0x2c7a   :  { %7960 = vmatpush3.bf16.msra.mxu0 %v7957_v20 }
0x2c7b   :  { %7974 = vmatprep.subr.bf16.mxu0 %v8482_v3 }
0x2cd8   :  { %v2193_v57 = vpop.permute.xlu1 %2192 }
0x2cd9   :  { %v2195_v61 = vmul.f32 %v2193_v57, %v2190_v2 }
0x2cdb   :  { %v2199_v54 = vadd.f32 %v2198_v47, %v2195_v61 }
0x2cdc   :  { %v1658_v12 = vpop.permute.xlu1 %1657 }
0x2cdd   :  { %1660 = vst.msk [vmem:[#allocation2] sm:$0x30] %vm498_vm5, %v1658_v12  ;;  %2201 = vrot.lane.b32.xlu1 %v2199_v54, %s9753_s3 }
0x2ce0   :  { %v1982_v7 = vpop.permute.xlu1 %1981 }
0x2ce1   :  { %1984 = vst.msk [vmem:[#allocation2 + $0x8] sm:$0xc] %vm387_vm3, %v1982_v7 }
0x2ce4   :  { %v2205_v10 = vld [vmem:[#allocation2] sm:$0xff] }
0x2ce5   :  { %7515 = vmatprep.mubr.msk.f32.mxu1 %vm85_vm0, %v2205_v10 }
0x2d4f   :  { %v2202_v11 = vpop.permute.xlu1 %2201 }
0x2d50   :  { %2204 = vst.msk [vmem:[#allocation2 + $0x8] sm:$0xc0] %vm609_vm4, %v2202_v11 }
0x2d57   :  { %v2206_v13 = vld [vmem:[#allocation2 + $0x8] sm:$0xff] }
0x2d58   :  { %7516 = vmatmul.mubr.msk.f32.vlgmr.msra.gmra.mrb[20].mxu1 %vm85_vm0, %v2206_v13 }
0x2d59   :  { %7964 = vmatpush3.bf16.msra.mxu1 %v7961_v62 }
0x2d5a   :  { %7965 = vmatprep.subr.bf16.mxu1 %v8482_v3 }
0x2e2b   :  { %v7517_v17 = vpop.f32.mrb[20].mxu1 }
0x2e2c   :  { %v2296_v19 = vadd.f32 %v7517_v17, %v6929_v8  ;;  %v2290_v21 = vpop.f32.mrb[21].mxu1 }
0x2e2d   :  { %v2291_v22 = vadd.f32 %v6929_v8, %v2290_v21 }
0x2e2e   :  { %v2300_v24 = vmax.f32 %v2296_v19, 0.0 }
0x2e2f   :  { %v2299_v23 = vmax.f32 %v2291_v22, 0.0 }
0x2e31   :  { %7534 = vmatprep.mubr.msk.f32.mxu0 %vm1147_vm6, %v2299_v23 }
0x2e32   :  { %7535 = vmatmul.mubr.msk.f32.vlgmr.msra.gmra.mrb[20].mxu0 %vm1147_vm6, %v2300_v24 }
0x2e33   :  { %7569 = vmatprep.mubr.msk.f32.mxu0 %vm8483_vm1, %v8484_v4  ;;  %7976 = vmatpush3.bf16.msra.mxu0 %v9042_v30 }
0x2e34   :  { %7980 = vmatprep.subr.bf16.mxu0 %v8482_v3 }
0x2f05   :  { %v7536_v31 = vpop.f32.mrb[20].mxu0 }
0x2f06   :  { %v2392_v32 = vadd.f32 %v7536_v31, %v8849_v55  ;;  %v2382_v34 = vpop.f32.mrb[21].mxu0 }
0x2f07   :  { %v2391_v35 = vadd.f32 %v2382_v34, %v8847_v53  ;;  %v6947_v53 = vld [vmem:[%s9749_s25 + $0x2] ss:$0 sm:$0xff]  ;;  %s8488_s25 = smov 108  }
0x2f08   :  { %v9053_v38 = vadd.f32 %v6943_v33, %v2392_v32 }
0x2f09   :  { %v9051_v36 = vadd.f32 %v6943_v33, %v2391_v35 }
0x2f0b   :  { %7541 = vmatprep.mubr.msk.f32.mxu1 %vm85_vm0, %v9051_v36 }
0x2f0c   :  { %7542 = vmatmul.mubr.msk.f32.vlgmr.msra.gmra.mrb[22].mxu1 %vm85_vm0, %v9053_v38 }
0x2f0d   :  { %7967 = vmatpush3.bf16.msra.mxu1 %v9042_v30  ;;  %7548 = vmatprep.mubr.msk.f32.mxu1 %vm8483_vm1, %v8484_v4 }
0x2f0e   :  { %7968 = vmatprep.subr.bf16.mxu1 %v8482_v3 }
0x2f10   :  { %7549 = vmatmul.mubr.f32.vlgmr.msra.gmra.mrb[24].mxu1 %v8484_v4 }
0x2f11   :  { %7970 = vmatpush3.bf16.msra.mxu1 %v9042_v30  ;;  %7555 = vmatprep.mubr.msk.f32.mxu1 %vm8483_vm1, %v8484_v4 }
0x2f12   :  { %7971 = vmatprep.subr.bf16.mxu1 %v8482_v3 }
0x2fdf   :  { %v7543_v55 = vpop.f32.mrb[22].mxu1 }
0x2fe0   :  { %v9071_v39 = vadd.f32 %v7543_v55, %v6947_v53  ;;  %v2486_v40 = vpop.f32.mrb[23].mxu1 }
0x2fe1   :  { %v9080_v45 = vadd.f32 %v6947_v53, %v2486_v40 }
0x2fe3   :  { %v2572_v43 = vpop.f32.mrb[24].mxu1 }
0x2fe4   :  { %v2573_v44 = vadd.f32 %v9076_v41, %v2572_v43  ;;  %v7550_v18 = vpop.f32.mrb[25].mxu1 }
0x2fe6   :  { %2584 = vrot.lane.b32.xlu0 %v2573_v44, %s9755_s29  ;;  %v2576_v46 = vadd.f32 %v2573_v44, %v9080_v45 }
0x2fe8   :  { %v6954_v58 = vmul.f32 -1.442695, %v2576_v46 }
0x2fea   :  { %8354 = vpow2.f32 %v6954_v58 }
0x2ff4   :  { %v8355_v48 = vpop.eup %8354 }
0x2ff5   :  { %v2580_v49 = vadd.f32 1.0, %v8355_v48 }
0x2ff7   :  { %8356 = vrcp.f32 %v2580_v49 }
0x3001   :  { %v8357_v50 = vpop.eup %8356 }
0x3002   :  { %v2594_v2 = vsub.f32 1.0, %v8357_v50  ;;  %v2600_v57 = vmul.f32 0.0, %v8357_v50 }
0x3058   :  { %v2585_v51 = vpop.permute.xlu0 %2584 }
0x3059   :  { %v2587_v52 = vmul.f32 %v8357_v50, %v2585_v51 }
0x305b   :  { %2589 = vrot.lane.b32.xlu1 %v2587_v52, %s9756_s2 }
0x30cd   :  { %v2590_v56 = vpop.permute.xlu1 %2589 }
0x30ce   :  { %v2592_v37 = vadd.f32 %v2590_v56, %v9080_v45 }
0x30d0   :  { %8358 = vtanh.f32 %v2592_v37 }
0x30da   :  { %v8359_v25 = vpop.eup %8358 }
0x30db   :  { %2596 = vrot.lane.b32.xlu0 %v8359_v25, %s9753_s3 }
0x314d   :  { %v2597_v9 = vpop.permute.xlu0 %2596 }
0x314e   :  { %v2599_v14 = vmul.f32 %v2597_v9, %v2594_v2 }
0x3150   :  { %v2601_v59 = vadd.f32 %v2600_v57, %v2599_v14 }
0x3152   :  { %2603 = vrot.lane.b32.xlu1 %v2601_v59, %s9753_s3  ;;  %v2705_v15 = vrot.slane %v2601_v59, 6 }
0x31c4   :  { %v2604_v60 = vpop.permute.xlu1 %2603 }
0x31c5   :  { %2606 = vst.msk [vmem:[#allocation2] sm:$0x3] %vm279_vm2, %v2604_v60  ;;  %7556 = vmatmul.mubr.msk.f32.vlgmr.msra.gmra.mrb[26].mxu1 %vm85_vm0, %v2604_v60 }
0x31c6   :  { %7973 = vmatpush3.bf16.msra.mxu1 %v9042_v30  ;;  %7562 = vmatprep.mubr.msk.f32.mxu1 %vm8483_vm1, %v8484_v4 }
0x31c7   :  { %7977 = vmatprep.subr.bf16.mxu1 %v8482_v3 }
0x3298   :  { %v2675_v47 = vpop.f32.mrb[26].mxu1 }
0x3299   :  { %v2676_v61 = vadd.f32 %v9076_v41, %v2675_v47  ;;  %v7557_v63 = vpop.f32.mrb[27].mxu1 }
0x329b   :  { %v2680_v0 = vrot.slane %v2676_v61, 6 }
0x329d   :  { %2689 = vrot.lane.b32.xlu0 %v2680_v0, %s9755_s29  ;;  %v2682_v1 = vadd.f32 %v2680_v0, %v9080_v45 }
0x329f   :  { %v6956_v5 = vmul.f32 -1.442695, %v2682_v1 }
0x32a1   :  { %8360 = vpow2.f32 %v6956_v5 }
0x32ab   :  { %v8361_v6 = vpop.eup %8360 }
0x32ac   :  { %v2686_v54 = vadd.f32 1.0, %v8361_v6 }
0x32ae   :  { %8362 = vrcp.f32 %v2686_v54 }
0x32b8   :  { %v8363_v12 = vpop.eup %8362 }
0x32b9   :  { %v2699_v16 = vsub.f32 1.0, %v8363_v12  ;;  %v2707_v17 = vmul.f32 %v8363_v12, %v2705_v15 }
0x330f   :  { %v2690_v42 = vpop.permute.xlu0 %2689 }
0x3310   :  { %v2692_v7 = vmul.f32 %v8363_v12, %v2690_v42 }
0x3312   :  { %2694 = vrot.lane.b32.xlu1 %v2692_v7, %s9756_s2 }
0x3384   :  { %v2695_v10 = vpop.permute.xlu1 %2694 }
0x3385   :  { %v2697_v11 = vadd.f32 %v2695_v10, %v9080_v45 }
0x3387   :  { %8364 = vtanh.f32 %v2697_v11 }
0x3391   :  { %v8365_v13 = vpop.eup %8364 }
0x3392   :  { %2701 = vrot.lane.b32.xlu0 %v8365_v13, %s9753_s3 }
0x3404   :  { %v2702_v20 = vpop.permute.xlu0 %2701 }
0x3405   :  { %v2704_v8 = vmul.f32 %v2702_v20, %v2699_v16 }
0x3407   :  { %v9099_v19 = vadd.f32 %v2707_v17, %v2704_v8 }
0x3409   :  { %v2714_v21 = vrot.slane %v9099_v19, 2  ;;  %v2815_v43 = vrot.slane %v9099_v19, 6 }
0x340b   :  { %2715 = vrot.lane.b32.xlu1 %v2714_v21, %s9753_s3 }
0x347d   :  { %v2716_v22 = vpop.permute.xlu1 %2715 }
0x347e   :  { %7563 = vmatmul.mubr.msk.f32.vlgmr.msra.gmra.mrb[28].mxu1 %vm85_vm0, %v2716_v22 }
0x347f   :  { %7979 = vmatpush3.bf16.msra.mxu1 %v9042_v30  ;;  %7576 = vmatprep.mubr.msk.f32.mxu1 %vm8483_vm1, %v8484_v4 }
0x3480   :  { %7983 = vmatprep.subr.bf16.mxu1 %v8482_v3 }
0x3551   :  { %v2785_v23 = vpop.f32.mrb[28].mxu1 }
0x3552   :  { %v2786_v24 = vadd.f32 %v9076_v41, %v2785_v23  ;;  %v7564_v26 = vpop.f32.mrb[29].mxu1 }
0x3554   :  { %v2790_v27 = vrot.slane %v2786_v24, 4 }
0x3556   :  { %2799 = vrot.lane.b32.xlu0 %v2790_v27, %s9755_s29  ;;  %v2792_v62 = vadd.f32 %v2790_v27, %v9080_v45 }
0x3558   :  { %v6958_v28 = vmul.f32 -1.442695, %v2792_v62 }
0x355a   :  { %8366 = vpow2.f32 %v6958_v28 }
0x3564   :  { %v8367_v29 = vpop.eup %8366 }
0x3565   :  { %v2796_v31 = vadd.f32 1.0, %v8367_v29 }
0x3567   :  { %8368 = vrcp.f32 %v2796_v31 }
0x3571   :  { %v8369_v32 = vpop.eup %8368 }
0x3572   :  { %v2809_v40 = vsub.f32 1.0, %v8369_v32  ;;  %v2817_v18 = vmul.f32 %v8369_v32, %v2815_v43 }
0x35c8   :  { %v2800_v33 = vpop.permute.xlu0 %2799 }
0x35c9   :  { %v2802_v34 = vmul.f32 %v8369_v32, %v2800_v33 }
0x35cb   :  { %2804 = vrot.lane.b32.xlu1 %v2802_v34, %s9756_s2 }
0x363d   :  { %v2805_v35 = vpop.permute.xlu1 %2804 }
0x363e   :  { %v2807_v53 = vadd.f32 %v2805_v35, %v9080_v45 }
0x3640   :  { %8370 = vtanh.f32 %v2807_v53 }
0x364a   :  { %v8371_v55 = vpop.eup %8370 }
0x364b   :  { %2811 = vrot.lane.b32.xlu0 %v8371_v55, %s9753_s3 }
0x36bd   :  { %v2812_v44 = vpop.permute.xlu0 %2811 }
0x36be   :  { %v2814_v46 = vmul.f32 %v2812_v44, %v2809_v40 }
0x36c0   :  { %v9115_v58 = vadd.f32 %v2817_v18, %v2814_v46 }
0x36c2   :  { %v2824_v48 = vrot.slane %v9115_v58, 4  ;;  %v2925_v0 = vrot.slane %v9115_v58, 6 }
0x36c4   :  { %2825 = vrot.lane.b32.xlu1 %v2824_v48, %s9753_s3 }
0x3736   :  { %v2826_v49 = vpop.permute.xlu1 %2825 }
0x3737   :  { %7570 = vmatmul.mubr.msk.f32.vlgmr.msra.gmra.mrb[22].mxu0 %vm85_vm0, %v2826_v49 }
0x3738   :  { %7982 = vmatpush3.bf16.msra.mxu0 %v9042_v30  ;;  %7583 = vmatprep.mubr.msk.f32.mxu0 %vm8483_vm1, %v8484_v4 }
0x3739   :  { %7986 = vmatprep.subr.bf16.mxu0 %v8482_v3 }
0x380a   :  { %v2895_v50 = vpop.f32.mrb[22].mxu0 }
0x380b   :  { %v2896_v51 = vadd.f32 %v9076_v41, %v2895_v50  ;;  %v7571_v52 = vpop.f32.mrb[23].mxu0 }
0x380d   :  { %v2900_v56 = vrot.slane %v2896_v51, 2 }
0x380f   :  { %2909 = vrot.lane.b32.xlu0 %v2900_v56, %s9755_s29  ;;  %v2902_v37 = vadd.f32 %v2900_v56, %v9080_v45 }
0x3811   :  { %v6960_v25 = vmul.f32 -1.442695, %v2902_v37 }
0x3813   :  { %8372 = vpow2.f32 %v6960_v25 }
0x381d   :  { %v8373_v2 = vpop.eup %8372 }
0x381e   :  { %v2906_v9 = vadd.f32 1.0, %v8373_v2 }
0x3820   :  { %8374 = vrcp.f32 %v2906_v9 }
0x382a   :  { %v8375_v57 = vpop.eup %8374 }
0x382b   :  { %v2919_v63 = vsub.f32 1.0, %v8375_v57  ;;  %v2927_v5 = vmul.f32 %v8375_v57, %v2925_v0 }
0x3881   :  { %v2910_v14 = vpop.permute.xlu0 %2909 }
0x3882   :  { %v2912_v59 = vmul.f32 %v8375_v57, %v2910_v14 }
0x3884   :  { %2914 = vrot.lane.b32.xlu1 %v2912_v59, %s9756_s2 }
0x38f6   :  { %v2915_v60 = vpop.permute.xlu1 %2914 }
0x38f7   :  { %v2917_v47 = vadd.f32 %v2915_v60, %v9080_v45 }
0x38f9   :  { %8376 = vtanh.f32 %v2917_v47 }
0x3903   :  { %v8377_v61 = vpop.eup %8376 }
0x3904   :  { %2921 = vrot.lane.b32.xlu0 %v8377_v61, %s9753_s3 }
0x3976   :  { %v2922_v1 = vpop.permute.xlu0 %2921 }
0x3977   :  { %v2924_v6 = vmul.f32 %v2922_v1, %v2919_v63 }
0x3979   :  { %v9131_v54 = vadd.f32 %v2927_v5, %v2924_v6 }
0x397b   :  { %v2934_v12 = vrot.slane %v9131_v54, 6 }
0x397d   :  { %2935 = vrot.lane.b32.xlu1 %v2934_v12, %s9753_s3 }
0x39ef   :  { %v2936_v42 = vpop.permute.xlu1 %2935 }
0x39f0   :  { %7577 = vmatmul.mubr.msk.f32.vlgmr.msra.gmra.mrb[30].mxu1 %vm85_vm0, %v2936_v42 }
0x39f1   :  { %7985 = vmatpush3.bf16.msra.mxu1 %v9042_v30  ;;  %7590 = vmatprep.mubr.msk.f32.mxu1 %vm8483_vm1, %v8484_v4 }
0x3ac3   :  { %v3005_v45 = vpop.f32.mrb[30].mxu1 }
0x3ac4   :  { %v3006_v7 = vadd.f32 %v9076_v41, %v3005_v45  ;;  %v7578_v10 = vpop.f32.mrb[31].mxu1 }
0x3ac6   :  { %3017 = vrot.lane.b32.xlu0 %v3006_v7, %s9755_s29  ;;  %v3009_v11 = vadd.f32 %v3006_v7, %v9071_v39 }
0x3ac8   :  { %v6962_v13 = vmul.f32 -1.442695, %v3009_v11 }
0x3aca   :  { %8378 = vpow2.f32 %v6962_v13 }
0x3ad4   :  { %v8379_v15 = vpop.eup %8378 }
0x3ad5   :  { %v3013_v16 = vadd.f32 1.0, %v8379_v15 }
0x3ad7   :  { %8380 = vrcp.f32 %v3013_v16 }
0x3ae1   :  { %v8381_v20 = vpop.eup %8380 }
0x3ae2   :  { %v3027_v24 = vsub.f32 1.0, %v8381_v20  ;;  %v3034_v27 = vmul.f32 %v8381_v20, %v2934_v12 }
0x3b38   :  { %v3018_v8 = vpop.permute.xlu0 %3017 }
0x3b39   :  { %v3020_v17 = vmul.f32 %v8381_v20, %v3018_v8 }
0x3b3b   :  { %3022 = vrot.lane.b32.xlu1 %v3020_v17, %s9756_s2 }
0x3bad   :  { %v3023_v21 = vpop.permute.xlu1 %3022 }
0x3bae   :  { %v3025_v22 = vadd.f32 %v3023_v21, %v9071_v39 }
0x3bb0   :  { %8382 = vtanh.f32 %v3025_v22 }
0x3bba   :  { %v8383_v23 = vpop.eup %8382 }
0x3bbb   :  { %3029 = vrot.lane.b32.xlu0 %v8383_v23, %s9753_s3 }
0x3c2d   :  { %v3030_v26 = vpop.permute.xlu0 %3029 }
0x3c2e   :  { %v3032_v62 = vmul.f32 %v3030_v26, %v3027_v24 }
0x3c30   :  { %v3035_v28 = vadd.f32 %v3034_v27, %v3032_v62 }
0x3c32   :  { %3037 = vrot.lane.b32.xlu1 %v3035_v28, %s9753_s3  ;;  %v3139_v49 = vrot.slane %v3035_v28, 6 }
0x3ca4   :  { %v3038_v29 = vpop.permute.xlu1 %3037 }
0x3ca5   :  { %3040 = vst.msk [vmem:[#allocation2 + $0x8] sm:$0x3] %vm279_vm2, %v3038_v29  ;;  %7584 = vmatmul.mubr.msk.f32.vlgmr.msra.gmra.mrb[24].mxu0 %vm85_vm0, %v3038_v29 }
0x3ca6   :  { %7988 = vmatpush3.bf16.msra.mxu0 %v9042_v30  ;;  %7597 = vmatprep.mubr.msk.f32.mxu0 %vm8483_vm1, %v8484_v4 }
0x3d78   :  { %v3109_v31 = vpop.f32.mrb[24].mxu0 }
0x3d79   :  { %v3110_v32 = vadd.f32 %v9076_v41, %v3109_v31  ;;  %v7585_v33 = vpop.f32.mrb[25].mxu0 }
0x3d7b   :  { %v3114_v34 = vrot.slane %v3110_v32, 6 }
0x3d7d   :  { %3123 = vrot.lane.b32.xlu0 %v3114_v34, %s9755_s29  ;;  %v3116_v35 = vadd.f32 %v3114_v34, %v9071_v39 }
0x3d7f   :  { %v6964_v53 = vmul.f32 -1.442695, %v3116_v35 }
0x3d81   :  { %8384 = vpow2.f32 %v6964_v53 }
0x3d8b   :  { %v8385_v55 = vpop.eup %8384 }
0x3d8c   :  { %v3120_v40 = vadd.f32 1.0, %v8385_v55 }
0x3d8e   :  { %8386 = vrcp.f32 %v3120_v40 }
0x3d98   :  { %v8387_v43 = vpop.eup %8386 }
0x3d99   :  { %v3133_v50 = vsub.f32 1.0, %v8387_v43  ;;  %v3141_v56 = vmul.f32 %v8387_v43, %v3139_v49 }
0x3def   :  { %v3124_v44 = vpop.permute.xlu0 %3123 }
0x3df0   :  { %v3126_v30 = vmul.f32 %v8387_v43, %v3124_v44  ;;  %v6976_v43 = vld [vmem:[%s9752_s0 + $0x88] sm:$0xff]  ;;  %v6977_v44 = vld [vmem:[%s9752_s0 + $0x90] sm:$0xff] }
0x3df2   :  { %3128 = vrot.lane.b32.xlu1 %v3126_v30, %s9756_s2 }
0x3e64   :  { %v3129_v18 = vpop.permute.xlu1 %3128 }
0x3e65   :  { %v3131_v46 = vadd.f32 %v3129_v18, %v9071_v39 }
0x3e67   :  { %8388 = vtanh.f32 %v3131_v46 }
0x3e71   :  { %v8389_v48 = vpop.eup %8388 }
0x3e72   :  { %3135 = vrot.lane.b32.xlu0 %v8389_v48, %s9753_s3  ;;  %v6978_v48 = vld [vmem:[%s9752_s0 + $0x98] sm:$0xff] }
0x3e73   :  { %v7997_v49 = vpack.c.bf16 %v6978_v48, %v6977_v44 }
0x3ee4   :  { %v3136_v51 = vpop.permute.xlu0 %3135 }
0x3ee5   :  { %v3138_v52 = vmul.f32 %v3136_v51, %v3133_v50  ;;  %v6979_v50 = vld [vmem:[%s9752_s0 + $0xa0] sm:$0xff]  ;;  %v6980_v51 = vld [vmem:[%s9752_s0 + $0xa8] sm:$0xff] }
0x3ee7   :  { %v9157_v37 = vadd.f32 %v3141_v56, %v3138_v52 }
0x3ee9   :  { %v3148_v25 = vrot.slane %v9157_v37, 2  ;;  %v3249_v7 = vrot.slane %v9157_v37, 6 }
0x3eeb   :  { %3149 = vrot.lane.b32.xlu1 %v3148_v25, %s9753_s3 }
0x3f5d   :  { %v3150_v2 = vpop.permute.xlu1 %3149 }
0x3f5e   :  { %7591 = vmatmul.mubr.msk.f32.vlgmr.msra.gmra.mrb[32].mxu1 %vm85_vm0, %v3150_v2 }
0x4031   :  { %v3219_v9 = vpop.f32.mrb[32].mxu1 }
0x4032   :  { %v3220_v57 = vadd.f32 %v9076_v41, %v3219_v9  ;;  %v7592_v14 = vpop.f32.mrb[33].mxu1 }
0x4033   :  { %v6981_v14 = vld [vmem:[%s9752_s0 + $0xb0] sm:$0xff] }
0x4034   :  { %v3224_v59 = vrot.slane %v3220_v57, 4 }
0x4036   :  { %3233 = vrot.lane.b32.xlu0 %v3224_v59, %s9755_s29  ;;  %v3226_v60 = vadd.f32 %v3224_v59, %v9071_v39  ;;  %v6982_v59 = vld [vmem:[%s9752_s0 + $0xb8] sm:$0xff] }
0x4038   :  { %v6966_v47 = vmul.f32 -1.442695, %v3226_v60  ;;  %v8005_v60 = vpack.c.bf16 %v6982_v59, %v6981_v14 }
0x403a   :  { %8390 = vpow2.f32 %v6966_v47  ;;  %v6972_v47 = vld [vmem:[%s9754_s5 + $0x2] ss:$0 sm:$0xff]  ;;  %s9759_s5 = sld [smem:[#allocation11_spill]] }
0x4044   :  { %v8391_v61 = vpop.eup %8390 }
0x4045   :  { %v3230_v63 = vadd.f32 1.0, %v8391_v61 }
0x4047   :  { %8392 = vrcp.f32 %v3230_v63 }
0x4051   :  { %v8393_v0 = vpop.eup %8392 }
0x4052   :  { %v3243_v45 = vsub.f32 1.0, %v8393_v0  ;;  %v3251_v11 = vmul.f32 %v8393_v0, %v3249_v7 }
0x40a8   :  { %v3234_v1 = vpop.permute.xlu0 %3233 }
0x40a9   :  { %v3236_v5 = vmul.f32 %v8393_v0, %v3234_v1 }
0x40ab   :  { %3238 = vrot.lane.b32.xlu1 %v3236_v5, %s9756_s2 }
0x411d   :  { %v3239_v6 = vpop.permute.xlu1 %3238 }
0x411e   :  { %v3241_v12 = vadd.f32 %v3239_v6, %v9071_v39 }
0x4120   :  { %8394 = vtanh.f32 %v3241_v12  ;;  %v3566_v12 = vld [vmem:[%s9703_s1] sm:$0xff] }
0x412a   :  { %v8395_v42 = vpop.eup %8394 }
0x412b   :  { %3245 = vrot.lane.b32.xlu0 %v8395_v42, %s9753_s3 }
0x419d   :  { %v3246_v10 = vpop.permute.xlu0 %3245 }
0x419e   :  { %v3248_v13 = vmul.f32 %v3246_v10, %v3243_v45  ;;  %v6986_v45 = vld [vmem:[%s9702_s9 + $0x2] ss:$0 sm:$0xff] }
0x41a0   :  { %v3252_v15 = vadd.f32 %v3251_v11, %v3248_v13 }
0x41a2   :  { %v3258_v16 = vrot.slane %v3252_v15, 4  ;;  %v3359_v55 = vrot.slane %v3252_v15, 6 }
0x41a4   :  { %3259 = vrot.lane.b32.xlu1 %v3258_v16, %s9753_s3 }
0x4216   :  { %v3260_v20 = vpop.permute.xlu1 %3259 }
0x4217   :  { %7598 = vmatmul.mubr.msk.f32.vlgmr.msra.gmra.mrb[26].mxu0 %vm85_vm0, %v3260_v20  ;;  %v3649_v20 = vld [vmem:[%s9704_s10] sm:$0xff] }
0x42ea   :  { %v3329_v8 = vpop.f32.mrb[26].mxu0 }
0x42eb   :  { %v3330_v17 = vadd.f32 %v9076_v41, %v3329_v8  ;;  %v7599_v21 = vpop.f32.mrb[27].mxu0  ;;  %v3650_v8 = vld [vmem:[%s9704_s10 + $0x8] sm:$0xff] }
0x42ed   :  { %v3334_v22 = vrot.slane %v3330_v17, 2  ;;  %v9248_v17 = vpack.c.bf16 %v3650_v8, %v3649_v20 }
0x42ef   :  { %3343 = vrot.lane.b32.xlu0 %v3334_v22, %s9755_s29  ;;  %v3336_v23 = vadd.f32 %v3334_v22, %v9071_v39  ;;  %v3728_v22 = vld [vmem:[%s9705_s11] sm:$0xff] }
0x42f1   :  { %v6968_v24 = vmul.f32 -1.442695, %v3336_v23  ;;  %v3729_v23 = vld [vmem:[%s9705_s11 + $0x8] sm:$0xff] }
0x42f3   :  { %8396 = vpow2.f32 %v6968_v24  ;;  %v9264_v24 = vpack.c.bf16 %v3729_v23, %v3728_v22 }
0x42fd   :  { %v8397_v26 = vpop.eup %8396 }
0x42fe   :  { %v3340_v27 = vadd.f32 1.0, %v8397_v26 }
0x4300   :  { %8398 = vrcp.f32 %v3340_v27 }
0x430a   :  { %v8399_v62 = vpop.eup %8398 }
0x430b   :  { %v3353_v53 = vsub.f32 1.0, %v8399_v62  ;;  %v3361_v30 = vmul.f32 %v8399_v62, %v3359_v55 }
0x4361   :  { %v3344_v28 = vpop.permute.xlu0 %3343 }
0x4362   :  { %v3346_v29 = vmul.f32 %v8399_v62, %v3344_v28  ;;  %v9281_v28 = vld [vmem:[%s9706_s12] ss:$0 sm:$0xff]  ;;  %s8489_s12 = smov 124  }
0x4364   :  { %3348 = vrot.lane.b32.xlu1 %v3346_v29, %s9756_s2  ;;  %s8491_s2 = smov 92  }
0x4368   :  { %2710 = vrot.lane.b32.xlu1 %v9099_v19, %s9753_s3  ;;  %v6970_v19 = vld [vmem:[%s9751_s4 + $0x28] sm:$0xff] }
0x436c   :  { %2930 = vrot.lane.b32.xlu1 %v9131_v54, %s9753_s3 }
0x4370   :  { %3254 = vrot.lane.b32.xlu1 %v3252_v15, %s9753_s3 }
0x43d6   :  { %v3349_v41 = vpop.permute.xlu1 %3348 }
0x43d7   :  { %v3351_v31 = vadd.f32 %v3349_v41, %v9071_v39  ;;  %v6969_v39 = vld [vmem:[%s9751_s4 + $0x20] sm:$0xff]  ;;  %s9761_s4 = sld [smem:[#allocation13_spill]] }
0x43d8   :  { %v7989_v54 = vpack.c.bf16 %v6970_v19, %v6969_v39 }
0x43d9   :  { %8400 = vtanh.f32 %v3351_v31 }
0x43da   :  { %v2711_v32 = vpop.permute.xlu1 %2710  ;;  %7990 = vmatprep.subr.bf16.mxu1 %v7989_v54 }
0x43db   :  { %2713 = vst.msk [vmem:[#allocation2] sm:$0xc] %vm387_vm3, %v2711_v32  ;;  %7992 = vmatpush3.bf16.msra.mxu1 %v7989_v54 }
0x43de   :  { %v2931_v33 = vpop.permute.xlu1 %2930 }
0x43df   :  { %2933 = vst.msk [vmem:[#allocation2] sm:$0xc0] %vm609_vm4, %v2931_v33 }
0x43e2   :  { %v3255_v34 = vpop.permute.xlu1 %3254 }
0x43e3   :  { %v8401_v35 = vpop.eup %8400  ;;  %3257 = vst.msk [vmem:[#allocation2 + $0x8] sm:$0x30] %vm498_vm5, %v3255_v34 }
0x43e4   :  { %3355 = vrot.lane.b32.xlu0 %v8401_v35, %s9753_s3 }
0x43e8   :  { %2820 = vrot.lane.b32.xlu0 %v9115_v58, %s9753_s3  ;;  %v6975_v58 = vld [vmem:[%s9752_s0 + $0x80] sm:$0xff]  ;;  %s8495_s0 = smov 88  }
0x43e9   :  { %v7993_v46 = vpack.c.bf16 %v6976_v43, %v6975_v58 }
0x43eb   :  { %7994 = vmatprep.subr.bf16.mxu0 %v7993_v46 }
0x43ec   :  { %3144 = vrot.lane.b32.xlu0 %v9157_v37, %s9753_s3  ;;  %7996 = vmatpush3.bf16.msra.mxu0 %v7993_v46  ;;  %v8001_v37 = vpack.c.bf16 %v6980_v51, %v6979_v50 }
0x43ed   :  { %7998 = vmatprep.subr.bf16.mxu0 %v7997_v49 }
0x43f0   :  { %8000 = vmatpush3.bf16.msra.mxu0 %v7997_v49 }
0x43f1   :  { %8002 = vmatprep.subr.bf16.mxu0 %v8001_v37 }
0x43f4   :  { %8004 = vmatpush3.bf16.msra.mxu0 %v8001_v37 }
0x43f5   :  { %8006 = vmatprep.subr.bf16.mxu0 %v8005_v60 }
0x43f8   :  { %8008 = vmatpush3.bf16.msra.mxu0 %v8005_v60 }
0x4456   :  { %v3356_v40 = vpop.permute.xlu0 %3355 }
0x4457   :  { %v3358_v18 = vmul.f32 %v3356_v40, %v3353_v53 }
0x4459   :  { %v3362_v52 = vadd.f32 %v3361_v30, %v3358_v18 }
0x445a   :  { %v2821_v56 = vpop.permute.xlu0 %2820 }
0x445b   :  { %2823 = vst.msk [vmem:[#allocation2] sm:$0x30] %vm498_vm5, %v2821_v56  ;;  %3364 = vrot.lane.b32.xlu0 %v3362_v52, %s9753_s3 }
0x445e   :  { %v3145_v25 = vpop.permute.xlu0 %3144 }
0x445f   :  { %3147 = vst.msk [vmem:[#allocation2 + $0x8] sm:$0xc] %vm387_vm3, %v3145_v25 }
0x4462   :  { %v3368_v2 = vld [vmem:[#allocation2] sm:$0xff] }
0x4463   :  { %7604 = vmatprep.mubr.msk.f32.mxu1 %vm85_vm0, %v3368_v2 }
0x44cd   :  { %v3365_v9 = vpop.permute.xlu0 %3364 }
0x44ce   :  { %3367 = vst.msk [vmem:[#allocation2 + $0x8] sm:$0xc0] %vm609_vm4, %v3365_v9 }
0x44d5   :  { %v3369_v57 = vld [vmem:[#allocation2 + $0x8] sm:$0xff] }
0x44d6   :  { %7605 = vmatmul.mubr.msk.f32.vlgmr.msra.gmra.mrb[34].mxu1 %vm85_vm0, %v3369_v57 }
0x44d7   :  { %7630 = vmatprep.mubr.msk.f32.mxu1 %vm85_vm0, %v3566_v12  ;;  %v4020_v12 = vld [vmem:[%s9707_s13] sm:$0xf] }
0x45a9   :  { %v7606_v61 = vpop.f32.mrb[34].mxu1 }
0x45aa   :  { %v3459_v63 = vadd.f32 %v7606_v61, %v6972_v47  ;;  %v3453_v0 = vpop.f32.mrb[35].mxu1 }
0x45ab   :  { %v3454_v1 = vadd.f32 %v6972_v47, %v3453_v0 }
0x45ac   :  { %v3463_v6 = vmax.f32 %v3459_v63, 0.0 }
0x45ad   :  { %v3462_v5 = vmax.f32 %v3454_v1, 0.0 }
0x45af   :  { %7623 = vmatprep.mubr.msk.f32.mxu0 %vm1147_vm6, %v3462_v5 }
0x45b0   :  { %7624 = vmatmul.mubr.msk.f32.vlgmr.msra.gmra.mrb[28].mxu0 %vm1147_vm6, %v3463_v6 }
0x4683   :  { %v7625_v42 = vpop.f32.mrb[28].mxu0 }
0x4684   :  { %v3555_v7 = vadd.f32 %v7625_v42, %v9053_v38  ;;  %v3545_v10 = vpop.f32.mrb[29].mxu0  ;;  %v3567_v38 = vld [vmem:[%s9703_s1 + $0x8] sm:$0xff] }
0x4685   :  { %v3554_v11 = vadd.f32 %v3545_v10, %v9051_v36 }
0x4686   :  { %v3565_v13 = vadd.f32 %v6986_v45, %v3555_v7 }
0x4687   :  { %v3564_v15 = vadd.f32 %v6986_v45, %v3554_v11 }
0x4689   :  { %v8009_v16 = vpack.c.bf16 %v3565_v13, %v3564_v15 }
0x468b   :  { %8010 = vmatprep.subr.bf16.mxu1 %v8009_v16 }
0x468c   :  { %8012 = vmatpush3.bf16.msra.mxu1 %v8009_v16 }
0x468d   :  { %8013 = vmatprep.subr.bf16.mxu1 %v8482_v3 }
0x468f   :  { %7631 = vmatmul.mubr.msk.f32.vlgmr.msra.gmra.mrb[36].mxu1 %vm85_vm0, %v3567_v38 }
0x4690   :  { %8015 = vmatpush3.bf16.msra.mxu1 %v9248_v17  ;;  %7637 = vmatprep.mubr.msk.f32.mxu1 %vm8483_vm1, %v8484_v4 }
0x4691   :  { %8017 = vmatprep.subr.bf16.mxu1 %v9264_v24 }
0x4762   :  { %v9255_v36 = vpop.f32.mrb[36].mxu1 }
0x4763   :  { %v3640_v21 = vpop.f32.mrb[37].mxu1 }
0x4764   :  { %7638 = vmatmul.mubr.msk.f32.vlgmr.msra.gmra.mrb[38].mxu1 %vm85_vm0, %v3640_v21 }
0x4765   :  { %8019 = vmatpush3.bf16.msra.mxu1 %v9264_v24 }
0x4837   :  { %v9268_v26 = vpop.f32.mrb[38].mxu1 }
0x4838   :  { %3725 = vrot.lane.b32.xlu1 %v9268_v26, %s9753_s3  ;;  %v7639_v27 = vpop.f32.mrb[39].mxu1  ;;  %7644 = vmatprep.mubr.msk.f32.mxu1 %vm85_vm0, %v9268_v26 }
0x48aa   :  { %v9274_v62 = vpop.permute.xlu1 %3725 }
0x48ab   :  { %7645 = vmatmul.mubr.msk.f32.vlgmr.msra.gmra.mrb[40].mxu1 %vm85_vm0, %v9274_v62 }
0x497e   :  { %v7646_v29 = vpop.f32.mrb[40].mxu1 }
0x497f   :  { %v3813_v41 = vadd.f32 %v7646_v29, %v9281_v28  ;;  %v3807_v31 = vpop.f32.mrb[41].mxu1 }
0x4980   :  { %v3808_v32 = vadd.f32 %v9281_v28, %v3807_v31 }
0x4981   :  { %v3817_v35 = vmul.f32 0.5, %v3813_v41 }
0x4982   :  { %v9285_v33 = vpack.i.bf16 %v3813_v41, %v3808_v32  ;;  %v3816_v34 = vmul.f32 0.5, %v3808_v32 }
0x4984   :  { %8184 = vrot.lane.b32.xlu1 %v9285_v33, %s8488_s25  ;;  %8179 = vrot.lane.b32.xlu0 %v9285_v33, %s9753_s3 }
0x4985   :  { %7651 = vmatprep.mubr.msk.f32.mxu1 %vm3825_vm7, %v3816_v34 }
0x4988   :  { %4116 = vrot.lane.b32.xlu1 %v3817_v35, %s8489_s12  ;;  %4114 = vrot.lane.b32.xlu0 %v3816_v34, %s8489_s12 }
0x49f6   :  { %v8185_v39 = vpop.permute.xlu1 %8184  ;;  %v8180_v19 = vpop.permute.xlu0 %8179 }
0x49f7   :  { %v8187_v54 = vunpack.i.h.bf16 %v8185_v39  ;;  %v8186_v53 = vunpack.i.l.bf16 %v8185_v39  ;;  %v8182_v55 = vunpack.i.h.bf16 %v8180_v19  ;;  %v8181_v40 = vunpack.i.l.bf16 %v8180_v19 }
0x49f9   :  { %v8020_v43 = vpack.c.bf16 %v8182_v55, %v8181_v40  ;;  %v8030_v44 = vpack.c.bf16 %v8187_v54, %v8186_v53 }
0x49fa   :  { %v4115_v30 = vpop.permute.xlu0 %4114  ;;  %v4117_v18 = vpop.permute.xlu1 %4116 }
0x49fb   :  { %8022 = vmatprep.subr.msk.bf16.mxu1 %vm9296_vm8, %v8020_v43 }
0x49fc   :  { %8025 = vmatpush3.bf16.xpose.msk.msra.mxu1 %vm9296_vm8, %v8020_v43 }
0x49fd   :  { %8032 = vmatprep.subr.msk.bf16.mxu1 %vm9296_vm8, %v8030_v44 }
0x4a03   :  { %7652 = vmatmul.mubr.msk.f32.vlgmr.msra.gmra.mrb[42].mxu1 %vm3825_vm7, %v3817_v35 }
0x4a04   :  { %8035 = vmatpush3.bf16.xpose.msk.msra.mxu1 %vm9296_vm8, %v8030_v44  ;;  %7670 = vmatprep.mubr.msk.f32.mxu1 %vm3825_vm7, %v4115_v30 }
0x4a0b   :  { %7671 = vmatmul.mubr.msk.f32.vlgmr.msra.gmra.mrb[44].mxu1 %vm3825_vm7, %v4117_v18 }
0x4ad6   :  { %v7653_v46 = vpop.f32.mrb[42].mxu1 }
0x4ad7   :  { %v3902_v48 = vpop.f32.mrb[43].mxu1  ;;  %v3914_v49 = vsel %vm85_vm0, %v7653_v46, -inf }
0x4ad8   :  { %3915 = vmax.xlane.f32.xlu1 %v3914_v49  ;;  %v3911_v50 = vsel %vm85_vm0, %v3902_v48, -inf }
0x4ad9   :  { %3912 = vmax.xlane.f32.xlu0 %v3911_v50 }
0x4ade   :  { %v9313_v51 = vpop.f32.mrb[44].mxu1 }
0x4adf   :  { %v9315_v52 = vpop.f32.mrb[45].mxu1  ;;  %v4208_v56 = vsel %vm85_vm0, %v9313_v51, -inf }
0x4ae0   :  { %v4205_v42 = vsel %vm85_vm0, %v9315_v52, -inf }
0x4ae9   :  { %8189 = vrot.lane.b32.xlu1 %v9285_v33, %s9755_s29 }
0x4aed   :  { %4402 = vrot.lane.b32.xlu1 %v3816_v34, %s8490_s26 }
0x4af1   :  { %4404 = vrot.lane.b32.xlu1 %v3817_v35, %s8490_s26 }
0x4b15   :  { %4209 = vmax.xlane.f32.xlu1 %v4208_v56 }
0x4b26   :  { %8199 = vrot.lane.b32.xlu1 %v9285_v33, %s8491_s2 }
0x4b2a   :  { %4690 = vrot.lane.b32.xlu1 %v3816_v34, %s8492_s27 }
0x4b2e   :  { %4692 = vrot.lane.b32.xlu1 %v3817_v35, %s8492_s27 }
0x4b65   :  { %v3916_v37 = vpop.xlane.xlu1 %3915 }
0x4b66   :  { %v3918_v25 = vsub.f32 %v7653_v46, %v3916_v37  ;;  %v3913_v2 = vpop.xlane.xlu0 %3912 }
0x4b67   :  { %v3917_v9 = vsub.f32 %v3902_v48, %v3913_v2 }
0x4b68   :  { %v3921_v57 = vmul.f32 1.442695, %v3918_v25 }
0x4b69   :  { %v3919_v14 = vmul.f32 1.442695, %v3917_v9  ;;  %v8190_v59 = vpop.permute.xlu1 %8189 }
0x4b6a   :  { %v8192_v60 = vunpack.i.h.bf16 %v8190_v59  ;;  %v8191_v47 = vunpack.i.l.bf16 %v8190_v59  ;;  %v7009_v59 = vld [vmem:[%s9707_s13 + $0x4] sm:$0xf] }
0x4b6b   :  { %8402 = vpow2.f32 %v3919_v14 }
0x4b6c   :  { %v8026_v61 = vpack.c.bf16 %v8192_v60, %v8191_v47  ;;  %8404 = vpow2.f32 %v3921_v57 }
0x4b6d   :  { %v4403_v63 = vpop.permute.xlu1 %4402 }
0x4b6e   :  { %8027 = vmatprep.subr.bf16.mxu0 %v8026_v61  ;;  %7689 = vmatprep.mubr.msk.f32.mxu1 %vm3825_vm7, %v4403_v63 }
0x4b6f   :  { %8029 = vmatpush3.bf16.msra.mxu0 %v8026_v61 }
0x4b70   :  { %7661 = vmatprep.subr.msk.mxu0 %vm4027_vm9, %v4020_v12 }
0x4b71   :  { %v4405_v7 = vpop.permute.xlu1 %4404 }
0x4b75   :  { %v8403_v0 = vpop.eup %8402 }
0x4b76   :  { %v3923_v1 = vsel %vm85_vm0, %v8403_v0, 0.0  ;;  %v8405_v5 = vpop.eup %8404 }
0x4b77   :  { %3924 = vadd.xlane.f32.xlu0 %v3923_v1  ;;  %v3926_v6 = vsel %vm85_vm0, %v8405_v5, 0.0 }
0x4b7b   :  { %3927 = vadd.xlane.f32.xlu0 %v3926_v6 }
0x4b91   :  { %8194 = vrot.lane.b32.xlu0 %v9285_v33, %s8493_s28 }
0x4ba2   :  { %v4210_v11 = vpop.xlane.xlu1 %4209 }
0x4ba3   :  { %v4212_v32 = vsub.f32 %v9313_v51, %v4210_v11 }
0x4ba5   :  { %v4215_v39 = vmul.f32 1.442695, %v4212_v32 }
0x4ba6   :  { %v8200_v8 = vpop.permute.xlu1 %8199 }
0x4ba7   :  { %v8202_v22 = vunpack.i.h.bf16 %v8200_v8  ;;  %v8201_v23 = vunpack.i.l.bf16 %v8200_v8  ;;  %v7019_v8 = vld [vmem:[%s9707_s13 + $0x8] sm:$0xf] }
0x4ba9   :  { %v8036_v41 = vpack.c.bf16 %v8202_v22, %v8201_v23 }
0x4baa   :  { %v4691_v31 = vpop.permute.xlu1 %4690 }
0x4bae   :  { %v4693_v14 = vpop.permute.xlu1 %4692 }
0x4bb0   :  { %4206 = vmax.xlane.f32.xlu0 %v4205_v42 }
0x4c04   :  { %v3925_v45 = vpop.xlane.xlu0 %3924 }
0x4c05   :  { %8406 = vrcp.f32 %v3925_v45 }
0x4c08   :  { %v3928_v10 = vpop.xlane.xlu0 %3927 }
0x4c09   :  { %8408 = vrcp.f32 %v3928_v10 }
0x4c0c   :  { %v8195_v13 = vpop.permute.xlu0 %8194 }
0x4c0d   :  { %v8197_v15 = vunpack.i.h.bf16 %v8195_v13  ;;  %v8196_v16 = vunpack.i.l.bf16 %v8195_v13 }
0x4c0f   :  { %v8407_v20 = vpop.eup %8406  ;;  %v8040_v38 = vpack.c.bf16 %v8197_v15, %v8196_v16 }
0x4c10   :  { %v3931_v21 = vmul.f32 %v8407_v20, %v8403_v0 }
0x4c11   :  { %8042 = vmatprep.subr.msk.bf16.mxu1 %vm9296_vm8, %v8040_v38 }
0x4c12   :  { %7658 = vmatprep.mubr.msk.f32.mxu0 %vm85_vm0, %v3931_v21  ;;  %8045 = vmatpush3.bf16.xpose.msk.msra.mxu1 %vm9296_vm8, %v8040_v38 }
0x4c13   :  { %v8409_v27 = vpop.eup %8408 }
0x4c14   :  { %v3932_v29 = vmul.f32 %v8409_v27, %v8405_v5 }
0x4c16   :  { %7659 = vmatmul.mubr.msk.f32.vlgmr.msra.gmra.mrb[30].mxu0 %vm85_vm0, %v3932_v29 }
0x4c17   :  { %7662 = vmatpush3.msk.msra.mxu0 %vm4027_vm9, %v4020_v12 }
0x4c18   :  { %8037 = vmatprep.subr.bf16.mxu0 %v8036_v41 }
0x4c19   :  { %7690 = vmatmul.mubr.msk.f32.vlgmr.msra.gmra.mrb[46].mxu1 %vm3825_vm7, %v4405_v7 }
0x4c1a   :  { %7708 = vmatprep.mubr.msk.f32.mxu1 %vm3825_vm7, %v4691_v31 }
0x4c3d   :  { %v4207_v34 = vpop.xlane.xlu0 %4206 }
0x4c3e   :  { %v4211_v35 = vsub.f32 %v9315_v52, %v4207_v34 }
0x4c40   :  { %v4213_v19 = vmul.f32 1.442695, %v4211_v35 }
0x4c42   :  { %8410 = vpow2.f32 %v4213_v19 }
0x4c43   :  { %8412 = vpow2.f32 %v4215_v39 }
0x4c4c   :  { %v8411_v54 = vpop.eup %8410 }
0x4c4d   :  { %v4217_v53 = vsel %vm85_vm0, %v8411_v54, 0.0  ;;  %v8413_v55 = vpop.eup %8412 }
0x4c4e   :  { %4218 = vadd.xlane.f32.xlu0 %v4217_v53  ;;  %v4220_v40 = vsel %vm85_vm0, %v8413_v55, 0.0 }
0x4c52   :  { %4221 = vadd.xlane.f32.xlu0 %v4220_v40 }
0x4c68   :  { %8204 = vrot.lane.b32.xlu0 %v9285_v33, %s8494_s21 }
0x4cdb   :  { %v4219_v43 = vpop.xlane.xlu0 %4218 }
0x4cdc   :  { %8414 = vrcp.f32 %v4219_v43 }
0x4cdf   :  { %v4222_v44 = vpop.xlane.xlu0 %4221 }
0x4ce0   :  { %8416 = vrcp.f32 %v4222_v44 }
0x4ce3   :  { %v8205_v30 = vpop.permute.xlu0 %8204 }
0x4ce4   :  { %v8207_v18 = vunpack.i.h.bf16 %v8205_v30  ;;  %v8206_v46 = vunpack.i.l.bf16 %v8205_v30 }
0x4ce6   :  { %v8050_v48 = vpack.c.bf16 %v8207_v18, %v8206_v46  ;;  %v8415_v49 = vpop.eup %8414 }
0x4ce7   :  { %v4225_v56 = vmul.f32 %v8415_v49, %v8411_v54 }
0x4ce8   :  { %8052 = vmatprep.subr.msk.bf16.mxu1 %vm9296_vm8, %v8050_v48 }
0x4ce9   :  { %v7660_v50 = vpop.f32.mrb[30].mxu0  ;;  %8055 = vmatpush3.bf16.xpose.msk.msra.mxu1 %vm9296_vm8, %v8050_v48 }
0x4cea   :  { %v4011_v51 = vpop.f32.mrb[31].mxu0  ;;  %v8417_v52 = vpop.eup %8416 }
0x4ceb   :  { %7663 = vmatprep.mubr.msk.f32.mxu0 %vm3825_vm7, %v4011_v51  ;;  %v4226_v9 = vmul.f32 %v8417_v52, %v8413_v55 }
0x4cec   :  { %7664 = vmatmul.mubr.msk.f32.vlgmr.msra.gmra.mrb[32].mxu0 %vm3825_vm7, %v7660_v50  ;;  %v7691_v37 = vpop.f32.mrb[46].mxu1 }
0x4ced   :  { %8039 = vmatpush3.bf16.msra.mxu0 %v8036_v41  ;;  %7677 = vmatprep.mubr.msk.f32.mxu0 %vm85_vm0, %v4225_v56  ;;  %v4484_v25 = vpop.f32.mrb[47].mxu1  ;;  %v4496_v2 = vsel %vm85_vm0, %v7691_v37, -inf }
0x4cee   :  { %4497 = vmax.xlane.f32.xlu1 %v4496_v2  ;;  %v4493_v57 = vsel %vm85_vm0, %v4484_v25, -inf  ;;  %7680 = vmatprep.subr.msk.mxu0 %vm4027_vm9, %v7009_v59 }
0x4cef   :  { %4494 = vmax.xlane.f32.xlu0 %v4493_v57  ;;  %v9402_v57 = vld [vmem:[%s9708_s14] ss:$0 sm:$0xff] }
0x4cf0   :  { %7678 = vmatmul.mubr.msk.f32.vlgmr.msra.gmra.mrb[34].mxu0 %vm85_vm0, %v4226_v9  ;;  %7709 = vmatmul.mubr.msk.f32.vlgmr.msra.gmra.mrb[48].mxu1 %vm3825_vm7, %v4693_v14 }
0x4cf1   :  { %7681 = vmatpush3.msk.msra.mxu0 %vm4027_vm9, %v7009_v59 }
0x4cff   :  { %8209 = vrot.lane.b32.xlu1 %v9285_v33, %s8495_s0 }
0x4d03   :  { %8214 = vrot.lane.b32.xlu1 %v9285_v33, %s8496_s24 }
0x4d7b   :  { %v4498_v60 = vpop.xlane.xlu1 %4497 }
0x4d7c   :  { %v4500_v47 = vsub.f32 %v7691_v37, %v4498_v60  ;;  %v4495_v61 = vpop.xlane.xlu0 %4494  ;;  %v7029_v37 = vld [vmem:[%s9707_s13 + $0xc] sm:$0xf] }
0x4d7d   :  { %v4499_v63 = vsub.f32 %v4484_v25, %v4495_v61 }
0x4d7e   :  { %v4503_v0 = vmul.f32 1.442695, %v4500_v47 }
0x4d7f   :  { %v4501_v1 = vmul.f32 1.442695, %v4499_v63  ;;  %v8210_v5 = vpop.permute.xlu1 %8209 }
0x4d80   :  { %v8212_v6 = vunpack.i.h.bf16 %v8210_v5  ;;  %v8211_v12 = vunpack.i.l.bf16 %v8210_v5 }
0x4d81   :  { %8418 = vpow2.f32 %v4501_v1 }
0x4d82   :  { %v8046_v42 = vpack.c.bf16 %v8212_v6, %v8211_v12  ;;  %8420 = vpow2.f32 %v4503_v0 }
0x4d83   :  { %v8215_v27 = vpop.permute.xlu1 %8214 }
0x4d84   :  { %8047 = vmatprep.subr.bf16.mxu0 %v8046_v42  ;;  %v8217_v41 = vunpack.i.h.bf16 %v8215_v27  ;;  %v8216_v31 = vunpack.i.l.bf16 %v8215_v27 }
0x4d86   :  { %v8056_v35 = vpack.c.bf16 %v8217_v41, %v8216_v31 }
0x4d8b   :  { %v8419_v45 = vpop.eup %8418 }
0x4d8c   :  { %v4505_v33 = vsel %vm85_vm0, %v8419_v45, 0.0  ;;  %v8421_v7 = vpop.eup %8420 }
0x4d8d   :  { %4506 = vadd.xlane.f32.xlu0 %v4505_v33  ;;  %v4508_v10 = vsel %vm85_vm0, %v8421_v7, 0.0 }
0x4d91   :  { %4509 = vadd.xlane.f32.xlu0 %v4508_v10 }
0x4dc3   :  { %v7679_v11 = vpop.f32.mrb[34].mxu0  ;;  %v7710_v13 = vpop.f32.mrb[48].mxu1 }
0x4dc4   :  { %v4305_v15 = vpop.f32.mrb[35].mxu0  ;;  %v4772_v16 = vpop.f32.mrb[49].mxu1  ;;  %v4784_v38 = vsel %vm85_vm0, %v7710_v13, -inf }
0x4dc5   :  { %7682 = vmatprep.mubr.msk.f32.mxu0 %vm3825_vm7, %v4305_v15  ;;  %v4781_v20 = vsel %vm85_vm0, %v4772_v16, -inf }
0x4dc6   :  { %7683 = vmatmul.mubr.msk.f32.vlgmr.msra.gmra.mrb[32].mxu0 %vm3825_vm7, %v7679_v11  ;;  %4782 = vmax.xlane.f32.xlu0 %v4781_v20  ;;  %v5118_v20 = vld [vmem:[%s9710_s17 + $0x8] sm:$0xff] }
0x4dc7   :  { %8049 = vmatpush3.bf16.msra.mxu0 %v8046_v42 }
0x4dc8   :  { %7699 = vmatprep.subr.msk.mxu0 %vm4027_vm9, %v7019_v8 }
0x4dca   :  { %4785 = vmax.xlane.f32.xlu0 %v4784_v38 }
0x4e1a   :  { %v4507_v21 = vpop.xlane.xlu0 %4506 }
0x4e1b   :  { %8422 = vrcp.f32 %v4507_v21  ;;  %v5120_v21 = vld [vmem:[%s9710_s17 + $0x18] sm:$0xff] }
0x4e1e   :  { %v4510_v22 = vpop.xlane.xlu0 %4509 }
0x4e1f   :  { %8424 = vrcp.f32 %v4510_v22 }
0x4e25   :  { %v8423_v23 = vpop.eup %8422 }
0x4e26   :  { %v4513_v29 = vmul.f32 %v8423_v23, %v8419_v45  ;;  %v5122_v23 = vld [vmem:[%s9710_s17 + $0x28] sm:$0xff] }
0x4e28   :  { %7696 = vmatprep.mubr.msk.f32.mxu0 %vm85_vm0, %v4513_v29 }
0x4e29   :  { %v8425_v32 = vpop.eup %8424 }
0x4e2a   :  { %v4514_v34 = vmul.f32 %v8425_v32, %v8421_v7 }
0x4e2c   :  { %7697 = vmatmul.mubr.msk.f32.vlgmr.msra.gmra.mrb[36].mxu0 %vm85_vm0, %v4514_v34 }
0x4e2d   :  { %7700 = vmatpush3.msk.msra.mxu0 %vm4027_vm9, %v7019_v8  ;;  %v5119_v8 = vld [vmem:[%s9710_s17 + $0x10] sm:$0xff] }
0x4e2e   :  { %8057 = vmatprep.subr.bf16.mxu0 %v8056_v35  ;;  %v9437_v22 = vpack.c.bf16 %v5120_v21, %v5119_v8 }
0x4e53   :  { %v4783_v39 = vpop.xlane.xlu0 %4782 }
0x4e54   :  { %v4787_v19 = vsub.f32 %v4772_v16, %v4783_v39  ;;  %v5117_v16 = vld [vmem:[%s9710_s17] sm:$0xff] }
0x4e55   :  { %v9432_v38 = vpack.c.bf16 %v5118_v20, %v5117_v16 }
0x4e56   :  { %v4789_v54 = vmul.f32 1.442695, %v4787_v19  ;;  %v9456_v19 = vld [vmem:[%s9711_s19] ss:$0 sm:$0xff] }
0x4e57   :  { %v4786_v53 = vpop.xlane.xlu0 %4785 }
0x4e58   :  { %8426 = vpow2.f32 %v4789_v54  ;;  %v4788_v55 = vsub.f32 %v7710_v13, %v4786_v53  ;;  %v5026_v13 = vld [vmem:[%s9709_s15 + $0x8] sm:$0xff]  ;;  %v9461_v53 = vld [vmem:[%s9712_s20] ss:$0 sm:$0xff] }
0x4e5a   :  { %v4791_v40 = vmul.f32 1.442695, %v4788_v55 }
0x4e5c   :  { %8428 = vpow2.f32 %v4791_v40 }
0x4e62   :  { %v8427_v43 = vpop.eup %8426 }
0x4e63   :  { %v4793_v44 = vsel %vm85_vm0, %v8427_v43, 0.0 }
0x4e64   :  { %4794 = vadd.xlane.f32.xlu0 %v4793_v44 }
0x4e66   :  { %v8429_v30 = vpop.eup %8428 }
0x4e67   :  { %v4796_v18 = vsel %vm85_vm0, %v8429_v30, 0.0 }
0x4e68   :  { %4797 = vadd.xlane.f32.xlu0 %v4796_v18 }
0x4ef1   :  { %v4795_v46 = vpop.xlane.xlu0 %4794 }
0x4ef2   :  { %8430 = vrcp.f32 %v4795_v46  ;;  %v5123_v46 = vld [vmem:[%s9710_s17 + $0x30] sm:$0xff] }
0x4ef5   :  { %v4798_v48 = vpop.xlane.xlu0 %4797 }
0x4ef6   :  { %8432 = vrcp.f32 %v4798_v48  ;;  %v5124_v48 = vld [vmem:[%s9710_s17 + $0x38] sm:$0xff] }
0x4efc   :  { %v8431_v49 = vpop.eup %8430 }
0x4efd   :  { %v4801_v56 = vmul.f32 %v8431_v49, %v8427_v43  ;;  %v9488_v49 = vpack.c.bf16 %v5124_v48, %v5123_v46 }
0x4eff   :  { %v7698_v50 = vpop.f32.mrb[36].mxu0 }
0x4f00   :  { %v4593_v51 = vpop.f32.mrb[37].mxu0  ;;  %v8433_v52 = vpop.eup %8432 }
0x4f01   :  { %7701 = vmatprep.mubr.msk.f32.mxu0 %vm3825_vm7, %v4593_v51  ;;  %v4802_v25 = vmul.f32 %v8433_v52, %v8429_v30 }
0x4f02   :  { %7702 = vmatmul.mubr.msk.f32.vlgmr.msra.gmra.mrb[32].mxu0 %vm3825_vm7, %v7698_v50 }
0x4f03   :  { %8059 = vmatpush3.bf16.msra.mxu0 %v8056_v35  ;;  %7715 = vmatprep.mubr.msk.f32.mxu0 %vm85_vm0, %v4801_v56 }
0x4f04   :  { %7718 = vmatprep.subr.msk.mxu0 %vm4027_vm9, %v7029_v37 }
0x4f06   :  { %7716 = vmatmul.mubr.msk.f32.vlgmr.msra.gmra.mrb[38].mxu0 %vm85_vm0, %v4802_v25 }
0x4f07   :  { %7719 = vmatpush3.msk.msra.mxu0 %vm4027_vm9, %v7029_v37 }
0x4f08   :  { %8065 = vmatprep.subr.bf16.mxu0 %v9432_v38 }
0x4fd9   :  { %v7717_v2 = vpop.f32.mrb[38].mxu0 }
0x4fda   :  { %v4881_v9 = vpop.f32.mrb[39].mxu0 }
0x4fdb   :  { %7720 = vmatprep.mubr.msk.f32.mxu0 %vm3825_vm7, %v4881_v9 }
0x4fdc   :  { %7721 = vmatmul.mubr.msk.f32.vlgmr.msra.gmra.mrb[32].mxu0 %vm3825_vm7, %v7717_v2 }
0x4fdd   :  { %8067 = vmatpush3.bf16.msra.mxu0 %v9432_v38 }
0x4fde   :  { %8069 = vmatprep.subr.bf16.mxu0 %v9437_v22 }
0x4fe1   :  { %8071 = vmatpush3.bf16.msra.mxu0 %v9437_v22 }
0x50af   :  { %v7722_v14 = vpop.f32.mrb[32].mxu0 }
0x50b0   :  { %v8147_v59 = vadd.f32 %v7722_v14, %v9402_v57  ;;  %v4967_v60 = vpop.f32.mrb[33].mxu0 }
0x50b1   :  { %v8148_v47 = vadd.f32 %v9402_v57, %v4967_v60 }
0x50b2   :  { %v4979_v61 = vadd.f32 %v8147_v59, %v9274_v62 }
0x50b3   :  { %v4978_v63 = vadd.f32 %v8148_v47, %v9268_v26  ;;  %v5025_v26 = vld [vmem:[%s9709_s15] sm:$0xff] }
0x50b4   :  { %v4985_v0 = vsel %vm85_vm0, %v4979_v61, 0.0  ;;  %v9418_v15 = vpack.c.bf16 %v5026_v13, %v5025_v26 }
0x50b5   :  { %4986 = vadd.xlane.f32.xlu1 %v4985_v0  ;;  %v4982_v1 = vsel %vm85_vm0, %v4978_v63, 0.0 }
0x50b6   :  { %4983 = vadd.xlane.f32.xlu0 %v4982_v1  ;;  %8061 = vmatprep.subr.bf16.mxu1 %v9418_v15 }
0x50b7   :  { %8063 = vmatpush3.bf16.msra.mxu1 %v9418_v15 }
0x50b8   :  { %8080 = vmatprep.subr.bf16.mxu1 %v8482_v3  ;;  %v5121_v3 = vld [vmem:[%s9710_s17 + $0x20] sm:$0xff] }
0x50b9   :  { %v9448_v27 = vpack.c.bf16 %v5122_v23, %v5121_v3 }
0x50bb   :  { %8073 = vmatprep.subr.bf16.mxu0 %v9448_v27 }
0x50bc   :  { %8075 = vmatpush3.bf16.msra.mxu0 %v9448_v27 }
0x50bd   :  { %8077 = vmatprep.subr.bf16.mxu0 %v9488_v49 }
0x50c0   :  { %8079 = vmatpush3.bf16.msra.mxu0 %v9488_v49 }
0x5142   :  { %v4987_v5 = vpop.xlane.xlu1 %4986 }
0x5143   :  { %v4990_v6 = vmul.f32 0.0625, %v4987_v5  ;;  %v4984_v12 = vpop.xlane.xlu0 %4983 }
0x5144   :  { %v4989_v42 = vmul.f32 0.0625, %v4984_v12 }
0x5145   :  { %v4992_v45 = vsub.f32 %v4979_v61, %v4990_v6 }
0x5146   :  { %v4991_v33 = vsub.f32 %v4978_v63, %v4989_v42 }
0x5147   :  { %v4994_v11 = vmul.f32 %v4992_v45, %v4992_v45 }
0x5148   :  { %v4993_v7 = vmul.f32 %v4991_v33, %v4991_v33 }
0x5149   :  { %v4998_v62 = vsel %vm85_vm0, %v4994_v11, 0.0 }
0x514a   :  { %v4995_v10 = vsel %vm85_vm0, %v4993_v7, 0.0 }
0x514b   :  { %4996 = vadd.xlane.f32.xlu0 %v4995_v10 }
0x514f   :  { %4999 = vadd.xlane.f32.xlu0 %v4998_v62 }
0x51d8   :  { %v4997_v29 = vpop.xlane.xlu0 %4996 }
0x51d9   :  { %v5001_v41 = vmul.f32 0.0625, %v4997_v29 }
0x51db   :  { %v5003_v31 = vadd.f32 1e-05, %v5001_v41 }
0x51dc   :  { %v5000_v32 = vpop.xlane.xlu0 %4999 }
0x51dd   :  { %8434 = vrsqrt.f32 %v5003_v31  ;;  %v5002_v34 = vmul.f32 0.0625, %v5000_v32 }
0x51df   :  { %v5004_v35 = vadd.f32 1e-05, %v5002_v34 }
0x51e1   :  { %8436 = vrsqrt.f32 %v5004_v35 }
0x51e7   :  { %v8435_v39 = vpop.eup %8434 }
0x51e8   :  { %v5007_v54 = vmul.f32 %v8435_v39, %v4991_v33 }
0x51ea   :  { %v5015_v55 = vmul.f32 %v9456_v19, %v5007_v54 }
0x51eb   :  { %v8437_v40 = vpop.eup %8436 }
0x51ec   :  { %v5008_v43 = vmul.f32 %v8437_v40, %v4992_v45  ;;  %v9465_v44 = vadd.f32 %v9461_v53, %v5015_v55 }
0x51ee   :  { %v5016_v30 = vmul.f32 %v9456_v19, %v5008_v43  ;;  %7727 = vmatprep.mubr.msk.f32.mxu1 %vm85_vm0, %v9465_v44 }
0x51f0   :  { %v9471_v18 = vadd.f32 %v9461_v53, %v5016_v30 }
0x51f2   :  { %7728 = vmatmul.mubr.msk.f32.vlgmr.msra.gmra.mrb[50].mxu1 %vm85_vm0, %v9471_v18 }
0x51f3   :  { %8082 = vmatpush3.bf16.msra.mxu1 %v9248_v17  ;;  %7753 = vmatprep.mubr.msk.f32.mxu1 %vm8483_vm1, %v8484_v4  ;;  %v9495_v4 = vld [vmem:[%s9759_s5] ss:$0 sm:$0xff] }
0x51f4   :  { %8084 = vmatprep.subr.bf16.mxu1 %v9264_v24 }
0x51f6   :  { %7754 = vmatmul.mubr.msk.f32.vlgmr.msra.gmra.mrb[52].mxu1 %vm85_vm0, %v9255_v36 }
0x51f7   :  { %8086 = vmatpush3.bf16.msra.mxu1 %v9264_v24 }
0x52c5   :  { %v7729_v17 = vpop.f32.mrb[50].mxu1 }
0x52c6   :  { %v5112_v36 = vadd.f32 %v7729_v17, %v9495_v4  ;;  %v5106_v24 = vpop.f32.mrb[51].mxu1 }
0x52c7   :  { %v5107_v50 = vadd.f32 %v9495_v4, %v5106_v24 }
0x52c8   :  { %v5116_v56 = vmax.f32 %v5112_v36, 0.0 }
0x52c9   :  { %v5115_v51 = vmax.f32 %v5107_v50, 0.0  ;;  %v9499_v52 = vpop.f32.mrb[52].mxu1 }
0x52ca   :  { %5339 = vrot.lane.b32.xlu0 %v9499_v52, %s9753_s3  ;;  %v7755_v37 = vpop.f32.mrb[53].mxu1  ;;  %7760 = vmatprep.mubr.msk.f32.mxu1 %vm85_vm0, %v9499_v52 }
0x52cb   :  { %7746 = vmatprep.mubr.msk.f32.mxu0 %vm1147_vm6, %v5115_v51  ;;  %v5633_v37 = vld [vmem:[%s9707_s13] sm:$0xf] }
0x52cc   :  { %7747 = vmatmul.mubr.msk.f32.vlgmr.msra.gmra.mrb[40].mxu0 %vm1147_vm6, %v5116_v56 }
0x533c   :  { %v9507_v25 = vpop.permute.xlu0 %5339 }
0x533d   :  { %7761 = vmatmul.mubr.msk.f32.vlgmr.msra.gmra.mrb[54].mxu1 %vm85_vm0, %v9507_v25 }
0x539f   :  { %v9511_v2 = vpop.f32.mrb[40].mxu0 }
0x53a0   :  { %v9513_v9 = vpop.f32.mrb[41].mxu0 }
0x5410   :  { %v7762_v14 = vpop.f32.mrb[54].mxu1 }
0x5411   :  { %v5427_v59 = vadd.f32 %v7762_v14, %v9281_v28  ;;  %v5421_v60 = vpop.f32.mrb[55].mxu1 }
0x5412   :  { %v5422_v47 = vadd.f32 %v9281_v28, %v5421_v60 }
0x5413   :  { %v9529_v28 = vmul.f32 0.5, %v5427_v59 }
0x5414   :  { %v9517_v61 = vpack.i.bf16 %v5427_v59, %v5422_v47  ;;  %v9519_v63 = vmul.f32 0.5, %v5422_v47 }
0x5416   :  { %8219 = vrot.lane.b32.xlu0 %v9517_v61, %s9753_s3  ;;  %7767 = vmatprep.mubr.msk.f32.mxu1 %vm3825_vm7, %v9519_v63 }
0x5488   :  { %v8220_v0 = vpop.permute.xlu0 %8219 }
0x5489   :  { %v8222_v1 = vunpack.i.h.bf16 %v8220_v0  ;;  %v8221_v5 = vunpack.i.l.bf16 %v8220_v0 }
0x548b   :  { %v8087_v6 = vpack.c.bf16 %v8222_v1, %v8221_v5 }
0x548d   :  { %8089 = vmatprep.subr.msk.bf16.mxu1 %vm9296_vm8, %v8087_v6 }
0x548e   :  { %8092 = vmatpush3.bf16.xpose.msk.msra.mxu1 %vm9296_vm8, %v8087_v6 }
0x548f   :  { %7777 = vmatprep.subr.msk.mxu1 %vm4027_vm9, %v5633_v37 }
0x5495   :  { %7768 = vmatmul.mubr.msk.f32.vlgmr.msra.gmra.mrb[56].mxu1 %vm3825_vm7, %v9529_v28 }
0x5496   :  { %7778 = vmatpush3.msk.msra.mxu1 %vm4027_vm9, %v5633_v37 }
0x5568   :  { %v7769_v12 = vpop.f32.mrb[56].mxu1 }
0x5569   :  { %v5515_v42 = vpop.f32.mrb[57].mxu1  ;;  %v5527_v45 = vsel %vm85_vm0, %v7769_v12, -inf }
0x556a   :  { %5528 = vmax.xlane.f32.xlu1 %v5527_v45  ;;  %v5524_v33 = vsel %vm85_vm0, %v5515_v42, -inf }
0x556b   :  { %5525 = vmax.xlane.f32.xlu0 %v5524_v33 }
0x557b   :  { %8224 = vrot.lane.b32.xlu1 %v9517_v61, %s9755_s29 }
0x557f   :  { %8229 = vrot.lane.b32.xlu1 %v9517_v61, %s8488_s25 }
0x5581   :  { %5726 = vrot.lane.b32.xlu0 %v9519_v63, %s8489_s12 }
0x55f7   :  { %v5529_v7 = vpop.xlane.xlu1 %5528 }
0x55f8   :  { %v5531_v10 = vsub.f32 %v7769_v12, %v5529_v7  ;;  %v5526_v11 = vpop.xlane.xlu0 %5525 }
0x55f9   :  { %v5530_v62 = vsub.f32 %v5515_v42, %v5526_v11 }
0x55fa   :  { %v5534_v26 = vmul.f32 1.442695, %v5531_v10 }
0x55fb   :  { %v5532_v13 = vmul.f32 1.442695, %v5530_v62  ;;  %v8225_v16 = vpop.permute.xlu1 %8224 }
0x55fc   :  { %8438 = vpow2.f32 %v5534_v26  ;;  %v8227_v20 = vunpack.i.h.bf16 %v8225_v16  ;;  %v8226_v8 = vunpack.i.l.bf16 %v8225_v16  ;;  %v5727_v24 = vpop.permute.xlu0 %5726 }
0x55fd   :  { %8440 = vpow2.f32 %v5532_v13 }
0x55fe   :  { %v8093_v21 = vpack.c.bf16 %v8227_v20, %v8226_v8 }
0x55ff   :  { %v8230_v3 = vpop.permute.xlu1 %8229 }
0x5600   :  { %v8232_v23 = vunpack.i.h.bf16 %v8230_v3  ;;  %v8231_v29 = vunpack.i.l.bf16 %v8230_v3  ;;  %8094 = vmatprep.subr.bf16.mxu0 %v8093_v21 }
0x5601   :  { %8096 = vmatpush3.bf16.msra.mxu0 %v8093_v21 }
0x5602   :  { %v8097_v41 = vpack.c.bf16 %v8232_v23, %v8231_v29 }
0x5604   :  { %8099 = vmatprep.subr.msk.bf16.mxu0 %vm9296_vm8, %v8097_v41 }
0x5606   :  { %v8439_v31 = vpop.eup %8438 }
0x5607   :  { %v5539_v32 = vsel %vm85_vm0, %v8439_v31, 0.0  ;;  %v8441_v34 = vpop.eup %8440 }
0x5608   :  { %5540 = vadd.xlane.f32.xlu1 %v5539_v32  ;;  %v5536_v35 = vsel %vm85_vm0, %v8441_v34, 0.0 }
0x560c   :  { %5537 = vadd.xlane.f32.xlu1 %v5536_v35 }
0x561d   :  { %5728 = vrot.lane.b32.xlu1 %v9529_v28, %s8489_s12 }
0x5621   :  { %8234 = vrot.lane.b32.xlu1 %v9517_v61, %s8493_s28 }
0x5625   :  { %6013 = vrot.lane.b32.xlu1 %v9519_v63, %s8490_s26 }
0x5629   :  { %6015 = vrot.lane.b32.xlu1 %v9529_v28, %s8490_s26 }
0x5695   :  { %v5541_v39 = vpop.xlane.xlu1 %5540 }
0x5696   :  { %8442 = vrcp.f32 %v5541_v39 }
0x5699   :  { %v5538_v54 = vpop.xlane.xlu1 %5537 }
0x569a   :  { %8444 = vrcp.f32 %v5538_v54 }
0x569d   :  { %v5729_v55 = vpop.permute.xlu1 %5728 }
0x56a0   :  { %v8443_v43 = vpop.eup %8442 }
0x56a1   :  { %v8235_v40 = vpop.permute.xlu1 %8234  ;;  %v5545_v36 = vmul.f32 %v8443_v43, %v8439_v31 }
0x56a2   :  { %v8237_v46 = vunpack.i.h.bf16 %v8235_v40  ;;  %v8236_v48 = vunpack.i.l.bf16 %v8235_v40 }
0x56a4   :  { %v8445_v30 = vpop.eup %8444  ;;  %v8107_v50 = vpack.c.bf16 %v8237_v46, %v8236_v48 }
0x56a5   :  { %v5544_v17 = vmul.f32 %v8445_v30, %v8441_v34  ;;  %v6014_v51 = vpop.permute.xlu1 %6013 }
0x56a7   :  { %7774 = vmatprep.mubr.msk.f32.mxu0 %vm85_vm0, %v5544_v17 }
0x56a8   :  { %7775 = vmatmul.mubr.msk.f32.vlgmr.msra.gmra.mrb[42].mxu0 %vm85_vm0, %v5545_v36 }
0x56a9   :  { %8102 = vmatpush3.bf16.xpose.msk.msra.mxu0 %vm9296_vm8, %v8097_v41  ;;  %7786 = vmatprep.mubr.msk.f32.mxu0 %vm3825_vm7, %v5727_v24  ;;  %v6016_v56 = vpop.permute.xlu1 %6015 }
0x56aa   :  { %8109 = vmatprep.subr.msk.bf16.mxu0 %vm9296_vm8, %v8107_v50 }
0x56b0   :  { %7787 = vmatmul.mubr.msk.f32.vlgmr.msra.gmra.mrb[44].mxu0 %vm3825_vm7, %v5729_v55 }
0x56b1   :  { %8112 = vmatpush3.bf16.xpose.msk.msra.mxu0 %vm9296_vm8, %v8107_v50  ;;  %7805 = vmatprep.mubr.msk.f32.mxu0 %vm3825_vm7, %v6014_v51 }
0x56b8   :  { %7806 = vmatmul.mubr.msk.f32.vlgmr.msra.gmra.mrb[46].mxu0 %vm3825_vm7, %v6016_v56 }
0x577b   :  { %v7776_v14 = vpop.f32.mrb[42].mxu0 }
0x577c   :  { %v5624_v59 = vpop.f32.mrb[43].mxu0 }
0x577d   :  { %7779 = vmatprep.mubr.msk.f32.mxu1 %vm3825_vm7, %v5624_v59 }
0x577e   :  { %7780 = vmatmul.mubr.msk.f32.vlgmr.msra.gmra.mrb[58].mxu1 %vm3825_vm7, %v7776_v14 }
0x5783   :  { %v7788_v60 = vpop.f32.mrb[44].mxu0 }
0x5784   :  { %v5808_v47 = vpop.f32.mrb[45].mxu0  ;;  %v5820_v0 = vsel %vm85_vm0, %v7788_v60, -inf }
0x5785   :  { %5821 = vmax.xlane.f32.xlu0 %v5820_v0  ;;  %v5817_v1 = vsel %vm85_vm0, %v5808_v47, -inf }
0x5786   :  { %5818 = vmax.xlane.f32.xlu1 %v5817_v1 }
0x578b   :  { %v7807_v5 = vpop.f32.mrb[46].mxu0 }
0x578c   :  { %v6095_v6 = vpop.f32.mrb[47].mxu0  ;;  %v6107_v20 = vsel %vm85_vm0, %v7807_v5, -inf }
0x578d   :  { %v6104_v16 = vsel %vm85_vm0, %v6095_v6, -inf }
0x5812   :  { %v5822_v12 = vpop.xlane.xlu0 %5821 }
0x5813   :  { %v5824_v42 = vsub.f32 %v7788_v60, %v5822_v12  ;;  %v5819_v45 = vpop.xlane.xlu1 %5818 }
0x5814   :  { %v5823_v33 = vsub.f32 %v5808_v47, %v5819_v45 }
0x5815   :  { %v5827_v7 = vmul.f32 1.442695, %v5824_v42 }
0x5816   :  { %v5825_v10 = vmul.f32 1.442695, %v5823_v33 }
0x5817   :  { %8446 = vpow2.f32 %v5827_v7 }
0x5818   :  { %8448 = vpow2.f32 %v5825_v10 }
0x5821   :  { %v8447_v11 = vpop.eup %8446 }
0x5822   :  { %v8449_v62 = vpop.eup %8448  ;;  %v5832_v26 = vsel %vm85_vm0, %v8447_v11, 0.0 }
0x5823   :  { %5833 = vadd.xlane.f32.xlu1 %v5832_v26  ;;  %v5829_v13 = vsel %vm85_vm0, %v8449_v62, 0.0 }
0x5824   :  { %5830 = vadd.xlane.f32.xlu0 %v5829_v13 }
0x5834   :  { %8244 = vrot.lane.b32.xlu1 %v9517_v61, %s8494_s21  ;;  %s9760_s21 = sld [smem:[#allocation12_spill]] }
0x5838   :  { %6300 = vrot.lane.b32.xlu1 %v9519_v63, %s8492_s27 }
0x583a   :  { %8239 = vrot.lane.b32.xlu0 %v9517_v61, %s8491_s2 }
0x583e   :  { %6302 = vrot.lane.b32.xlu0 %v9529_v28, %s8492_s27 }
0x585c   :  { %6105 = vmax.xlane.f32.xlu1 %v6104_v16 }
0x585d   :  { %6108 = vmax.xlane.f32.xlu0 %v6107_v20 }
0x58b0   :  { %v5834_v8 = vpop.xlane.xlu1 %5833 }
0x58b1   :  { %8450 = vrcp.f32 %v5834_v8  ;;  %v5831_v21 = vpop.xlane.xlu0 %5830 }
0x58b2   :  { %8452 = vrcp.f32 %v5831_v21 }
0x58b4   :  { %v8245_v3 = vpop.permute.xlu1 %8244 }
0x58b5   :  { %v8247_v23 = vunpack.i.h.bf16 %v8245_v3  ;;  %v8246_v29 = vunpack.i.l.bf16 %v8245_v3  ;;  %v8240_v63 = vpop.permute.xlu0 %8239 }
0x58b6   :  { %v8242_v41 = vunpack.i.h.bf16 %v8240_v63  ;;  %v8241_v31 = vunpack.i.l.bf16 %v8240_v63 }
0x58b7   :  { %v8117_v32 = vpack.c.bf16 %v8247_v23, %v8246_v29 }
0x58b8   :  { %v8103_v34 = vpack.c.bf16 %v8242_v41, %v8241_v31  ;;  %v6301_v35 = vpop.permute.xlu1 %6300 }
0x58b9   :  { %8119 = vmatprep.subr.msk.bf16.mxu0 %vm9296_vm8, %v8117_v32  ;;  %7824 = vmatprep.mubr.msk.f32.mxu0 %vm3825_vm7, %v6301_v35  ;;  %v6303_v40 = vpop.permute.xlu0 %6302 }
0x58ba   :  { %8104 = vmatprep.subr.bf16.mxu1 %v8103_v34  ;;  %8122 = vmatpush3.bf16.xpose.msk.msra.mxu0 %vm9296_vm8, %v8117_v32 }
0x58bb   :  { %v8451_v28 = vpop.eup %8450  ;;  %8106 = vmatpush3.bf16.msra.mxu1 %v8103_v34  ;;  %8128 = vmatprep.subr.bf16.mxu0 %v9418_v15 }
0x58bc   :  { %v8453_v39 = vpop.eup %8452  ;;  %v5838_v55 = vmul.f32 %v8451_v28, %v8447_v11  ;;  %v7073_v11 = vld [vmem:[%s9707_s13 + $0x8] sm:$0xf] }
0x58bd   :  { %v5837_v54 = vmul.f32 %v8453_v39, %v8449_v62 }
0x58bf   :  { %7793 = vmatprep.mubr.msk.f32.mxu1 %vm85_vm0, %v5837_v54  ;;  %v7083_v54 = vld [vmem:[%s9707_s13 + $0xc] sm:$0xf] }
0x58c0   :  { %7794 = vmatmul.mubr.msk.f32.vlgmr.msra.gmra.mrb[60].mxu1 %vm85_vm0, %v5838_v55 }
0x58c1   :  { %7825 = vmatmul.mubr.msk.f32.vlgmr.msra.gmra.mrb[48].mxu0 %vm3825_vm7, %v6303_v40 }
0x58c2   :  { %8130 = vmatpush3.bf16.msra.mxu0 %v9418_v15  ;;  %v7063_v15 = vld [vmem:[%s9707_s13 + $0x4] sm:$0xf] }
0x58c3   :  { %7796 = vmatprep.subr.msk.mxu1 %vm4027_vm9, %v7063_v15 }
0x58c4   :  { %7797 = vmatpush3.msk.msra.mxu1 %vm4027_vm9, %v7063_v15 }
0x58e9   :  { %v6106_v43 = vpop.xlane.xlu1 %6105 }
0x58ea   :  { %v6110_v30 = vsub.f32 %v6095_v6, %v6106_v43  ;;  %v6109_v58 = vpop.xlane.xlu0 %6108 }
0x58eb   :  { %v6111_v46 = vsub.f32 %v7807_v5, %v6109_v58 }
0x58ec   :  { %v6112_v48 = vmul.f32 1.442695, %v6110_v30 }
0x58ed   :  { %v6114_v17 = vmul.f32 1.442695, %v6111_v46 }
0x58ee   :  { %8454 = vpow2.f32 %v6112_v48 }
0x58ef   :  { %8456 = vpow2.f32 %v6114_v17 }
0x58f8   :  { %v8455_v36 = vpop.eup %8454 }
0x58f9   :  { %v8457_v24 = vpop.eup %8456  ;;  %v6116_v50 = vsel %vm85_vm0, %v8455_v36, 0.0 }
0x58fa   :  { %6117 = vadd.xlane.f32.xlu0 %v6116_v50  ;;  %v6119_v51 = vsel %vm85_vm0, %v8457_v24, 0.0 }
0x58fb   :  { %6120 = vadd.xlane.f32.xlu1 %v6119_v51 }
0x5910   :  { %8249 = vrot.lane.b32.xlu0 %v9517_v61, %s8495_s0 }
0x5987   :  { %v6118_v56 = vpop.xlane.xlu0 %6117 }
0x5988   :  { %v6121_v37 = vpop.xlane.xlu1 %6120  ;;  %8458 = vrcp.f32 %v6118_v56 }
0x5989   :  { %8460 = vrcp.f32 %v6121_v37 }
0x598b   :  { %v8250_v14 = vpop.permute.xlu0 %8249 }
0x598c   :  { %v8252_v59 = vunpack.i.h.bf16 %v8250_v14  ;;  %v8251_v60 = vunpack.i.l.bf16 %v8250_v14 }
0x598e   :  { %v8113_v47 = vpack.c.bf16 %v8252_v59, %v8251_v60 }
0x5990   :  { %8114 = vmatprep.subr.bf16.mxu1 %v8113_v47 }
0x5992   :  { %v8459_v0 = vpop.eup %8458 }
0x5993   :  { %v7795_v1 = vpop.f32.mrb[60].mxu1  ;;  %v8461_v12 = vpop.eup %8460  ;;  %v6124_v33 = vmul.f32 %v8459_v0, %v8455_v36 }
0x5994   :  { %v5917_v5 = vpop.f32.mrb[61].mxu1  ;;  %v7826_v6 = vpop.f32.mrb[48].mxu0  ;;  %v6125_v7 = vmul.f32 %v8461_v12, %v8457_v24 }
0x5995   :  { %7798 = vmatprep.mubr.msk.f32.mxu1 %vm3825_vm7, %v5917_v5  ;;  %v6382_v42 = vpop.f32.mrb[49].mxu0  ;;  %v6394_v10 = vsel %vm85_vm0, %v7826_v6, -inf }
0x5996   :  { %7799 = vmatmul.mubr.msk.f32.vlgmr.msra.gmra.mrb[58].mxu1 %vm3825_vm7, %v7795_v1  ;;  %v6391_v45 = vsel %vm85_vm0, %v6382_v42, -inf }
0x5997   :  { %8116 = vmatpush3.bf16.msra.mxu1 %v8113_v47  ;;  %6392 = vmax.xlane.f32.xlu1 %v6391_v45 }
0x5998   :  { %7812 = vmatprep.mubr.msk.f32.mxu1 %vm85_vm0, %v6124_v33  ;;  %7815 = vmatprep.subr.msk.mxu1 %vm4027_vm9, %v7073_v11 }
0x599a   :  { %7813 = vmatmul.mubr.msk.f32.vlgmr.msra.gmra.mrb[62].mxu1 %vm85_vm0, %v6125_v7 }
0x599b   :  { %6395 = vmax.xlane.f32.xlu1 %v6394_v10  ;;  %7816 = vmatpush3.msk.msra.mxu1 %vm4027_vm9, %v7073_v11 }
0x5a24   :  { %v6393_v62 = vpop.xlane.xlu1 %6392 }
0x5a25   :  { %v6397_v26 = vsub.f32 %v6382_v42, %v6393_v62 }
0x5a27   :  { %v6399_v20 = vmul.f32 1.442695, %v6397_v26 }
0x5a28   :  { %v6396_v13 = vpop.xlane.xlu1 %6395 }
0x5a29   :  { %v6398_v16 = vsub.f32 %v7826_v6, %v6396_v13 }
0x5a2b   :  { %v6401_v8 = vmul.f32 1.442695, %v6398_v16 }
0x5a2d   :  { %8462 = vpow2.f32 %v6401_v8 }
0x5a2e   :  { %8464 = vpow2.f32 %v6399_v20 }
0x5a37   :  { %v8463_v21 = vpop.eup %8462 }
0x5a38   :  { %v6406_v3 = vsel %vm85_vm0, %v8463_v21, 0.0  ;;  %v8465_v23 = vpop.eup %8464 }
0x5a39   :  { %6407 = vadd.xlane.f32.xlu1 %v6406_v3  ;;  %v6403_v29 = vsel %vm85_vm0, %v8465_v23, 0.0 }
0x5a3d   :  { %6404 = vadd.xlane.f32.xlu1 %v6403_v29 }
0x5a4e   :  { %8254 = vrot.lane.b32.xlu1 %v9517_v61, %s8496_s24 }
0x5a6d   :  { %v7814_v63 = vpop.f32.mrb[62].mxu1 }
0x5a6e   :  { %v6204_v41 = vpop.f32.mrb[63].mxu1 }
0x5a6f   :  { %7817 = vmatprep.mubr.msk.f32.mxu1 %vm3825_vm7, %v6204_v41 }
0x5a70   :  { %7818 = vmatmul.mubr.msk.f32.vlgmr.msra.gmra.mrb[58].mxu1 %vm3825_vm7, %v7814_v63 }
0x5ac6   :  { %v6408_v31 = vpop.xlane.xlu1 %6407 }
0x5ac7   :  { %8466 = vrcp.f32 %v6408_v31 }
0x5aca   :  { %v6405_v32 = vpop.xlane.xlu1 %6404 }
0x5acb   :  { %8468 = vrcp.f32 %v6405_v32 }
0x5ace   :  { %v8255_v34 = vpop.permute.xlu1 %8254 }
0x5acf   :  { %v8257_v35 = vunpack.i.h.bf16 %v8255_v34  ;;  %v8256_v28 = vunpack.i.l.bf16 %v8255_v34 }
0x5ad1   :  { %v8123_v39 = vpack.c.bf16 %v8257_v35, %v8256_v28  ;;  %v8467_v61 = vpop.eup %8466 }
0x5ad2   :  { %v6412_v43 = vmul.f32 %v8467_v61, %v8463_v21 }
0x5ad3   :  { %8124 = vmatprep.subr.bf16.mxu1 %v8123_v39 }
0x5ad4   :  { %8126 = vmatpush3.bf16.msra.mxu1 %v8123_v39 }
0x5ad5   :  { %v8469_v55 = vpop.eup %8468  ;;  %7834 = vmatprep.subr.msk.mxu1 %vm4027_vm9, %v7083_v54 }
0x5ad6   :  { %v6411_v40 = vmul.f32 %v8469_v55, %v8465_v23 }
0x5ad8   :  { %7831 = vmatprep.mubr.msk.f32.mxu1 %vm85_vm0, %v6411_v40 }
0x5ad9   :  { %7832 = vmatmul.mubr.msk.f32.vlgmr.msra.gmra.mrb[64].mxu1 %vm85_vm0, %v6412_v43 }
0x5ada   :  { %7835 = vmatpush3.msk.msra.mxu1 %vm4027_vm9, %v7083_v54 }
0x5adb   :  { %8132 = vmatprep.subr.bf16.mxu1 %v9432_v38 }
0x5bac   :  { %v7833_v30 = vpop.f32.mrb[64].mxu1 }
0x5bad   :  { %v6491_v58 = vpop.f32.mrb[65].mxu1 }
0x5bae   :  { %7836 = vmatprep.mubr.msk.f32.mxu1 %vm3825_vm7, %v6491_v58 }
0x5baf   :  { %7837 = vmatmul.mubr.msk.f32.vlgmr.msra.gmra.mrb[58].mxu1 %vm3825_vm7, %v7833_v30 }
0x5bb0   :  { %8134 = vmatpush3.bf16.msra.mxu1 %v9432_v38 }
0x5bb1   :  { %8136 = vmatprep.subr.bf16.mxu1 %v9437_v22 }
0x5bb4   :  { %8138 = vmatpush3.bf16.msra.mxu1 %v9437_v22 }
0x5bb5   :  { %8140 = vmatprep.subr.bf16.mxu1 %v9448_v27 }
0x5bb8   :  { %8142 = vmatpush3.bf16.msra.mxu1 %v9448_v27 }
0x5bb9   :  { %8144 = vmatprep.subr.bf16.mxu1 %v9488_v49 }
0x5bbc   :  { %8146 = vmatpush3.bf16.msra.mxu1 %v9488_v49 }
0x5c82   :  { %v7838_v46 = vpop.f32.mrb[58].mxu1 }
0x5c83   :  { %v8149_v48 = vadd.f32 %v7838_v46, %v9402_v57  ;;  %v6576_v17 = vpop.f32.mrb[59].mxu1 }
0x5c84   :  { %v8150_v36 = vadd.f32 %v9402_v57, %v6576_v17  ;;  %v7038_v57 = vld [vmem:[%s9760_s21] ss:$0 sm:$0xff] }
0x5c85   :  { %v6588_v38 = vadd.f32 %v8149_v48, %v9507_v25  ;;  %v5205_v25 = vadd.f32 %v7038_v57, %v9513_v9  ;;  %v5210_v60 = vadd.f32 %v9511_v2, %v7038_v57 }
0x5c86   :  { %v6587_v24 = vadd.f32 %v8150_v36, %v9499_v52 }
0x5c87   :  { %v6594_v22 = vsel %vm85_vm0, %v6588_v38, 0.0  ;;  %v5213_v47 = vadd.f32 %v5205_v25, %v9465_v44  ;;  %v5214_v1 = vadd.f32 %v5210_v60, %v9471_v18  ;;  %v7041_v25 = vld [vmem:[%s9761_s4] ss:$0 sm:$0xff] }
0x5c88   :  { %6595 = vadd.xlane.f32.xlu1 %v6594_v22  ;;  %v6591_v50 = vsel %vm85_vm0, %v6587_v24, 0.0  ;;  %v7042_v60 = vld [vmem:[%s9762_s7] ss:$0 sm:$0xff] }
0x5c89   :  { %6592 = vadd.xlane.f32.xlu0 %v6591_v50  ;;  %v5217_v5 = vsel %vm85_vm0, %v5213_v47, 0.0  ;;  %v5220_v6 = vsel %vm85_vm0, %v5214_v1, 0.0 }
0x5d15   :  { %v6596_v27 = vpop.xlane.xlu1 %6595 }
0x5d16   :  { %v6598_v51 = vmul.f32 0.0625, %v6596_v27  ;;  %v6593_v15 = vpop.xlane.xlu0 %6592 }
0x5d17   :  { %v6597_v49 = vmul.f32 0.0625, %v6593_v15 }
0x5d18   :  { %v6600_v56 = vsub.f32 %v6588_v38, %v6598_v51 }
0x5d19   :  { %v6599_v37 = vsub.f32 %v6587_v24, %v6597_v49 }
0x5d1a   :  { %v6602_v59 = vmul.f32 %v6600_v56, %v6600_v56 }
0x5d1b   :  { %v6601_v14 = vmul.f32 %v6599_v37, %v6599_v37 }
0x5d1c   :  { %v6606_v0 = vsel %vm85_vm0, %v6602_v59, 0.0 }
0x5d1d   :  { %v6603_v52 = vsel %vm85_vm0, %v6601_v14, 0.0 }
0x5d1e   :  { %6604 = vadd.xlane.f32.xlu0 %v6603_v52 }
0x5d22   :  { %6607 = vadd.xlane.f32.xlu0 %v6606_v0 }
0x5d26   :  { %5218 = vadd.xlane.f32.xlu0 %v5217_v5 }
0x5d2a   :  { %5221 = vadd.xlane.f32.xlu0 %v5220_v6 }
0x5dab   :  { %v6605_v9 = vpop.xlane.xlu0 %6604 }
0x5dac   :  { %v6609_v12 = vmul.f32 0.0625, %v6605_v9 }
0x5dae   :  { %v6611_v42 = vadd.f32 1e-05, %v6609_v12 }
0x5daf   :  { %v6608_v45 = vpop.xlane.xlu0 %6607 }
0x5db0   :  { %8470 = vrsqrt.f32 %v6611_v42  ;;  %v6610_v33 = vmul.f32 0.0625, %v6608_v45 }
0x5db2   :  { %v6612_v2 = vadd.f32 1e-05, %v6610_v33 }
0x5db3   :  { %v5219_v29 = vpop.xlane.xlu0 %5218 }
0x5db4   :  { %8472 = vrsqrt.f32 %v6612_v2  ;;  %v5223_v41 = vmul.f32 0.0625, %v5219_v29 }
0x5db6   :  { %v5225_v35 = vsub.f32 %v5213_v47, %v5223_v41 }
0x5db8   :  { %v5227_v40 = vmul.f32 %v5225_v35, %v5225_v35 }
0x5dba   :  { %v8471_v44 = vpop.eup %8470  ;;  %v5229_v30 = vsel %vm85_vm0, %v5227_v40, 0.0 }
0x5dbb   :  { %v6615_v7 = vmul.f32 %v8471_v44, %v6599_v37 }
0x5dbd   :  { %v6623_v10 = vmul.f32 %v9456_v19, %v6615_v7 }
0x5dbe   :  { %v8473_v11 = vpop.eup %8472 }
0x5dbf   :  { %v6616_v18 = vmul.f32 %v8473_v11, %v6600_v56  ;;  %v6631_v62 = vadd.f32 %v9461_v53, %v6623_v10 }
0x5dc1   :  { %v6624_v26 = vmul.f32 %v9456_v19, %v6616_v18  ;;  %7843 = vmatprep.mubr.msk.f32.mxu0 %vm85_vm0, %v6631_v62  ;;  %v5222_v19 = vpop.xlane.xlu0 %5221 }
0x5dc2   :  { %v5224_v63 = vmul.f32 0.0625, %v5222_v19 }
0x5dc3   :  { %v6632_v13 = vadd.f32 %v9461_v53, %v6624_v26 }
0x5dc4   :  { %v5226_v53 = vsub.f32 %v5214_v1, %v5224_v63 }
0x5dc5   :  { %7844 = vmatmul.mubr.msk.f32.vlgmr.msra.gmra.mrb[50].mxu0 %vm85_vm0, %v6632_v13 }
0x5dc6   :  { %v5228_v61 = vmul.f32 %v5226_v53, %v5226_v53 }
0x5dc8   :  { %v5232_v43 = vsel %vm85_vm0, %v5228_v61, 0.0 }
0x5e98   :  { %v7845_v16 = vpop.f32.mrb[50].mxu0 }
0x5e99   :  { %v6720_v20 = vadd.f32 %v7845_v16, %v9495_v4  ;;  %v6714_v8 = vpop.f32.mrb[51].mxu0 }
0x5e9a   :  { %v6715_v21 = vadd.f32 %v9495_v4, %v6714_v8 }
0x5e9b   :  { %v6724_v23 = vmax.f32 %v6720_v20, 0.0 }
0x5e9c   :  { %v6723_v3 = vmax.f32 %v6715_v21, 0.0 }
0x5e9e   :  { %7862 = vmatprep.mubr.msk.f32.mxu1 %vm1147_vm6, %v6723_v3 }
0x5e9f   :  { %7863 = vmatmul.mubr.msk.f32.vlgmr.msra.gmra.mrb[66].mxu1 %vm1147_vm6, %v6724_v23 }
0x5f72   :  { %v7864_v31 = vpop.f32.mrb[66].mxu1 }
0x5f73   :  { %v6818_v32 = vadd.f32 %v7864_v31, %v7038_v57  ;;  %v6812_v34 = vpop.f32.mrb[67].mxu1 }
0x5f74   :  { %v6813_v28 = vadd.f32 %v7038_v57, %v6812_v34 }
0x5f75   :  { %v6822_v39 = vadd.f32 %v6818_v32, %v6632_v13 }
0x5f76   :  { %v6821_v54 = vadd.f32 %v6813_v28, %v6631_v62 }
0x5f77   :  { %v6828_v4 = vsel %vm85_vm0, %v6822_v39, 0.0 }
0x5f78   :  { %6829 = vadd.xlane.f32.xlu1 %v6828_v4  ;;  %v6825_v55 = vsel %vm85_vm0, %v6821_v54, 0.0 }
0x5f79   :  { %6826 = vadd.xlane.f32.xlu0 %v6825_v55 }
0x5f7c   :  { %5233 = vadd.xlane.f32.xlu1 %v5232_v43 }
0x5f7d   :  { %5230 = vadd.xlane.f32.xlu0 %v5229_v30 }
0x6005   :  { %v6830_v58 = vpop.xlane.xlu1 %6829 }
0x6006   :  { %v6832_v46 = vmul.f32 0.0625, %v6830_v58  ;;  %v6827_v48 = vpop.xlane.xlu0 %6826 }
0x6007   :  { %v6831_v17 = vmul.f32 0.0625, %v6827_v48 }
0x6008   :  { %v6834_v36 = vsub.f32 %v6822_v39, %v6832_v46 }
0x6009   :  { %v6833_v38 = vsub.f32 %v6821_v54, %v6831_v17  ;;  %v5234_v24 = vpop.xlane.xlu1 %5233 }
0x600a   :  { %v5236_v22 = vmul.f32 0.0625, %v5234_v24  ;;  %v5231_v50 = vpop.xlane.xlu0 %5230  ;;  %v6836_v27 = vmul.f32 %v6834_v36, %v6834_v36 }
0x600b   :  { %v5235_v51 = vmul.f32 0.0625, %v5231_v50  ;;  %v6835_v15 = vmul.f32 %v6833_v38, %v6833_v38 }
0x600c   :  { %v5238_v49 = vadd.f32 1e-05, %v5236_v22  ;;  %v6840_v56 = vsel %vm85_vm0, %v6836_v27, 0.0 }
0x600d   :  { %v5237_v37 = vadd.f32 1e-05, %v5235_v51  ;;  %6841 = vadd.xlane.f32.xlu1 %v6840_v56  ;;  %v6837_v57 = vsel %vm85_vm0, %v6835_v15, 0.0 }
0x600e   :  { %8474 = vrsqrt.f32 %v5238_v49  ;;  %6838 = vadd.xlane.f32.xlu0 %v6837_v57 }
0x600f   :  { %8476 = vrsqrt.f32 %v5237_v37 }
0x6018   :  { %v8475_v14 = vpop.eup %8474 }
0x6019   :  { %v8477_v52 = vpop.eup %8476  ;;  %v5242_v59 = vmul.f32 %v8475_v14, %v5226_v53 }
0x601a   :  { %v5241_v47 = vmul.f32 %v8477_v52, %v5225_v35 }
0x601b   :  { %v5250_v0 = vmul.f32 %v7041_v25, %v5242_v59 }
0x601c   :  { %v5249_v1 = vmul.f32 %v7041_v25, %v5241_v47 }
0x601d   :  { %v5258_v5 = vadd.f32 %v7042_v60, %v5250_v0 }
0x601e   :  { %v5257_v6 = vadd.f32 %v7042_v60, %v5249_v1 }
0x601f   :  { %v5260_v9 = vmax.f32 %v5258_v5, 0.0 }
0x6020   :  { %v5259_v12 = vmax.f32 %v5257_v6, 0.0 }
0x6021   :  { %5262 = vst.msk [vmem:[%s9763_s6 + $0x8] sm:$0xff] %vm85_vm0, %v5260_v9 }
0x6022   :  { %5261 = vst.msk [vmem:[%s9763_s6] sm:$0xff] %vm85_vm0, %v5259_v12 }
0x609a   :  { %v6842_v42 = vpop.xlane.xlu1 %6841 }
0x609b   :  { %v6844_v45 = vmul.f32 0.0625, %v6842_v42  ;;  %v6839_v33 = vpop.xlane.xlu0 %6838 }
0x609c   :  { %v6843_v2 = vmul.f32 0.0625, %v6839_v33 }
0x609d   :  { %v6846_v44 = vadd.f32 1e-05, %v6844_v45 }
0x609e   :  { %v6845_v7 = vadd.f32 1e-05, %v6843_v2 }
0x609f   :  { %8478 = vrsqrt.f32 %v6846_v44 }
0x60a0   :  { %8480 = vrsqrt.f32 %v6845_v7 }
0x60a9   :  { %v8479_v10 = vpop.eup %8478 }
0x60aa   :  { %v8481_v11 = vpop.eup %8480  ;;  %v6850_v18 = vmul.f32 %v8479_v10, %v6834_v36 }
0x60ab   :  { %v6849_v62 = vmul.f32 %v8481_v11, %v6833_v38 }
0x60ac   :  { %v6858_v26 = vmul.f32 %v7041_v25, %v6850_v18 }
0x60ad   :  { %v6857_v13 = vmul.f32 %v7041_v25, %v6849_v62 }
0x60ae   :  { %v6866_v16 = vadd.f32 %v7042_v60, %v6858_v26 }
0x60af   :  { %v6865_v20 = vadd.f32 %v7042_v60, %v6857_v13 }
0x60b0   :  { %v6868_v8 = vmax.f32 %v6866_v16, 0.0 }
0x60b1   :  { %v6867_v21 = vmax.f32 %v6865_v20, 0.0 }
0x60b2   :  { %7098 = vst.msk [vmem:[%s9763_s6 + $0x18] sm:$0xff] %vm85_vm0, %v6868_v8 }
0x60b3   :  { %7097 = vst.msk [vmem:[%s9763_s6 + $0x10] sm:$0xff] %vm85_vm0, %v6867_v21 }

</bundles_post_ra>
